<compile_context>
chip_gen: v7x
topology: tpu7x:2x2x1
jax: 0.10.0
libtpu: 0.0.40
codegen_flags: <defaults>
</compile_context>

<pallas_src>
import math
import jax
import jax.numpy as jnp
from jax.experimental import pallas as pl
from jax.experimental.pallas import tpu as pltpu

# ---- model dims (small, consistent with the module) ----
D_MODEL = 32                   # d_model
N_HEADS = 4                    # n_heads
D_K = D_MODEL // N_HEADS       # per-head dim (= d_v)
D_FF = 64                      # feed-forward hidden
LN_EPS = 1e-5                  # PyTorch nn.LayerNorm default
INV_SQRT_DK = 1.0 / math.sqrt(D_K)


# ----------------------------------------------------------------------------
# in-kernel building blocks
# ----------------------------------------------------------------------------
def _layer_norm(y, gamma, beta):
    mean = jnp.mean(y, axis=-1, keepdims=True)
    var = jnp.mean((y - mean) ** 2, axis=-1, keepdims=True)
    return (y - mean) * jax.lax.rsqrt(var + LN_EPS) * gamma + beta


# ----------------------------------------------------------------------------
# fused DecoderLayer kernel: one grid step == one batch *block* (BB batch elems).
# All three sublayers run back-to-back with the activation resident in VMEM.
# ----------------------------------------------------------------------------
def decoder_layer_kernel(
        dec_ref, enc_ref, smask_ref, cmask_ref,
        mha_wqkv_ref, mha_wo_ref, mha_bqkv_ref, mha_misc_ref,
        ffn_w1_ref, ffn_w2_ref, ffn_b1_ref, ffn_misc_ref,
        out_ref, self_attn_ref, enc_attn_ref):
    BB, S_dec, D = dec_ref.shape
    S_enc = enc_ref.shape[1]

    # Fold the batch block into the row (sublane) dimension so the shared-weight
    # matmuls (QKV projections, FFN) cover all BB batch elements in one MXU issue.
    x0 = dec_ref[...].reshape(BB * S_dec, D)
    enc = enc_ref[...].reshape(BB * S_enc, D)

    def mha(x_rows, kv_rows, mask_ref, attn_ref, idx, same_kv, s_kv):
        """Multi-head attention + residual + LayerNorm. idx: 0=self, 1=cross."""
        wqkv = mha_wqkv_ref[idx]       # (D, 3D)
        bqkv = mha_bqkv_ref[idx]       # (1, 3D)
        wo = mha_wo_ref[idx]           # (D, D) ; rows h*Dk:(h+1)*Dk belong to head h
        misc = mha_misc_ref[idx]       # (3, D) ; rows: b_o, ln_gamma, ln_beta

        if same_kv:
            # single fused QKV matmul for all heads and all BB batch elements
            qkv = jnp.dot(x_rows, wqkv, preferred_element_type=jnp.float32) + bqkv
            q_all, k_all, v_all = qkv[:, :D], qkv[:, D:2 * D], qkv[:, 2 * D:]
        else:
            q_all = (jnp.dot(x_rows, wqkv[:, :D],
                             preferred_element_type=jnp.float32) + bqkv[:, :D])
            kvp = (jnp.dot(kv_rows, wqkv[:, D:],
                           preferred_element_type=jnp.float32) + bqkv[:, D:])
            k_all, v_all = kvp[:, :D], kvp[:, D:]

        y_blocks = []
        for b in range(BB):                                   # static batch loop
            q_b = q_all[b * S_dec:(b + 1) * S_dec]            # (S_dec, D)
            k_b = k_all[b * s_kv:(b + 1) * s_kv]              # (s_kv, D)
            v_b = v_all[b * s_kv:(b + 1) * s_kv]
            madd = mask_ref[b]                                # (S_dec, s_kv) additive
            acc = None
            for h in range(N_HEADS):                          # static head loop
                hs = slice(h * D_K, (h + 1) * D_K)
                # q . k^T without materializing a transpose: contract last dims.
                s = jax.lax.dot_general(
                    q_b[:, hs], k_b[:, hs],
                    dimension_numbers=(((1,), (1,)), ((), ())),
                    preferred_element_type=jnp.float32)       # (S_dec, s_kv)
                s = s * INV_SQRT_DK + madd
                s = s - jnp.max(s, axis=-1, keepdims=True)
                e = jnp.exp(s)
                a = e / jnp.sum(e, axis=-1, keepdims=True)    # exact softmax
                attn_ref[b, h] = a
                ctx = jnp.dot(a, v_b[:, hs],
                              preferred_element_type=jnp.float32)          # (S_dec, Dk)
                part = jnp.dot(ctx, wo[h * D_K:(h + 1) * D_K, :],
                               preferred_element_type=jnp.float32)         # (S_dec, D)
                acc = part if acc is None else acc + part
            y_b = acc + misc[0:1, :] + x_rows[b * S_dec:(b + 1) * S_dec]   # bias + resid
            y_blocks.append(_layer_norm(y_b, misc[1:2, :], misc[2:3, :]))
        return y_blocks[0] if BB == 1 else jnp.concatenate(y_blocks, axis=0)

    x1 = mha(x0, x0, smask_ref, self_attn_ref, 0, True, S_dec)     # masked self-attn
    x2 = mha(x1, enc, cmask_ref, enc_attn_ref, 1, False, S_enc)    # cross-attn

    # position-wise FFN (Conv1d k=1 == Linear) + residual + LayerNorm
    h = jnp.dot(x2, ffn_w1_ref[...], preferred_element_type=jnp.float32) + ffn_b1_ref[...]
    h = jnp.maximum(h, 0.0)
    y = (jnp.dot(h, ffn_w2_ref[...], preferred_element_type=jnp.float32)
         + ffn_misc_ref[0:1, :] + x2)
    y = _layer_norm(y, ffn_misc_ref[1:2, :], ffn_misc_ref[2:3, :])
    out_ref[...] = y.reshape(BB, S_dec, D)


# ----------------------------------------------------------------------------
# wrapper
# ----------------------------------------------------------------------------
def _pick_batch_block(batch):
    """v7x has 2 TensorCores -> keep batch on a 'parallel' grid so the two batch
    elements land on the two cores; single-TC v5e/v6e -> collapse the grid."""
    try:
        kind = jax.devices()[0].device_kind.lower()
    except Exception:
        return batch
    if ("v7" in kind or "7x" in kind) and batch > 1:
        return 1
    return batch


def decoder_layer(decode_input, encode_output, decode_self_attn_mask, decode_attn_mask,
                  params):
    B, S_dec, D = decode_input.shape
    S_enc = encode_output.shape[1]

    # additive masks (0 where visible, -1e9 where masked); applied as s*scale + mask
    smask_add = jnp.where(decode_self_attn_mask > 0, -1e9, 0.0).astype(jnp.float32)
    cmask_add = jnp.where(decode_attn_mask > 0, -1e9, 0.0).astype(jnp.float32)

    BB = _pick_batch_block(B)
    grid = (B // BB,)

    def batch_spec(shape):
        blk = (BB,) + tuple(shape[1:])
        rest = len(shape) - 1
        return pl.BlockSpec(blk, lambda i, _r=rest: (i,) + (0,) * _r)

    def rep_spec(shape):
        rank = len(shape)
        return pl.BlockSpec(tuple(shape), lambda i, _r=rank: (0,) * _r)

    args = (decode_input, encode_output, smask_add, cmask_add,
            params["mha_wqkv"], params["mha_wo"], params["mha_bqkv"], params["mha_misc"],
            params["ffn_w1"], params["ffn_w2"], params["ffn_b1"], params["ffn_misc"])

    in_specs = ([batch_spec(a.shape) for a in args[:4]]
                + [rep_spec(a.shape) for a in args[4:]])

    out_shape = (
        jax.ShapeDtypeStruct((B, S_dec, D), jnp.float32),
        jax.ShapeDtypeStruct((B, N_HEADS, S_dec, S_dec), jnp.float32),
        jax.ShapeDtypeStruct((B, N_HEADS, S_dec, S_enc), jnp.float32),
    )
    out_specs = [batch_spec(s.shape) for s in out_shape]

    # advisory cost estimate (matmul flops dominate; exp/rsqrt as transcendentals)
    self_f = 2 * S_dec * D * (3 * D) + N_HEADS * (4 * S_dec * S_dec * D_K + 2 * S_dec * D_K * D)
    cross_f = (2 * S_dec * D * D + 2 * S_enc * D * (2 * D)
               + N_HEADS * (4 * S_dec * S_enc * D_K + 2 * S_dec * D_K * D))
    ffn_f = 4 * S_dec * D * D_FF
    flops = B * (self_f + cross_f + ffn_f)
    transcendentals = B * (N_HEADS * (S_dec * S_dec + S_dec * S_enc) + 3 * S_dec)
    bytes_accessed = (sum(a.size * a.dtype.itemsize for a in args)
                      + sum(math.prod(s.shape) * jnp.dtype(s.dtype).itemsize
                            for s in out_shape))

    output, self_attn, encode_attn = pl.pallas_call(
        decoder_layer_kernel,
        out_shape=out_shape,
        grid=grid,
        in_specs=in_specs,
        out_specs=out_specs,
        compiler_params=pltpu.CompilerParams(dimension_semantics=("parallel",)),
        cost_estimate=pl.CostEstimate(flops=flops,
                                      transcendentals=transcendentals,
                                      bytes_accessed=bytes_accessed),
    )(*args)
    return output, self_attn, encode_attn


# ----------------------------------------------------------------------------
# deterministic synthetic parameter init, directly in the packed layout.
#   mha_wqkv : (2, D, 3D)   [sublayer 0 = self-attn, 1 = cross-attn]
#   mha_wo   : (2, D, D)    rows h*Dk:(h+1)*Dk correspond to head h
#   mha_bqkv : (2, 1, 3D)
#   mha_misc : (2, 3, D)    rows: output bias, LN gamma, LN beta
#   ffn_w1/w2/b1, ffn_misc (rows: b2, LN gamma, LN beta)
# ----------------------------------------------------------------------------
def init_params(key):
    k_sa, k_ca, k_ff = jax.random.split(key, 3)
    s = 0.05

    def mha_pack(k):
        kq, kk, kv, ko = jax.random.split(k, 4)
        wqkv = jnp.concatenate(
            [jax.random.normal(kq, (D_MODEL, D_MODEL), jnp.float32),
             jax.random.normal(kk, (D_MODEL, D_MODEL), jnp.float32),
             jax.random.normal(kv, (D_MODEL, D_MODEL), jnp.float32)], axis=1) * s
        wo = jax.random.normal(ko, (D_MODEL, D_MODEL), jnp.float32) * s
        bqkv = jnp.zeros((1, 3 * D_MODEL), jnp.float32)
        misc = jnp.stack([jnp.zeros((D_MODEL,)),          # output-proj bias
                          jnp.ones((D_MODEL,)),           # LN gamma
                          jnp.zeros((D_MODEL,))]).astype(jnp.float32)
        return wqkv, wo, bqkv, misc

    sa = mha_pack(k_sa)
    ca = mha_pack(k_ca)
    k1, k2 = jax.random.split(k_ff)
    return {
        "mha_wqkv": jnp.stack([sa[0], ca[0]]),
        "mha_wo": jnp.stack([sa[1], ca[1]]),
        "mha_bqkv": jnp.stack([sa[2], ca[2]]),
        "mha_misc": jnp.stack([sa[3], ca[3]]),
        "ffn_w1": jax.random.normal(k1, (D_MODEL, D_FF), jnp.float32) * s,
        "ffn_w2": jax.random.normal(k2, (D_FF, D_MODEL), jnp.float32) * s,
        "ffn_b1": jnp.zeros((1, D_FF), jnp.float32),
        "ffn_misc": jnp.stack([jnp.zeros((D_MODEL,)),
                               jnp.ones((D_MODEL,)),
                               jnp.zeros((D_MODEL,))]).astype(jnp.float32),
    }


if __name__ == "__main__":
    B, S_DEC, S_ENC = 2, 8, 8
    key = jax.random.PRNGKey(0)
    k_in, k_enc, k_p = jax.random.split(key, 3)

    decode_input = jax.random.normal(k_in, (B, S_DEC, D_MODEL), jnp.float32)
    encode_output = jax.random.normal(k_enc, (B, S_ENC, D_MODEL), jnp.float32)

    # causal (subsequent-position) mask for decoder self-attention: 1 = masked
    causal = jnp.triu(jnp.ones((S_DEC, S_DEC), jnp.float32), k=1)
    decode_self_attn_mask = jnp.broadcast_to(causal, (B, S_DEC, S_DEC))
    # decoder->encoder mask: no padding masked out in this synthetic example
    decode_attn_mask = jnp.zeros((B, S_DEC, S_ENC), jnp.float32)

    params = init_params(k_p)

    output, self_attn, encode_attn = decoder_layer(
        decode_input, encode_output, decode_self_attn_mask, decode_attn_mask, params)
    jax.block_until_ready((output, self_attn, encode_attn))

    assert output.shape == (B, S_DEC, D_MODEL)
    assert self_attn.shape == (B, N_HEADS, S_DEC, S_DEC)
    assert encode_attn.shape == (B, N_HEADS, S_DEC, S_ENC)
    # attention rows must be valid probability distributions
    assert bool(jnp.allclose(jnp.sum(self_attn, axis=-1), 1.0, atol=1e-5))
    assert bool(jnp.allclose(jnp.sum(encode_attn, axis=-1), 1.0, atol=1e-5))
    # causal mask respected: strictly-upper-triangular self-attention probs are ~0
    assert bool(jnp.all(jnp.abs(self_attn * causal[None, None]) < 1e-6))
    print("KERNEL_OK")
</pallas_src>

<mosaic_0001>
module attributes {stable_mosaic.version = 11 : i64} {
  func.func @decoder_layer_kernel(%arg0: i32, %arg1: memref<2x8x32xf32, #tpu.memory_space<vmem>>, %arg2: memref<2x8x32xf32, #tpu.memory_space<vmem>>, %arg3: memref<2x8x8xf32, #tpu.memory_space<vmem>>, %arg4: memref<2x8x8xf32, #tpu.memory_space<vmem>>, %arg5: memref<2x32x96xf32, #tpu.memory_space<vmem>>, %arg6: memref<2x32x32xf32, #tpu.memory_space<vmem>>, %arg7: memref<2x1x96xf32, #tpu.memory_space<vmem>>, %arg8: memref<2x3x32xf32, #tpu.memory_space<vmem>>, %arg9: memref<32x64xf32, #tpu.memory_space<vmem>>, %arg10: memref<64x32xf32, #tpu.memory_space<vmem>>, %arg11: memref<1x64xf32, #tpu.memory_space<vmem>>, %arg12: memref<3x32xf32, #tpu.memory_space<vmem>>, %arg13: memref<2x8x32xf32, #tpu.memory_space<vmem>>, %arg14: memref<2x4x8x8xf32, #tpu.memory_space<vmem>>, %arg15: memref<2x4x8x8xf32, #tpu.memory_space<vmem>>) attributes {dimension_semantics = [#tpu.dimension_semantics<parallel>], iteration_bounds = array<i64: 1>, scalar_prefetch = 0 : i64, scratch_operands = 0 : i64, tpu.core_type = #tpu.core_type<tc>, window_params = [{transform_indices = @transform_0, window_bounds = array<i64: 2, 8, 32>}, {transform_indices = @transform_1, window_bounds = array<i64: 2, 8, 32>}, {transform_indices = @transform_2, window_bounds = array<i64: 2, 8, 8>}, {transform_indices = @transform_3, window_bounds = array<i64: 2, 8, 8>}, {pipeline_mode = #tpu.pipeline_mode<synchronous>, transform_indices = @transform_4, window_bounds = array<i64: 2, 32, 96>}, {pipeline_mode = #tpu.pipeline_mode<synchronous>, transform_indices = @transform_5, window_bounds = array<i64: 2, 32, 32>}, {pipeline_mode = #tpu.pipeline_mode<synchronous>, transform_indices = @transform_6, window_bounds = array<i64: 2, 1, 96>}, {pipeline_mode = #tpu.pipeline_mode<synchronous>, transform_indices = @transform_7, window_bounds = array<i64: 2, 3, 32>}, {pipeline_mode = #tpu.pipeline_mode<synchronous>, transform_indices = @transform_8, window_bounds = array<i64: 32, 64>}, {pipeline_mode = #tpu.pipeline_mode<synchronous>, transform_indices = @transform_9, window_bounds = array<i64: 64, 32>}, {pipeline_mode = #tpu.pipeline_mode<synchronous>, transform_indices = @transform_10, window_bounds = array<i64: 1, 64>}, {pipeline_mode = #tpu.pipeline_mode<synchronous>, transform_indices = @transform_11, window_bounds = array<i64: 3, 32>}, {transform_indices = @transform_12, window_bounds = array<i64: 2, 8, 32>}, {transform_indices = @transform_13, window_bounds = array<i64: 2, 4, 8, 8>}, {transform_indices = @transform_14, window_bounds = array<i64: 2, 4, 8, 8>}]} {
    %c0 = arith.constant 0 : index
    %c0_0 = arith.constant 0 : index
    %c0_1 = arith.constant 0 : index
    %0 = vector.load %arg1[%c0, %c0_0, %c0_1] : memref<2x8x32xf32, #tpu.memory_space<vmem>>, vector<2x8x32xf32>
    %1 = vector.shape_cast %0 : vector<2x8x32xf32> to vector<16x32xf32>
    %c0_2 = arith.constant 0 : index
    %c0_3 = arith.constant 0 : index
    %c0_4 = arith.constant 0 : index
    %2 = vector.load %arg2[%c0_2, %c0_3, %c0_4] : memref<2x8x32xf32, #tpu.memory_space<vmem>>, vector<2x8x32xf32>
    %3 = vector.shape_cast %2 : vector<2x8x32xf32> to vector<16x32xf32>
    %c0_5 = arith.constant 0 : index
    %c0_6 = arith.constant 0 : index
    %c0_7 = arith.constant 0 : index
    %4 = vector.load %arg5[%c0_5, %c0_6, %c0_7] : memref<2x32x96xf32, #tpu.memory_space<vmem>>, vector<1x32x96xf32>
    %5 = vector.shape_cast %4 : vector<1x32x96xf32> to vector<32x96xf32>
    %c0_8 = arith.constant 0 : index
    %c0_9 = arith.constant 0 : index
    %c0_10 = arith.constant 0 : index
    %6 = vector.load %arg7[%c0_8, %c0_9, %c0_10] : memref<2x1x96xf32, #tpu.memory_space<vmem>>, vector<1x1x96xf32>
    %7 = vector.shape_cast %6 : vector<1x1x96xf32> to vector<1x96xf32>
    %c0_11 = arith.constant 0 : index
    %c0_12 = arith.constant 0 : index
    %c0_13 = arith.constant 0 : index
    %8 = vector.load %arg6[%c0_11, %c0_12, %c0_13] : memref<2x32x32xf32, #tpu.memory_space<vmem>>, vector<1x32x32xf32>
    %9 = vector.shape_cast %8 : vector<1x32x32xf32> to vector<32x32xf32>
    %c0_14 = arith.constant 0 : index
    %c0_15 = arith.constant 0 : index
    %c0_16 = arith.constant 0 : index
    %10 = vector.load %arg8[%c0_14, %c0_15, %c0_16] : memref<2x3x32xf32, #tpu.memory_space<vmem>>, vector<1x3x32xf32>
    %11 = vector.shape_cast %10 : vector<1x3x32xf32> to vector<3x32xf32>
    %cst = arith.constant dense<0.000000e+00> : vector<16x96xf32>
    %12 = tpu.matmul %1, %5, %cst {dimension_numbers = #tpu.dot_dimension_numbers<[1], [0], [0], [1], [0, 0, 1, 1], [], []>} : vector<16x32xf32>, vector<32x96xf32>, vector<16x96xf32> -> vector<16x96xf32>
    %13 = vector.broadcast %7 : vector<1x96xf32> to vector<16x96xf32>
    %14 = arith.addf %12, %13 : vector<16x96xf32>
    %15 = vector.extract_strided_slice %14 {offsets = [0, 0], sizes = [16, 32], strides = [1, 1]} : vector<16x96xf32> to vector<16x32xf32>
    %16 = vector.extract_strided_slice %14 {offsets = [0, 32], sizes = [16, 32], strides = [1, 1]} : vector<16x96xf32> to vector<16x32xf32>
    %17 = vector.extract_strided_slice %14 {offsets = [0, 64], sizes = [16, 32], strides = [1, 1]} : vector<16x96xf32> to vector<16x32xf32>
    %18 = vector.extract_strided_slice %15 {offsets = [0, 0], sizes = [8, 32], strides = [1, 1]} : vector<16x32xf32> to vector<8x32xf32>
    %19 = vector.extract_strided_slice %16 {offsets = [0, 0], sizes = [8, 32], strides = [1, 1]} : vector<16x32xf32> to vector<8x32xf32>
    %20 = vector.extract_strided_slice %17 {offsets = [0, 0], sizes = [8, 32], strides = [1, 1]} : vector<16x32xf32> to vector<8x32xf32>
    %c0_17 = arith.constant 0 : index
    %c0_18 = arith.constant 0 : index
    %c0_19 = arith.constant 0 : index
    %21 = vector.load %arg3[%c0_17, %c0_18, %c0_19] : memref<2x8x8xf32, #tpu.memory_space<vmem>>, vector<1x8x8xf32>
    %22 = vector.shape_cast %21 : vector<1x8x8xf32> to vector<8x8xf32>
    %23 = vector.extract_strided_slice %18 {offsets = [0, 0], sizes = [8, 8], strides = [1, 1]} : vector<8x32xf32> to vector<8x8xf32>
    %24 = vector.extract_strided_slice %19 {offsets = [0, 0], sizes = [8, 8], strides = [1, 1]} : vector<8x32xf32> to vector<8x8xf32>
    %cst_20 = arith.constant dense<0.000000e+00> : vector<8x8xf32>
    %25 = tpu.matmul %23, %24, %cst_20 {dimension_numbers = #tpu.dot_dimension_numbers<[1], [1], [0], [0], [0, 0, 1, 0], [], []>} : vector<8x8xf32>, vector<8x8xf32>, vector<8x8xf32> -> vector<8x8xf32>
    %cst_21 = arith.constant 0.353553385 : f32
    %26 = vector.broadcast %cst_21 : f32 to vector<8x8xf32>
    %27 = arith.mulf %25, %26 : vector<8x8xf32>
    %28 = arith.addf %27, %22 : vector<8x8xf32>
    %cst_22 = arith.constant dense<0xFF800000> : vector<8xf32>
    %29 = vector.multi_reduction <maximumf>, %28, %cst_22 [1] : vector<8x8xf32> to vector<8xf32>
    %30 = vector.shape_cast %29 : vector<8xf32> to vector<8x1xf32>
    %31 = vector.broadcast %30 : vector<8x1xf32> to vector<8x8xf32>
    %32 = arith.subf %28, %31 : vector<8x8xf32>
    %33 = math.exp %32 : vector<8x8xf32>
    %cst_23 = arith.constant dense<0.000000e+00> : vector<8xf32>
    %34 = vector.multi_reduction <add>, %33, %cst_23 [1] : vector<8x8xf32> to vector<8xf32>
    %35 = vector.shape_cast %34 : vector<8xf32> to vector<8x1xf32>
    %36 = vector.broadcast %35 : vector<8x1xf32> to vector<8x8xf32>
    %37 = arith.divf %33, %36 : vector<8x8xf32>
    %c0_24 = arith.constant 0 : index
    %c0_25 = arith.constant 0 : index
    %c0_26 = arith.constant 0 : index
    %c0_27 = arith.constant 0 : index
    %38 = vector.load %arg14[%c0_24, %c0_25, %c0_26, %c0_27] : memref<2x4x8x8xf32, #tpu.memory_space<vmem>>, vector<1x1x8x8xf32>
    %39 = vector.shape_cast %38 : vector<1x1x8x8xf32> to vector<8x8xf32>
    %40 = vector.shape_cast %37 : vector<8x8xf32> to vector<1x1x8x8xf32>
    tpu.vector_store %arg14[%c0_24, %c0_25, %c0_26, %c0_27], %40 {strides = array<i32>} : memref<2x4x8x8xf32, #tpu.memory_space<vmem>>, vector<1x1x8x8xf32>,
    %41 = vector.extract_strided_slice %20 {offsets = [0, 0], sizes = [8, 8], strides = [1, 1]} : vector<8x32xf32> to vector<8x8xf32>
    %cst_28 = arith.constant dense<0.000000e+00> : vector<8x8xf32>
    %42 = tpu.matmul %37, %41, %cst_28 {dimension_numbers = #tpu.dot_dimension_numbers<[1], [0], [0], [1], [0, 0, 1, 1], [], []>} : vector<8x8xf32>, vector<8x8xf32>, vector<8x8xf32> -> vector<8x8xf32>
    %43 = vector.extract_strided_slice %9 {offsets = [0, 0], sizes = [8, 32], strides = [1, 1]} : vector<32x32xf32> to vector<8x32xf32>
    %cst_29 = arith.constant dense<0.000000e+00> : vector<8x32xf32>
    %44 = tpu.matmul %42, %43, %cst_29 {dimension_numbers = #tpu.dot_dimension_numbers<[1], [0], [0], [1], [0, 0, 1, 1], [], []>} : vector<8x8xf32>, vector<8x32xf32>, vector<8x32xf32> -> vector<8x32xf32>
    %45 = vector.extract_strided_slice %18 {offsets = [0, 8], sizes = [8, 8], strides = [1, 1]} : vector<8x32xf32> to vector<8x8xf32>
    %46 = vector.extract_strided_slice %19 {offsets = [0, 8], sizes = [8, 8], strides = [1, 1]} : vector<8x32xf32> to vector<8x8xf32>
    %cst_30 = arith.constant dense<0.000000e+00> : vector<8x8xf32>
    %47 = tpu.matmul %45, %46, %cst_30 {dimension_numbers = #tpu.dot_dimension_numbers<[1], [1], [0], [0], [0, 0, 1, 0], [], []>} : vector<8x8xf32>, vector<8x8xf32>, vector<8x8xf32> -> vector<8x8xf32>
    %cst_31 = arith.constant 0.353553385 : f32
    %48 = vector.broadcast %cst_31 : f32 to vector<8x8xf32>
    %49 = arith.mulf %47, %48 : vector<8x8xf32>
    %50 = arith.addf %49, %22 : vector<8x8xf32>
    %cst_32 = arith.constant dense<0xFF800000> : vector<8xf32>
    %51 = vector.multi_reduction <maximumf>, %50, %cst_32 [1] : vector<8x8xf32> to vector<8xf32>
    %52 = vector.shape_cast %51 : vector<8xf32> to vector<8x1xf32>
    %53 = vector.broadcast %52 : vector<8x1xf32> to vector<8x8xf32>
    %54 = arith.subf %50, %53 : vector<8x8xf32>
    %55 = math.exp %54 : vector<8x8xf32>
    %cst_33 = arith.constant dense<0.000000e+00> : vector<8xf32>
    %56 = vector.multi_reduction <add>, %55, %cst_33 [1] : vector<8x8xf32> to vector<8xf32>
    %57 = vector.shape_cast %56 : vector<8xf32> to vector<8x1xf32>
    %58 = vector.broadcast %57 : vector<8x1xf32> to vector<8x8xf32>
    %59 = arith.divf %55, %58 : vector<8x8xf32>
    %c0_34 = arith.constant 0 : index
    %c1 = arith.constant 1 : index
    %c0_35 = arith.constant 0 : index
    %c0_36 = arith.constant 0 : index
    %60 = vector.load %arg14[%c0_34, %c1, %c0_35, %c0_36] : memref<2x4x8x8xf32, #tpu.memory_space<vmem>>, vector<1x1x8x8xf32>
    %61 = vector.shape_cast %60 : vector<1x1x8x8xf32> to vector<8x8xf32>
    %62 = vector.shape_cast %59 : vector<8x8xf32> to vector<1x1x8x8xf32>
    tpu.vector_store %arg14[%c0_34, %c1, %c0_35, %c0_36], %62 {strides = array<i32>} : memref<2x4x8x8xf32, #tpu.memory_space<vmem>>, vector<1x1x8x8xf32>,
    %63 = vector.extract_strided_slice %20 {offsets = [0, 8], sizes = [8, 8], strides = [1, 1]} : vector<8x32xf32> to vector<8x8xf32>
    %cst_37 = arith.constant dense<0.000000e+00> : vector<8x8xf32>
    %64 = tpu.matmul %59, %63, %cst_37 {dimension_numbers = #tpu.dot_dimension_numbers<[1], [0], [0], [1], [0, 0, 1, 1], [], []>} : vector<8x8xf32>, vector<8x8xf32>, vector<8x8xf32> -> vector<8x8xf32>
    %65 = vector.extract_strided_slice %9 {offsets = [8, 0], sizes = [8, 32], strides = [1, 1]} : vector<32x32xf32> to vector<8x32xf32>
    %cst_38 = arith.constant dense<0.000000e+00> : vector<8x32xf32>
    %66 = tpu.matmul %64, %65, %cst_38 {dimension_numbers = #tpu.dot_dimension_numbers<[1], [0], [0], [1], [0, 0, 1, 1], [], []>} : vector<8x8xf32>, vector<8x32xf32>, vector<8x32xf32> -> vector<8x32xf32>
    %67 = arith.addf %44, %66 : vector<8x32xf32>
    %68 = vector.extract_strided_slice %18 {offsets = [0, 16], sizes = [8, 8], strides = [1, 1]} : vector<8x32xf32> to vector<8x8xf32>
    %69 = vector.extract_strided_slice %19 {offsets = [0, 16], sizes = [8, 8], strides = [1, 1]} : vector<8x32xf32> to vector<8x8xf32>
    %cst_39 = arith.constant dense<0.000000e+00> : vector<8x8xf32>
    %70 = tpu.matmul %68, %69, %cst_39 {dimension_numbers = #tpu.dot_dimension_numbers<[1], [1], [0], [0], [0, 0, 1, 0], [], []>} : vector<8x8xf32>, vector<8x8xf32>, vector<8x8xf32> -> vector<8x8xf32>
    %cst_40 = arith.constant 0.353553385 : f32
    %71 = vector.broadcast %cst_40 : f32 to vector<8x8xf32>
    %72 = arith.mulf %70, %71 : vector<8x8xf32>
    %73 = arith.addf %72, %22 : vector<8x8xf32>
    %cst_41 = arith.constant dense<0xFF800000> : vector<8xf32>
    %74 = vector.multi_reduction <maximumf>, %73, %cst_41 [1] : vector<8x8xf32> to vector<8xf32>
    %75 = vector.shape_cast %74 : vector<8xf32> to vector<8x1xf32>
    %76 = vector.broadcast %75 : vector<8x1xf32> to vector<8x8xf32>
    %77 = arith.subf %73, %76 : vector<8x8xf32>
    %78 = math.exp %77 : vector<8x8xf32>
    %cst_42 = arith.constant dense<0.000000e+00> : vector<8xf32>
    %79 = vector.multi_reduction <add>, %78, %cst_42 [1] : vector<8x8xf32> to vector<8xf32>
    %80 = vector.shape_cast %79 : vector<8xf32> to vector<8x1xf32>
    %81 = vector.broadcast %80 : vector<8x1xf32> to vector<8x8xf32>
    %82 = arith.divf %78, %81 : vector<8x8xf32>
    %c0_43 = arith.constant 0 : index
    %c2 = arith.constant 2 : index
    %c0_44 = arith.constant 0 : index
    %c0_45 = arith.constant 0 : index
    %83 = vector.load %arg14[%c0_43, %c2, %c0_44, %c0_45] : memref<2x4x8x8xf32, #tpu.memory_space<vmem>>, vector<1x1x8x8xf32>
    %84 = vector.shape_cast %83 : vector<1x1x8x8xf32> to vector<8x8xf32>
    %85 = vector.shape_cast %82 : vector<8x8xf32> to vector<1x1x8x8xf32>
    tpu.vector_store %arg14[%c0_43, %c2, %c0_44, %c0_45], %85 {strides = array<i32>} : memref<2x4x8x8xf32, #tpu.memory_space<vmem>>, vector<1x1x8x8xf32>,
    %86 = vector.extract_strided_slice %20 {offsets = [0, 16], sizes = [8, 8], strides = [1, 1]} : vector<8x32xf32> to vector<8x8xf32>
    %cst_46 = arith.constant dense<0.000000e+00> : vector<8x8xf32>
    %87 = tpu.matmul %82, %86, %cst_46 {dimension_numbers = #tpu.dot_dimension_numbers<[1], [0], [0], [1], [0, 0, 1, 1], [], []>} : vector<8x8xf32>, vector<8x8xf32>, vector<8x8xf32> -> vector<8x8xf32>
    %88 = vector.extract_strided_slice %9 {offsets = [16, 0], sizes = [8, 32], strides = [1, 1]} : vector<32x32xf32> to vector<8x32xf32>
    %cst_47 = arith.constant dense<0.000000e+00> : vector<8x32xf32>
    %89 = tpu.matmul %87, %88, %cst_47 {dimension_numbers = #tpu.dot_dimension_numbers<[1], [0], [0], [1], [0, 0, 1, 1], [], []>} : vector<8x8xf32>, vector<8x32xf32>, vector<8x32xf32> -> vector<8x32xf32>
    %90 = arith.addf %67, %89 : vector<8x32xf32>
    %91 = vector.extract_strided_slice %18 {offsets = [0, 24], sizes = [8, 8], strides = [1, 1]} : vector<8x32xf32> to vector<8x8xf32>
    %92 = vector.extract_strided_slice %19 {offsets = [0, 24], sizes = [8, 8], strides = [1, 1]} : vector<8x32xf32> to vector<8x8xf32>
    %cst_48 = arith.constant dense<0.000000e+00> : vector<8x8xf32>
    %93 = tpu.matmul %91, %92, %cst_48 {dimension_numbers = #tpu.dot_dimension_numbers<[1], [1], [0], [0], [0, 0, 1, 0], [], []>} : vector<8x8xf32>, vector<8x8xf32>, vector<8x8xf32> -> vector<8x8xf32>
    %cst_49 = arith.constant 0.353553385 : f32
    %94 = vector.broadcast %cst_49 : f32 to vector<8x8xf32>
    %95 = arith.mulf %93, %94 : vector<8x8xf32>
    %96 = arith.addf %95, %22 : vector<8x8xf32>
    %cst_50 = arith.constant dense<0xFF800000> : vector<8xf32>
    %97 = vector.multi_reduction <maximumf>, %96, %cst_50 [1] : vector<8x8xf32> to vector<8xf32>
    %98 = vector.shape_cast %97 : vector<8xf32> to vector<8x1xf32>
    %99 = vector.broadcast %98 : vector<8x1xf32> to vector<8x8xf32>
    %100 = arith.subf %96, %99 : vector<8x8xf32>
    %101 = math.exp %100 : vector<8x8xf32>
    %cst_51 = arith.constant dense<0.000000e+00> : vector<8xf32>
    %102 = vector.multi_reduction <add>, %101, %cst_51 [1] : vector<8x8xf32> to vector<8xf32>
    %103 = vector.shape_cast %102 : vector<8xf32> to vector<8x1xf32>
    %104 = vector.broadcast %103 : vector<8x1xf32> to vector<8x8xf32>
    %105 = arith.divf %101, %104 : vector<8x8xf32>
    %c0_52 = arith.constant 0 : index
    %c3 = arith.constant 3 : index
    %c0_53 = arith.constant 0 : index
    %c0_54 = arith.constant 0 : index
    %106 = vector.load %arg14[%c0_52, %c3, %c0_53, %c0_54] : memref<2x4x8x8xf32, #tpu.memory_space<vmem>>, vector<1x1x8x8xf32>
    %107 = vector.shape_cast %106 : vector<1x1x8x8xf32> to vector<8x8xf32>
    %108 = vector.shape_cast %105 : vector<8x8xf32> to vector<1x1x8x8xf32>
    tpu.vector_store %arg14[%c0_52, %c3, %c0_53, %c0_54], %108 {strides = array<i32>} : memref<2x4x8x8xf32, #tpu.memory_space<vmem>>, vector<1x1x8x8xf32>,
    %109 = vector.extract_strided_slice %20 {offsets = [0, 24], sizes = [8, 8], strides = [1, 1]} : vector<8x32xf32> to vector<8x8xf32>
    %cst_55 = arith.constant dense<0.000000e+00> : vector<8x8xf32>
    %110 = tpu.matmul %105, %109, %cst_55 {dimension_numbers = #tpu.dot_dimension_numbers<[1], [0], [0], [1], [0, 0, 1, 1], [], []>} : vector<8x8xf32>, vector<8x8xf32>, vector<8x8xf32> -> vector<8x8xf32>
    %111 = vector.extract_strided_slice %9 {offsets = [24, 0], sizes = [8, 32], strides = [1, 1]} : vector<32x32xf32> to vector<8x32xf32>
    %cst_56 = arith.constant dense<0.000000e+00> : vector<8x32xf32>
    %112 = tpu.matmul %110, %111, %cst_56 {dimension_numbers = #tpu.dot_dimension_numbers<[1], [0], [0], [1], [0, 0, 1, 1], [], []>} : vector<8x8xf32>, vector<8x32xf32>, vector<8x32xf32> -> vector<8x32xf32>
    %113 = arith.addf %90, %112 : vector<8x32xf32>
    %114 = vector.extract_strided_slice %11 {offsets = [0, 0], sizes = [1, 32], strides = [1, 1]} : vector<3x32xf32> to vector<1x32xf32>
    %115 = vector.broadcast %114 : vector<1x32xf32> to vector<8x32xf32>
    %116 = arith.addf %113, %115 : vector<8x32xf32>
    %117 = vector.extract_strided_slice %1 {offsets = [0, 0], sizes = [8, 32], strides = [1, 1]} : vector<16x32xf32> to vector<8x32xf32>
    %118 = arith.addf %116, %117 : vector<8x32xf32>
    %119 = vector.extract_strided_slice %11 {offsets = [1, 0], sizes = [1, 32], strides = [1, 1]} : vector<3x32xf32> to vector<1x32xf32>
    %120 = vector.extract_strided_slice %11 {offsets = [2, 0], sizes = [1, 32], strides = [1, 1]} : vector<3x32xf32> to vector<1x32xf32>
    %cst_57 = arith.constant dense<0.000000e+00> : vector<8xf32>
    %121 = vector.multi_reduction <add>, %118, %cst_57 [1] : vector<8x32xf32> to vector<8xf32>
    %122 = vector.shape_cast %121 : vector<8xf32> to vector<8x1xf32>
    %cst_58 = arith.constant 3.200000e+01 : f32
    %123 = vector.broadcast %cst_58 : f32 to vector<8x1xf32>
    %124 = arith.divf %122, %123 : vector<8x1xf32>
    %125 = vector.broadcast %124 : vector<8x1xf32> to vector<8x32xf32>
    %126 = arith.subf %118, %125 : vector<8x32xf32>
    %127 = arith.mulf %126, %126 : vector<8x32xf32>
    %cst_59 = arith.constant dense<0.000000e+00> : vector<8xf32>
    %128 = vector.multi_reduction <add>, %127, %cst_59 [1] : vector<8x32xf32> to vector<8xf32>
    %129 = vector.shape_cast %128 : vector<8xf32> to vector<8x1xf32>
    %cst_60 = arith.constant 3.200000e+01 : f32
    %130 = vector.broadcast %cst_60 : f32 to vector<8x1xf32>
    %131 = arith.divf %129, %130 : vector<8x1xf32>
    %132 = vector.broadcast %124 : vector<8x1xf32> to vector<8x32xf32>
    %133 = arith.subf %118, %132 : vector<8x32xf32>
    %cst_61 = arith.constant 9.99999974E-6 : f32
    %134 = vector.broadcast %cst_61 : f32 to vector<8x1xf32>
    %135 = arith.addf %131, %134 : vector<8x1xf32>
    %136 = math.rsqrt %135 : vector<8x1xf32>
    %137 = vector.broadcast %136 : vector<8x1xf32> to vector<8x32xf32>
    %138 = arith.mulf %133, %137 : vector<8x32xf32>
    %139 = vector.broadcast %119 : vector<1x32xf32> to vector<8x32xf32>
    %140 = arith.mulf %138, %139 : vector<8x32xf32>
    %141 = vector.broadcast %120 : vector<1x32xf32> to vector<8x32xf32>
    %142 = arith.addf %140, %141 : vector<8x32xf32>
    %143 = vector.extract_strided_slice %15 {offsets = [8, 0], sizes = [8, 32], strides = [1, 1]} : vector<16x32xf32> to vector<8x32xf32>
    %144 = vector.extract_strided_slice %16 {offsets = [8, 0], sizes = [8, 32], strides = [1, 1]} : vector<16x32xf32> to vector<8x32xf32>
    %145 = vector.extract_strided_slice %17 {offsets = [8, 0], sizes = [8, 32], strides = [1, 1]} : vector<16x32xf32> to vector<8x32xf32>
    %c1_62 = arith.constant 1 : index
    %c0_63 = arith.constant 0 : index
    %c0_64 = arith.constant 0 : index
    %146 = vector.load %arg3[%c1_62, %c0_63, %c0_64] : memref<2x8x8xf32, #tpu.memory_space<vmem>>, vector<1x8x8xf32>
    %147 = vector.shape_cast %146 : vector<1x8x8xf32> to vector<8x8xf32>
    %148 = vector.extract_strided_slice %143 {offsets = [0, 0], sizes = [8, 8], strides = [1, 1]} : vector<8x32xf32> to vector<8x8xf32>
    %149 = vector.extract_strided_slice %144 {offsets = [0, 0], sizes = [8, 8], strides = [1, 1]} : vector<8x32xf32> to vector<8x8xf32>
    %cst_65 = arith.constant dense<0.000000e+00> : vector<8x8xf32>
    %150 = tpu.matmul %148, %149, %cst_65 {dimension_numbers = #tpu.dot_dimension_numbers<[1], [1], [0], [0], [0, 0, 1, 0], [], []>} : vector<8x8xf32>, vector<8x8xf32>, vector<8x8xf32> -> vector<8x8xf32>
    %cst_66 = arith.constant 0.353553385 : f32
    %151 = vector.broadcast %cst_66 : f32 to vector<8x8xf32>
    %152 = arith.mulf %150, %151 : vector<8x8xf32>
    %153 = arith.addf %152, %147 : vector<8x8xf32>
    %cst_67 = arith.constant dense<0xFF800000> : vector<8xf32>
    %154 = vector.multi_reduction <maximumf>, %153, %cst_67 [1] : vector<8x8xf32> to vector<8xf32>
    %155 = vector.shape_cast %154 : vector<8xf32> to vector<8x1xf32>
    %156 = vector.broadcast %155 : vector<8x1xf32> to vector<8x8xf32>
    %157 = arith.subf %153, %156 : vector<8x8xf32>
    %158 = math.exp %157 : vector<8x8xf32>
    %cst_68 = arith.constant dense<0.000000e+00> : vector<8xf32>
    %159 = vector.multi_reduction <add>, %158, %cst_68 [1] : vector<8x8xf32> to vector<8xf32>
    %160 = vector.shape_cast %159 : vector<8xf32> to vector<8x1xf32>
    %161 = vector.broadcast %160 : vector<8x1xf32> to vector<8x8xf32>
    %162 = arith.divf %158, %161 : vector<8x8xf32>
    %c1_69 = arith.constant 1 : index
    %c0_70 = arith.constant 0 : index
    %c0_71 = arith.constant 0 : index
    %c0_72 = arith.constant 0 : index
    %163 = vector.load %arg14[%c1_69, %c0_70, %c0_71, %c0_72] : memref<2x4x8x8xf32, #tpu.memory_space<vmem>>, vector<1x1x8x8xf32>
    %164 = vector.shape_cast %163 : vector<1x1x8x8xf32> to vector<8x8xf32>
    %165 = vector.shape_cast %162 : vector<8x8xf32> to vector<1x1x8x8xf32>
    tpu.vector_store %arg14[%c1_69, %c0_70, %c0_71, %c0_72], %165 {strides = array<i32>} : memref<2x4x8x8xf32, #tpu.memory_space<vmem>>, vector<1x1x8x8xf32>,
    %166 = vector.extract_strided_slice %145 {offsets = [0, 0], sizes = [8, 8], strides = [1, 1]} : vector<8x32xf32> to vector<8x8xf32>
    %cst_73 = arith.constant dense<0.000000e+00> : vector<8x8xf32>
    %167 = tpu.matmul %162, %166, %cst_73 {dimension_numbers = #tpu.dot_dimension_numbers<[1], [0], [0], [1], [0, 0, 1, 1], [], []>} : vector<8x8xf32>, vector<8x8xf32>, vector<8x8xf32> -> vector<8x8xf32>
    %168 = vector.extract_strided_slice %9 {offsets = [0, 0], sizes = [8, 32], strides = [1, 1]} : vector<32x32xf32> to vector<8x32xf32>
    %cst_74 = arith.constant dense<0.000000e+00> : vector<8x32xf32>
    %169 = tpu.matmul %167, %168, %cst_74 {dimension_numbers = #tpu.dot_dimension_numbers<[1], [0], [0], [1], [0, 0, 1, 1], [], []>} : vector<8x8xf32>, vector<8x32xf32>, vector<8x32xf32> -> vector<8x32xf32>
    %170 = vector.extract_strided_slice %143 {offsets = [0, 8], sizes = [8, 8], strides = [1, 1]} : vector<8x32xf32> to vector<8x8xf32>
    %171 = vector.extract_strided_slice %144 {offsets = [0, 8], sizes = [8, 8], strides = [1, 1]} : vector<8x32xf32> to vector<8x8xf32>
    %cst_75 = arith.constant dense<0.000000e+00> : vector<8x8xf32>
    %172 = tpu.matmul %170, %171, %cst_75 {dimension_numbers = #tpu.dot_dimension_numbers<[1], [1], [0], [0], [0, 0, 1, 0], [], []>} : vector<8x8xf32>, vector<8x8xf32>, vector<8x8xf32> -> vector<8x8xf32>
    %cst_76 = arith.constant 0.353553385 : f32
    %173 = vector.broadcast %cst_76 : f32 to vector<8x8xf32>
    %174 = arith.mulf %172, %173 : vector<8x8xf32>
    %175 = arith.addf %174, %147 : vector<8x8xf32>
    %cst_77 = arith.constant dense<0xFF800000> : vector<8xf32>
    %176 = vector.multi_reduction <maximumf>, %175, %cst_77 [1] : vector<8x8xf32> to vector<8xf32>
    %177 = vector.shape_cast %176 : vector<8xf32> to vector<8x1xf32>
    %178 = vector.broadcast %177 : vector<8x1xf32> to vector<8x8xf32>
    %179 = arith.subf %175, %178 : vector<8x8xf32>
    %180 = math.exp %179 : vector<8x8xf32>
    %cst_78 = arith.constant dense<0.000000e+00> : vector<8xf32>
    %181 = vector.multi_reduction <add>, %180, %cst_78 [1] : vector<8x8xf32> to vector<8xf32>
    %182 = vector.shape_cast %181 : vector<8xf32> to vector<8x1xf32>
    %183 = vector.broadcast %182 : vector<8x1xf32> to vector<8x8xf32>
    %184 = arith.divf %180, %183 : vector<8x8xf32>
    %c1_79 = arith.constant 1 : index
    %c1_80 = arith.constant 1 : index
    %c0_81 = arith.constant 0 : index
    %c0_82 = arith.constant 0 : index
    %185 = vector.load %arg14[%c1_79, %c1_80, %c0_81, %c0_82] : memref<2x4x8x8xf32, #tpu.memory_space<vmem>>, vector<1x1x8x8xf32>
    %186 = vector.shape_cast %185 : vector<1x1x8x8xf32> to vector<8x8xf32>
    %187 = vector.shape_cast %184 : vector<8x8xf32> to vector<1x1x8x8xf32>
    tpu.vector_store %arg14[%c1_79, %c1_80, %c0_81, %c0_82], %187 {strides = array<i32>} : memref<2x4x8x8xf32, #tpu.memory_space<vmem>>, vector<1x1x8x8xf32>,
    %188 = vector.extract_strided_slice %145 {offsets = [0, 8], sizes = [8, 8], strides = [1, 1]} : vector<8x32xf32> to vector<8x8xf32>
    %cst_83 = arith.constant dense<0.000000e+00> : vector<8x8xf32>
    %189 = tpu.matmul %184, %188, %cst_83 {dimension_numbers = #tpu.dot_dimension_numbers<[1], [0], [0], [1], [0, 0, 1, 1], [], []>} : vector<8x8xf32>, vector<8x8xf32>, vector<8x8xf32> -> vector<8x8xf32>
    %190 = vector.extract_strided_slice %9 {offsets = [8, 0], sizes = [8, 32], strides = [1, 1]} : vector<32x32xf32> to vector<8x32xf32>
    %cst_84 = arith.constant dense<0.000000e+00> : vector<8x32xf32>
    %191 = tpu.matmul %189, %190, %cst_84 {dimension_numbers = #tpu.dot_dimension_numbers<[1], [0], [0], [1], [0, 0, 1, 1], [], []>} : vector<8x8xf32>, vector<8x32xf32>, vector<8x32xf32> -> vector<8x32xf32>
    %192 = arith.addf %169, %191 : vector<8x32xf32>
    %193 = vector.extract_strided_slice %143 {offsets = [0, 16], sizes = [8, 8], strides = [1, 1]} : vector<8x32xf32> to vector<8x8xf32>
    %194 = vector.extract_strided_slice %144 {offsets = [0, 16], sizes = [8, 8], strides = [1, 1]} : vector<8x32xf32> to vector<8x8xf32>
    %cst_85 = arith.constant dense<0.000000e+00> : vector<8x8xf32>
    %195 = tpu.matmul %193, %194, %cst_85 {dimension_numbers = #tpu.dot_dimension_numbers<[1], [1], [0], [0], [0, 0, 1, 0], [], []>} : vector<8x8xf32>, vector<8x8xf32>, vector<8x8xf32> -> vector<8x8xf32>
    %cst_86 = arith.constant 0.353553385 : f32
    %196 = vector.broadcast %cst_86 : f32 to vector<8x8xf32>
    %197 = arith.mulf %195, %196 : vector<8x8xf32>
    %198 = arith.addf %197, %147 : vector<8x8xf32>
    %cst_87 = arith.constant dense<0xFF800000> : vector<8xf32>
    %199 = vector.multi_reduction <maximumf>, %198, %cst_87 [1] : vector<8x8xf32> to vector<8xf32>
    %200 = vector.shape_cast %199 : vector<8xf32> to vector<8x1xf32>
    %201 = vector.broadcast %200 : vector<8x1xf32> to vector<8x8xf32>
    %202 = arith.subf %198, %201 : vector<8x8xf32>
    %203 = math.exp %202 : vector<8x8xf32>
    %cst_88 = arith.constant dense<0.000000e+00> : vector<8xf32>
    %204 = vector.multi_reduction <add>, %203, %cst_88 [1] : vector<8x8xf32> to vector<8xf32>
    %205 = vector.shape_cast %204 : vector<8xf32> to vector<8x1xf32>
    %206 = vector.broadcast %205 : vector<8x1xf32> to vector<8x8xf32>
    %207 = arith.divf %203, %206 : vector<8x8xf32>
    %c1_89 = arith.constant 1 : index
    %c2_90 = arith.constant 2 : index
    %c0_91 = arith.constant 0 : index
    %c0_92 = arith.constant 0 : index
    %208 = vector.load %arg14[%c1_89, %c2_90, %c0_91, %c0_92] : memref<2x4x8x8xf32, #tpu.memory_space<vmem>>, vector<1x1x8x8xf32>
    %209 = vector.shape_cast %208 : vector<1x1x8x8xf32> to vector<8x8xf32>
    %210 = vector.shape_cast %207 : vector<8x8xf32> to vector<1x1x8x8xf32>
    tpu.vector_store %arg14[%c1_89, %c2_90, %c0_91, %c0_92], %210 {strides = array<i32>} : memref<2x4x8x8xf32, #tpu.memory_space<vmem>>, vector<1x1x8x8xf32>,
    %211 = vector.extract_strided_slice %145 {offsets = [0, 16], sizes = [8, 8], strides = [1, 1]} : vector<8x32xf32> to vector<8x8xf32>
    %cst_93 = arith.constant dense<0.000000e+00> : vector<8x8xf32>
    %212 = tpu.matmul %207, %211, %cst_93 {dimension_numbers = #tpu.dot_dimension_numbers<[1], [0], [0], [1], [0, 0, 1, 1], [], []>} : vector<8x8xf32>, vector<8x8xf32>, vector<8x8xf32> -> vector<8x8xf32>
    %213 = vector.extract_strided_slice %9 {offsets = [16, 0], sizes = [8, 32], strides = [1, 1]} : vector<32x32xf32> to vector<8x32xf32>
    %cst_94 = arith.constant dense<0.000000e+00> : vector<8x32xf32>
    %214 = tpu.matmul %212, %213, %cst_94 {dimension_numbers = #tpu.dot_dimension_numbers<[1], [0], [0], [1], [0, 0, 1, 1], [], []>} : vector<8x8xf32>, vector<8x32xf32>, vector<8x32xf32> -> vector<8x32xf32>
    %215 = arith.addf %192, %214 : vector<8x32xf32>
    %216 = vector.extract_strided_slice %143 {offsets = [0, 24], sizes = [8, 8], strides = [1, 1]} : vector<8x32xf32> to vector<8x8xf32>
    %217 = vector.extract_strided_slice %144 {offsets = [0, 24], sizes = [8, 8], strides = [1, 1]} : vector<8x32xf32> to vector<8x8xf32>
    %cst_95 = arith.constant dense<0.000000e+00> : vector<8x8xf32>
    %218 = tpu.matmul %216, %217, %cst_95 {dimension_numbers = #tpu.dot_dimension_numbers<[1], [1], [0], [0], [0, 0, 1, 0], [], []>} : vector<8x8xf32>, vector<8x8xf32>, vector<8x8xf32> -> vector<8x8xf32>
    %cst_96 = arith.constant 0.353553385 : f32
    %219 = vector.broadcast %cst_96 : f32 to vector<8x8xf32>
    %220 = arith.mulf %218, %219 : vector<8x8xf32>
    %221 = arith.addf %220, %147 : vector<8x8xf32>
    %cst_97 = arith.constant dense<0xFF800000> : vector<8xf32>
    %222 = vector.multi_reduction <maximumf>, %221, %cst_97 [1] : vector<8x8xf32> to vector<8xf32>
    %223 = vector.shape_cast %222 : vector<8xf32> to vector<8x1xf32>
    %224 = vector.broadcast %223 : vector<8x1xf32> to vector<8x8xf32>
    %225 = arith.subf %221, %224 : vector<8x8xf32>
    %226 = math.exp %225 : vector<8x8xf32>
    %cst_98 = arith.constant dense<0.000000e+00> : vector<8xf32>
    %227 = vector.multi_reduction <add>, %226, %cst_98 [1] : vector<8x8xf32> to vector<8xf32>
    %228 = vector.shape_cast %227 : vector<8xf32> to vector<8x1xf32>
    %229 = vector.broadcast %228 : vector<8x1xf32> to vector<8x8xf32>
    %230 = arith.divf %226, %229 : vector<8x8xf32>
    %c1_99 = arith.constant 1 : index
    %c3_100 = arith.constant 3 : index
    %c0_101 = arith.constant 0 : index
    %c0_102 = arith.constant 0 : index
    %231 = vector.load %arg14[%c1_99, %c3_100, %c0_101, %c0_102] : memref<2x4x8x8xf32, #tpu.memory_space<vmem>>, vector<1x1x8x8xf32>
    %232 = vector.shape_cast %231 : vector<1x1x8x8xf32> to vector<8x8xf32>
    %233 = vector.shape_cast %230 : vector<8x8xf32> to vector<1x1x8x8xf32>
    tpu.vector_store %arg14[%c1_99, %c3_100, %c0_101, %c0_102], %233 {strides = array<i32>} : memref<2x4x8x8xf32, #tpu.memory_space<vmem>>, vector<1x1x8x8xf32>,
    %234 = vector.extract_strided_slice %145 {offsets = [0, 24], sizes = [8, 8], strides = [1, 1]} : vector<8x32xf32> to vector<8x8xf32>
    %cst_103 = arith.constant dense<0.000000e+00> : vector<8x8xf32>
    %235 = tpu.matmul %230, %234, %cst_103 {dimension_numbers = #tpu.dot_dimension_numbers<[1], [0], [0], [1], [0, 0, 1, 1], [], []>} : vector<8x8xf32>, vector<8x8xf32>, vector<8x8xf32> -> vector<8x8xf32>
    %236 = vector.extract_strided_slice %9 {offsets = [24, 0], sizes = [8, 32], strides = [1, 1]} : vector<32x32xf32> to vector<8x32xf32>
    %cst_104 = arith.constant dense<0.000000e+00> : vector<8x32xf32>
    %237 = tpu.matmul %235, %236, %cst_104 {dimension_numbers = #tpu.dot_dimension_numbers<[1], [0], [0], [1], [0, 0, 1, 1], [], []>} : vector<8x8xf32>, vector<8x32xf32>, vector<8x32xf32> -> vector<8x32xf32>
    %238 = arith.addf %215, %237 : vector<8x32xf32>
    %239 = vector.extract_strided_slice %11 {offsets = [0, 0], sizes = [1, 32], strides = [1, 1]} : vector<3x32xf32> to vector<1x32xf32>
    %240 = vector.broadcast %239 : vector<1x32xf32> to vector<8x32xf32>
    %241 = arith.addf %238, %240 : vector<8x32xf32>
    %242 = vector.extract_strided_slice %1 {offsets = [8, 0], sizes = [8, 32], strides = [1, 1]} : vector<16x32xf32> to vector<8x32xf32>
    %243 = arith.addf %241, %242 : vector<8x32xf32>
    %244 = vector.extract_strided_slice %11 {offsets = [1, 0], sizes = [1, 32], strides = [1, 1]} : vector<3x32xf32> to vector<1x32xf32>
    %245 = vector.extract_strided_slice %11 {offsets = [2, 0], sizes = [1, 32], strides = [1, 1]} : vector<3x32xf32> to vector<1x32xf32>
    %cst_105 = arith.constant dense<0.000000e+00> : vector<8xf32>
    %246 = vector.multi_reduction <add>, %243, %cst_105 [1] : vector<8x32xf32> to vector<8xf32>
    %247 = vector.shape_cast %246 : vector<8xf32> to vector<8x1xf32>
    %cst_106 = arith.constant 3.200000e+01 : f32
    %248 = vector.broadcast %cst_106 : f32 to vector<8x1xf32>
    %249 = arith.divf %247, %248 : vector<8x1xf32>
    %250 = vector.broadcast %249 : vector<8x1xf32> to vector<8x32xf32>
    %251 = arith.subf %243, %250 : vector<8x32xf32>
    %252 = arith.mulf %251, %251 : vector<8x32xf32>
    %cst_107 = arith.constant dense<0.000000e+00> : vector<8xf32>
    %253 = vector.multi_reduction <add>, %252, %cst_107 [1] : vector<8x32xf32> to vector<8xf32>
    %254 = vector.shape_cast %253 : vector<8xf32> to vector<8x1xf32>
    %cst_108 = arith.constant 3.200000e+01 : f32
    %255 = vector.broadcast %cst_108 : f32 to vector<8x1xf32>
    %256 = arith.divf %254, %255 : vector<8x1xf32>
    %257 = vector.broadcast %249 : vector<8x1xf32> to vector<8x32xf32>
    %258 = arith.subf %243, %257 : vector<8x32xf32>
    %cst_109 = arith.constant 9.99999974E-6 : f32
    %259 = vector.broadcast %cst_109 : f32 to vector<8x1xf32>
    %260 = arith.addf %256, %259 : vector<8x1xf32>
    %261 = math.rsqrt %260 : vector<8x1xf32>
    %262 = vector.broadcast %261 : vector<8x1xf32> to vector<8x32xf32>
    %263 = arith.mulf %258, %262 : vector<8x32xf32>
    %264 = vector.broadcast %244 : vector<1x32xf32> to vector<8x32xf32>
    %265 = arith.mulf %263, %264 : vector<8x32xf32>
    %266 = vector.broadcast %245 : vector<1x32xf32> to vector<8x32xf32>
    %267 = arith.addf %265, %266 : vector<8x32xf32>
    %268 = tpu.concatenate %142, %267 in 0 : vector<8x32xf32>, vector<8x32xf32> -> vector<16x32xf32>
    %c1_110 = arith.constant 1 : index
    %c0_111 = arith.constant 0 : index
    %c0_112 = arith.constant 0 : index
    %269 = vector.load %arg5[%c1_110, %c0_111, %c0_112] : memref<2x32x96xf32, #tpu.memory_space<vmem>>, vector<1x32x96xf32>
    %270 = vector.shape_cast %269 : vector<1x32x96xf32> to vector<32x96xf32>
    %c1_113 = arith.constant 1 : index
    %c0_114 = arith.constant 0 : index
    %c0_115 = arith.constant 0 : index
    %271 = vector.load %arg7[%c1_113, %c0_114, %c0_115] : memref<2x1x96xf32, #tpu.memory_space<vmem>>, vector<1x1x96xf32>
    %272 = vector.shape_cast %271 : vector<1x1x96xf32> to vector<1x96xf32>
    %c1_116 = arith.constant 1 : index
    %c0_117 = arith.constant 0 : index
    %c0_118 = arith.constant 0 : index
    %273 = vector.load %arg6[%c1_116, %c0_117, %c0_118] : memref<2x32x32xf32, #tpu.memory_space<vmem>>, vector<1x32x32xf32>
    %274 = vector.shape_cast %273 : vector<1x32x32xf32> to vector<32x32xf32>
    %c1_119 = arith.constant 1 : index
    %c0_120 = arith.constant 0 : index
    %c0_121 = arith.constant 0 : index
    %275 = vector.load %arg8[%c1_119, %c0_120, %c0_121] : memref<2x3x32xf32, #tpu.memory_space<vmem>>, vector<1x3x32xf32>
    %276 = vector.shape_cast %275 : vector<1x3x32xf32> to vector<3x32xf32>
    %277 = vector.extract_strided_slice %270 {offsets = [0, 0], sizes = [32, 32], strides = [1, 1]} : vector<32x96xf32> to vector<32x32xf32>
    %cst_122 = arith.constant dense<0.000000e+00> : vector<16x32xf32>
    %278 = tpu.matmul %268, %277, %cst_122 {dimension_numbers = #tpu.dot_dimension_numbers<[1], [0], [0], [1], [0, 0, 1, 1], [], []>} : vector<16x32xf32>, vector<32x32xf32>, vector<16x32xf32> -> vector<16x32xf32>
    %279 = vector.extract_strided_slice %272 {offsets = [0, 0], sizes = [1, 32], strides = [1, 1]} : vector<1x96xf32> to vector<1x32xf32>
    %280 = vector.broadcast %279 : vector<1x32xf32> to vector<16x32xf32>
    %281 = arith.addf %278, %280 : vector<16x32xf32>
    %282 = vector.extract_strided_slice %270 {offsets = [0, 32], sizes = [32, 64], strides = [1, 1]} : vector<32x96xf32> to vector<32x64xf32>
    %cst_123 = arith.constant dense<0.000000e+00> : vector<16x64xf32>
    %283 = tpu.matmul %3, %282, %cst_123 {dimension_numbers = #tpu.dot_dimension_numbers<[1], [0], [0], [1], [0, 0, 1, 1], [], []>} : vector<16x32xf32>, vector<32x64xf32>, vector<16x64xf32> -> vector<16x64xf32>
    %284 = vector.extract_strided_slice %272 {offsets = [0, 32], sizes = [1, 64], strides = [1, 1]} : vector<1x96xf32> to vector<1x64xf32>
    %285 = vector.broadcast %284 : vector<1x64xf32> to vector<16x64xf32>
    %286 = arith.addf %283, %285 : vector<16x64xf32>
    %287 = vector.extract_strided_slice %286 {offsets = [0, 0], sizes = [16, 32], strides = [1, 1]} : vector<16x64xf32> to vector<16x32xf32>
    %288 = vector.extract_strided_slice %286 {offsets = [0, 32], sizes = [16, 32], strides = [1, 1]} : vector<16x64xf32> to vector<16x32xf32>
    %289 = vector.extract_strided_slice %281 {offsets = [0, 0], sizes = [8, 32], strides = [1, 1]} : vector<16x32xf32> to vector<8x32xf32>
    %290 = vector.extract_strided_slice %287 {offsets = [0, 0], sizes = [8, 32], strides = [1, 1]} : vector<16x32xf32> to vector<8x32xf32>
    %291 = vector.extract_strided_slice %288 {offsets = [0, 0], sizes = [8, 32], strides = [1, 1]} : vector<16x32xf32> to vector<8x32xf32>
    %c0_124 = arith.constant 0 : index
    %c0_125 = arith.constant 0 : index
    %c0_126 = arith.constant 0 : index
    %292 = vector.load %arg4[%c0_124, %c0_125, %c0_126] : memref<2x8x8xf32, #tpu.memory_space<vmem>>, vector<1x8x8xf32>
    %293 = vector.shape_cast %292 : vector<1x8x8xf32> to vector<8x8xf32>
    %294 = vector.extract_strided_slice %289 {offsets = [0, 0], sizes = [8, 8], strides = [1, 1]} : vector<8x32xf32> to vector<8x8xf32>
    %295 = vector.extract_strided_slice %290 {offsets = [0, 0], sizes = [8, 8], strides = [1, 1]} : vector<8x32xf32> to vector<8x8xf32>
    %cst_127 = arith.constant dense<0.000000e+00> : vector<8x8xf32>
    %296 = tpu.matmul %294, %295, %cst_127 {dimension_numbers = #tpu.dot_dimension_numbers<[1], [1], [0], [0], [0, 0, 1, 0], [], []>} : vector<8x8xf32>, vector<8x8xf32>, vector<8x8xf32> -> vector<8x8xf32>
    %cst_128 = arith.constant 0.353553385 : f32
    %297 = vector.broadcast %cst_128 : f32 to vector<8x8xf32>
    %298 = arith.mulf %296, %297 : vector<8x8xf32>
    %299 = arith.addf %298, %293 : vector<8x8xf32>
    %cst_129 = arith.constant dense<0xFF800000> : vector<8xf32>
    %300 = vector.multi_reduction <maximumf>, %299, %cst_129 [1] : vector<8x8xf32> to vector<8xf32>
    %301 = vector.shape_cast %300 : vector<8xf32> to vector<8x1xf32>
    %302 = vector.broadcast %301 : vector<8x1xf32> to vector<8x8xf32>
    %303 = arith.subf %299, %302 : vector<8x8xf32>
    %304 = math.exp %303 : vector<8x8xf32>
    %cst_130 = arith.constant dense<0.000000e+00> : vector<8xf32>
    %305 = vector.multi_reduction <add>, %304, %cst_130 [1] : vector<8x8xf32> to vector<8xf32>
    %306 = vector.shape_cast %305 : vector<8xf32> to vector<8x1xf32>
    %307 = vector.broadcast %306 : vector<8x1xf32> to vector<8x8xf32>
    %308 = arith.divf %304, %307 : vector<8x8xf32>
    %c0_131 = arith.constant 0 : index
    %c0_132 = arith.constant 0 : index
    %c0_133 = arith.constant 0 : index
    %c0_134 = arith.constant 0 : index
    %309 = vector.load %arg15[%c0_131, %c0_132, %c0_133, %c0_134] : memref<2x4x8x8xf32, #tpu.memory_space<vmem>>, vector<1x1x8x8xf32>
    %310 = vector.shape_cast %309 : vector<1x1x8x8xf32> to vector<8x8xf32>
    %311 = vector.shape_cast %308 : vector<8x8xf32> to vector<1x1x8x8xf32>
    tpu.vector_store %arg15[%c0_131, %c0_132, %c0_133, %c0_134], %311 {strides = array<i32>} : memref<2x4x8x8xf32, #tpu.memory_space<vmem>>, vector<1x1x8x8xf32>,
    %312 = vector.extract_strided_slice %291 {offsets = [0, 0], sizes = [8, 8], strides = [1, 1]} : vector<8x32xf32> to vector<8x8xf32>
    %cst_135 = arith.constant dense<0.000000e+00> : vector<8x8xf32>
    %313 = tpu.matmul %308, %312, %cst_135 {dimension_numbers = #tpu.dot_dimension_numbers<[1], [0], [0], [1], [0, 0, 1, 1], [], []>} : vector<8x8xf32>, vector<8x8xf32>, vector<8x8xf32> -> vector<8x8xf32>
    %314 = vector.extract_strided_slice %274 {offsets = [0, 0], sizes = [8, 32], strides = [1, 1]} : vector<32x32xf32> to vector<8x32xf32>
    %cst_136 = arith.constant dense<0.000000e+00> : vector<8x32xf32>
    %315 = tpu.matmul %313, %314, %cst_136 {dimension_numbers = #tpu.dot_dimension_numbers<[1], [0], [0], [1], [0, 0, 1, 1], [], []>} : vector<8x8xf32>, vector<8x32xf32>, vector<8x32xf32> -> vector<8x32xf32>
    %316 = vector.extract_strided_slice %289 {offsets = [0, 8], sizes = [8, 8], strides = [1, 1]} : vector<8x32xf32> to vector<8x8xf32>
    %317 = vector.extract_strided_slice %290 {offsets = [0, 8], sizes = [8, 8], strides = [1, 1]} : vector<8x32xf32> to vector<8x8xf32>
    %cst_137 = arith.constant dense<0.000000e+00> : vector<8x8xf32>
    %318 = tpu.matmul %316, %317, %cst_137 {dimension_numbers = #tpu.dot_dimension_numbers<[1], [1], [0], [0], [0, 0, 1, 0], [], []>} : vector<8x8xf32>, vector<8x8xf32>, vector<8x8xf32> -> vector<8x8xf32>
    %cst_138 = arith.constant 0.353553385 : f32
    %319 = vector.broadcast %cst_138 : f32 to vector<8x8xf32>
    %320 = arith.mulf %318, %319 : vector<8x8xf32>
    %321 = arith.addf %320, %293 : vector<8x8xf32>
    %cst_139 = arith.constant dense<0xFF800000> : vector<8xf32>
    %322 = vector.multi_reduction <maximumf>, %321, %cst_139 [1] : vector<8x8xf32> to vector<8xf32>
    %323 = vector.shape_cast %322 : vector<8xf32> to vector<8x1xf32>
    %324 = vector.broadcast %323 : vector<8x1xf32> to vector<8x8xf32>
    %325 = arith.subf %321, %324 : vector<8x8xf32>
    %326 = math.exp %325 : vector<8x8xf32>
    %cst_140 = arith.constant dense<0.000000e+00> : vector<8xf32>
    %327 = vector.multi_reduction <add>, %326, %cst_140 [1] : vector<8x8xf32> to vector<8xf32>
    %328 = vector.shape_cast %327 : vector<8xf32> to vector<8x1xf32>
    %329 = vector.broadcast %328 : vector<8x1xf32> to vector<8x8xf32>
    %330 = arith.divf %326, %329 : vector<8x8xf32>
    %c0_141 = arith.constant 0 : index
    %c1_142 = arith.constant 1 : index
    %c0_143 = arith.constant 0 : index
    %c0_144 = arith.constant 0 : index
    %331 = vector.load %arg15[%c0_141, %c1_142, %c0_143, %c0_144] : memref<2x4x8x8xf32, #tpu.memory_space<vmem>>, vector<1x1x8x8xf32>
    %332 = vector.shape_cast %331 : vector<1x1x8x8xf32> to vector<8x8xf32>
    %333 = vector.shape_cast %330 : vector<8x8xf32> to vector<1x1x8x8xf32>
    tpu.vector_store %arg15[%c0_141, %c1_142, %c0_143, %c0_144], %333 {strides = array<i32>} : memref<2x4x8x8xf32, #tpu.memory_space<vmem>>, vector<1x1x8x8xf32>,
    %334 = vector.extract_strided_slice %291 {offsets = [0, 8], sizes = [8, 8], strides = [1, 1]} : vector<8x32xf32> to vector<8x8xf32>
    %cst_145 = arith.constant dense<0.000000e+00> : vector<8x8xf32>
    %335 = tpu.matmul %330, %334, %cst_145 {dimension_numbers = #tpu.dot_dimension_numbers<[1], [0], [0], [1], [0, 0, 1, 1], [], []>} : vector<8x8xf32>, vector<8x8xf32>, vector<8x8xf32> -> vector<8x8xf32>
    %336 = vector.extract_strided_slice %274 {offsets = [8, 0], sizes = [8, 32], strides = [1, 1]} : vector<32x32xf32> to vector<8x32xf32>
    %cst_146 = arith.constant dense<0.000000e+00> : vector<8x32xf32>
    %337 = tpu.matmul %335, %336, %cst_146 {dimension_numbers = #tpu.dot_dimension_numbers<[1], [0], [0], [1], [0, 0, 1, 1], [], []>} : vector<8x8xf32>, vector<8x32xf32>, vector<8x32xf32> -> vector<8x32xf32>
    %338 = arith.addf %315, %337 : vector<8x32xf32>
    %339 = vector.extract_strided_slice %289 {offsets = [0, 16], sizes = [8, 8], strides = [1, 1]} : vector<8x32xf32> to vector<8x8xf32>
    %340 = vector.extract_strided_slice %290 {offsets = [0, 16], sizes = [8, 8], strides = [1, 1]} : vector<8x32xf32> to vector<8x8xf32>
    %cst_147 = arith.constant dense<0.000000e+00> : vector<8x8xf32>
    %341 = tpu.matmul %339, %340, %cst_147 {dimension_numbers = #tpu.dot_dimension_numbers<[1], [1], [0], [0], [0, 0, 1, 0], [], []>} : vector<8x8xf32>, vector<8x8xf32>, vector<8x8xf32> -> vector<8x8xf32>
    %cst_148 = arith.constant 0.353553385 : f32
    %342 = vector.broadcast %cst_148 : f32 to vector<8x8xf32>
    %343 = arith.mulf %341, %342 : vector<8x8xf32>
    %344 = arith.addf %343, %293 : vector<8x8xf32>
    %cst_149 = arith.constant dense<0xFF800000> : vector<8xf32>
    %345 = vector.multi_reduction <maximumf>, %344, %cst_149 [1] : vector<8x8xf32> to vector<8xf32>
    %346 = vector.shape_cast %345 : vector<8xf32> to vector<8x1xf32>
    %347 = vector.broadcast %346 : vector<8x1xf32> to vector<8x8xf32>
    %348 = arith.subf %344, %347 : vector<8x8xf32>
    %349 = math.exp %348 : vector<8x8xf32>
    %cst_150 = arith.constant dense<0.000000e+00> : vector<8xf32>
    %350 = vector.multi_reduction <add>, %349, %cst_150 [1] : vector<8x8xf32> to vector<8xf32>
    %351 = vector.shape_cast %350 : vector<8xf32> to vector<8x1xf32>
    %352 = vector.broadcast %351 : vector<8x1xf32> to vector<8x8xf32>
    %353 = arith.divf %349, %352 : vector<8x8xf32>
    %c0_151 = arith.constant 0 : index
    %c2_152 = arith.constant 2 : index
    %c0_153 = arith.constant 0 : index
    %c0_154 = arith.constant 0 : index
    %354 = vector.load %arg15[%c0_151, %c2_152, %c0_153, %c0_154] : memref<2x4x8x8xf32, #tpu.memory_space<vmem>>, vector<1x1x8x8xf32>
    %355 = vector.shape_cast %354 : vector<1x1x8x8xf32> to vector<8x8xf32>
    %356 = vector.shape_cast %353 : vector<8x8xf32> to vector<1x1x8x8xf32>
    tpu.vector_store %arg15[%c0_151, %c2_152, %c0_153, %c0_154], %356 {strides = array<i32>} : memref<2x4x8x8xf32, #tpu.memory_space<vmem>>, vector<1x1x8x8xf32>,
    %357 = vector.extract_strided_slice %291 {offsets = [0, 16], sizes = [8, 8], strides = [1, 1]} : vector<8x32xf32> to vector<8x8xf32>
    %cst_155 = arith.constant dense<0.000000e+00> : vector<8x8xf32>
    %358 = tpu.matmul %353, %357, %cst_155 {dimension_numbers = #tpu.dot_dimension_numbers<[1], [0], [0], [1], [0, 0, 1, 1], [], []>} : vector<8x8xf32>, vector<8x8xf32>, vector<8x8xf32> -> vector<8x8xf32>
    %359 = vector.extract_strided_slice %274 {offsets = [16, 0], sizes = [8, 32], strides = [1, 1]} : vector<32x32xf32> to vector<8x32xf32>
    %cst_156 = arith.constant dense<0.000000e+00> : vector<8x32xf32>
    %360 = tpu.matmul %358, %359, %cst_156 {dimension_numbers = #tpu.dot_dimension_numbers<[1], [0], [0], [1], [0, 0, 1, 1], [], []>} : vector<8x8xf32>, vector<8x32xf32>, vector<8x32xf32> -> vector<8x32xf32>
    %361 = arith.addf %338, %360 : vector<8x32xf32>
    %362 = vector.extract_strided_slice %289 {offsets = [0, 24], sizes = [8, 8], strides = [1, 1]} : vector<8x32xf32> to vector<8x8xf32>
    %363 = vector.extract_strided_slice %290 {offsets = [0, 24], sizes = [8, 8], strides = [1, 1]} : vector<8x32xf32> to vector<8x8xf32>
    %cst_157 = arith.constant dense<0.000000e+00> : vector<8x8xf32>
    %364 = tpu.matmul %362, %363, %cst_157 {dimension_numbers = #tpu.dot_dimension_numbers<[1], [1], [0], [0], [0, 0, 1, 0], [], []>} : vector<8x8xf32>, vector<8x8xf32>, vector<8x8xf32> -> vector<8x8xf32>
    %cst_158 = arith.constant 0.353553385 : f32
    %365 = vector.broadcast %cst_158 : f32 to vector<8x8xf32>
    %366 = arith.mulf %364, %365 : vector<8x8xf32>
    %367 = arith.addf %366, %293 : vector<8x8xf32>
    %cst_159 = arith.constant dense<0xFF800000> : vector<8xf32>
    %368 = vector.multi_reduction <maximumf>, %367, %cst_159 [1] : vector<8x8xf32> to vector<8xf32>
    %369 = vector.shape_cast %368 : vector<8xf32> to vector<8x1xf32>
    %370 = vector.broadcast %369 : vector<8x1xf32> to vector<8x8xf32>
    %371 = arith.subf %367, %370 : vector<8x8xf32>
    %372 = math.exp %371 : vector<8x8xf32>
    %cst_160 = arith.constant dense<0.000000e+00> : vector<8xf32>
    %373 = vector.multi_reduction <add>, %372, %cst_160 [1] : vector<8x8xf32> to vector<8xf32>
    %374 = vector.shape_cast %373 : vector<8xf32> to vector<8x1xf32>
    %375 = vector.broadcast %374 : vector<8x1xf32> to vector<8x8xf32>
    %376 = arith.divf %372, %375 : vector<8x8xf32>
    %c0_161 = arith.constant 0 : index
    %c3_162 = arith.constant 3 : index
    %c0_163 = arith.constant 0 : index
    %c0_164 = arith.constant 0 : index
    %377 = vector.load %arg15[%c0_161, %c3_162, %c0_163, %c0_164] : memref<2x4x8x8xf32, #tpu.memory_space<vmem>>, vector<1x1x8x8xf32>
    %378 = vector.shape_cast %377 : vector<1x1x8x8xf32> to vector<8x8xf32>
    %379 = vector.shape_cast %376 : vector<8x8xf32> to vector<1x1x8x8xf32>
    tpu.vector_store %arg15[%c0_161, %c3_162, %c0_163, %c0_164], %379 {strides = array<i32>} : memref<2x4x8x8xf32, #tpu.memory_space<vmem>>, vector<1x1x8x8xf32>,
    %380 = vector.extract_strided_slice %291 {offsets = [0, 24], sizes = [8, 8], strides = [1, 1]} : vector<8x32xf32> to vector<8x8xf32>
    %cst_165 = arith.constant dense<0.000000e+00> : vector<8x8xf32>
    %381 = tpu.matmul %376, %380, %cst_165 {dimension_numbers = #tpu.dot_dimension_numbers<[1], [0], [0], [1], [0, 0, 1, 1], [], []>} : vector<8x8xf32>, vector<8x8xf32>, vector<8x8xf32> -> vector<8x8xf32>
    %382 = vector.extract_strided_slice %274 {offsets = [24, 0], sizes = [8, 32], strides = [1, 1]} : vector<32x32xf32> to vector<8x32xf32>
    %cst_166 = arith.constant dense<0.000000e+00> : vector<8x32xf32>
    %383 = tpu.matmul %381, %382, %cst_166 {dimension_numbers = #tpu.dot_dimension_numbers<[1], [0], [0], [1], [0, 0, 1, 1], [], []>} : vector<8x8xf32>, vector<8x32xf32>, vector<8x32xf32> -> vector<8x32xf32>
    %384 = arith.addf %361, %383 : vector<8x32xf32>
    %385 = vector.extract_strided_slice %276 {offsets = [0, 0], sizes = [1, 32], strides = [1, 1]} : vector<3x32xf32> to vector<1x32xf32>
    %386 = vector.broadcast %385 : vector<1x32xf32> to vector<8x32xf32>
    %387 = arith.addf %384, %386 : vector<8x32xf32>
    %388 = vector.extract_strided_slice %268 {offsets = [0, 0], sizes = [8, 32], strides = [1, 1]} : vector<16x32xf32> to vector<8x32xf32>
    %389 = arith.addf %387, %388 : vector<8x32xf32>
    %390 = vector.extract_strided_slice %276 {offsets = [1, 0], sizes = [1, 32], strides = [1, 1]} : vector<3x32xf32> to vector<1x32xf32>
    %391 = vector.extract_strided_slice %276 {offsets = [2, 0], sizes = [1, 32], strides = [1, 1]} : vector<3x32xf32> to vector<1x32xf32>
    %cst_167 = arith.constant dense<0.000000e+00> : vector<8xf32>
    %392 = vector.multi_reduction <add>, %389, %cst_167 [1] : vector<8x32xf32> to vector<8xf32>
    %393 = vector.shape_cast %392 : vector<8xf32> to vector<8x1xf32>
    %cst_168 = arith.constant 3.200000e+01 : f32
    %394 = vector.broadcast %cst_168 : f32 to vector<8x1xf32>
    %395 = arith.divf %393, %394 : vector<8x1xf32>
    %396 = vector.broadcast %395 : vector<8x1xf32> to vector<8x32xf32>
    %397 = arith.subf %389, %396 : vector<8x32xf32>
    %398 = arith.mulf %397, %397 : vector<8x32xf32>
    %cst_169 = arith.constant dense<0.000000e+00> : vector<8xf32>
    %399 = vector.multi_reduction <add>, %398, %cst_169 [1] : vector<8x32xf32> to vector<8xf32>
    %400 = vector.shape_cast %399 : vector<8xf32> to vector<8x1xf32>
    %cst_170 = arith.constant 3.200000e+01 : f32
    %401 = vector.broadcast %cst_170 : f32 to vector<8x1xf32>
    %402 = arith.divf %400, %401 : vector<8x1xf32>
    %403 = vector.broadcast %395 : vector<8x1xf32> to vector<8x32xf32>
    %404 = arith.subf %389, %403 : vector<8x32xf32>
    %cst_171 = arith.constant 9.99999974E-6 : f32
    %405 = vector.broadcast %cst_171 : f32 to vector<8x1xf32>
    %406 = arith.addf %402, %405 : vector<8x1xf32>
    %407 = math.rsqrt %406 : vector<8x1xf32>
    %408 = vector.broadcast %407 : vector<8x1xf32> to vector<8x32xf32>
    %409 = arith.mulf %404, %408 : vector<8x32xf32>
    %410 = vector.broadcast %390 : vector<1x32xf32> to vector<8x32xf32>
    %411 = arith.mulf %409, %410 : vector<8x32xf32>
    %412 = vector.broadcast %391 : vector<1x32xf32> to vector<8x32xf32>
    %413 = arith.addf %411, %412 : vector<8x32xf32>
    %414 = vector.extract_strided_slice %281 {offsets = [8, 0], sizes = [8, 32], strides = [1, 1]} : vector<16x32xf32> to vector<8x32xf32>
    %415 = vector.extract_strided_slice %287 {offsets = [8, 0], sizes = [8, 32], strides = [1, 1]} : vector<16x32xf32> to vector<8x32xf32>
    %416 = vector.extract_strided_slice %288 {offsets = [8, 0], sizes = [8, 32], strides = [1, 1]} : vector<16x32xf32> to vector<8x32xf32>
    %c1_172 = arith.constant 1 : index
    %c0_173 = arith.constant 0 : index
    %c0_174 = arith.constant 0 : index
    %417 = vector.load %arg4[%c1_172, %c0_173, %c0_174] : memref<2x8x8xf32, #tpu.memory_space<vmem>>, vector<1x8x8xf32>
    %418 = vector.shape_cast %417 : vector<1x8x8xf32> to vector<8x8xf32>
    %419 = vector.extract_strided_slice %414 {offsets = [0, 0], sizes = [8, 8], strides = [1, 1]} : vector<8x32xf32> to vector<8x8xf32>
    %420 = vector.extract_strided_slice %415 {offsets = [0, 0], sizes = [8, 8], strides = [1, 1]} : vector<8x32xf32> to vector<8x8xf32>
    %cst_175 = arith.constant dense<0.000000e+00> : vector<8x8xf32>
    %421 = tpu.matmul %419, %420, %cst_175 {dimension_numbers = #tpu.dot_dimension_numbers<[1], [1], [0], [0], [0, 0, 1, 0], [], []>} : vector<8x8xf32>, vector<8x8xf32>, vector<8x8xf32> -> vector<8x8xf32>
    %cst_176 = arith.constant 0.353553385 : f32
    %422 = vector.broadcast %cst_176 : f32 to vector<8x8xf32>
    %423 = arith.mulf %421, %422 : vector<8x8xf32>
    %424 = arith.addf %423, %418 : vector<8x8xf32>
    %cst_177 = arith.constant dense<0xFF800000> : vector<8xf32>
    %425 = vector.multi_reduction <maximumf>, %424, %cst_177 [1] : vector<8x8xf32> to vector<8xf32>
    %426 = vector.shape_cast %425 : vector<8xf32> to vector<8x1xf32>
    %427 = vector.broadcast %426 : vector<8x1xf32> to vector<8x8xf32>
    %428 = arith.subf %424, %427 : vector<8x8xf32>
    %429 = math.exp %428 : vector<8x8xf32>
    %cst_178 = arith.constant dense<0.000000e+00> : vector<8xf32>
    %430 = vector.multi_reduction <add>, %429, %cst_178 [1] : vector<8x8xf32> to vector<8xf32>
    %431 = vector.shape_cast %430 : vector<8xf32> to vector<8x1xf32>
    %432 = vector.broadcast %431 : vector<8x1xf32> to vector<8x8xf32>
    %433 = arith.divf %429, %432 : vector<8x8xf32>
    %c1_179 = arith.constant 1 : index
    %c0_180 = arith.constant 0 : index
    %c0_181 = arith.constant 0 : index
    %c0_182 = arith.constant 0 : index
    %434 = vector.load %arg15[%c1_179, %c0_180, %c0_181, %c0_182] : memref<2x4x8x8xf32, #tpu.memory_space<vmem>>, vector<1x1x8x8xf32>
    %435 = vector.shape_cast %434 : vector<1x1x8x8xf32> to vector<8x8xf32>
    %436 = vector.shape_cast %433 : vector<8x8xf32> to vector<1x1x8x8xf32>
    tpu.vector_store %arg15[%c1_179, %c0_180, %c0_181, %c0_182], %436 {strides = array<i32>} : memref<2x4x8x8xf32, #tpu.memory_space<vmem>>, vector<1x1x8x8xf32>,
    %437 = vector.extract_strided_slice %416 {offsets = [0, 0], sizes = [8, 8], strides = [1, 1]} : vector<8x32xf32> to vector<8x8xf32>
    %cst_183 = arith.constant dense<0.000000e+00> : vector<8x8xf32>
    %438 = tpu.matmul %433, %437, %cst_183 {dimension_numbers = #tpu.dot_dimension_numbers<[1], [0], [0], [1], [0, 0, 1, 1], [], []>} : vector<8x8xf32>, vector<8x8xf32>, vector<8x8xf32> -> vector<8x8xf32>
    %439 = vector.extract_strided_slice %274 {offsets = [0, 0], sizes = [8, 32], strides = [1, 1]} : vector<32x32xf32> to vector<8x32xf32>
    %cst_184 = arith.constant dense<0.000000e+00> : vector<8x32xf32>
    %440 = tpu.matmul %438, %439, %cst_184 {dimension_numbers = #tpu.dot_dimension_numbers<[1], [0], [0], [1], [0, 0, 1, 1], [], []>} : vector<8x8xf32>, vector<8x32xf32>, vector<8x32xf32> -> vector<8x32xf32>
    %441 = vector.extract_strided_slice %414 {offsets = [0, 8], sizes = [8, 8], strides = [1, 1]} : vector<8x32xf32> to vector<8x8xf32>
    %442 = vector.extract_strided_slice %415 {offsets = [0, 8], sizes = [8, 8], strides = [1, 1]} : vector<8x32xf32> to vector<8x8xf32>
    %cst_185 = arith.constant dense<0.000000e+00> : vector<8x8xf32>
    %443 = tpu.matmul %441, %442, %cst_185 {dimension_numbers = #tpu.dot_dimension_numbers<[1], [1], [0], [0], [0, 0, 1, 0], [], []>} : vector<8x8xf32>, vector<8x8xf32>, vector<8x8xf32> -> vector<8x8xf32>
    %cst_186 = arith.constant 0.353553385 : f32
    %444 = vector.broadcast %cst_186 : f32 to vector<8x8xf32>
    %445 = arith.mulf %443, %444 : vector<8x8xf32>
    %446 = arith.addf %445, %418 : vector<8x8xf32>
    %cst_187 = arith.constant dense<0xFF800000> : vector<8xf32>
    %447 = vector.multi_reduction <maximumf>, %446, %cst_187 [1] : vector<8x8xf32> to vector<8xf32>
    %448 = vector.shape_cast %447 : vector<8xf32> to vector<8x1xf32>
    %449 = vector.broadcast %448 : vector<8x1xf32> to vector<8x8xf32>
    %450 = arith.subf %446, %449 : vector<8x8xf32>
    %451 = math.exp %450 : vector<8x8xf32>
    %cst_188 = arith.constant dense<0.000000e+00> : vector<8xf32>
    %452 = vector.multi_reduction <add>, %451, %cst_188 [1] : vector<8x8xf32> to vector<8xf32>
    %453 = vector.shape_cast %452 : vector<8xf32> to vector<8x1xf32>
    %454 = vector.broadcast %453 : vector<8x1xf32> to vector<8x8xf32>
    %455 = arith.divf %451, %454 : vector<8x8xf32>
    %c1_189 = arith.constant 1 : index
    %c1_190 = arith.constant 1 : index
    %c0_191 = arith.constant 0 : index
    %c0_192 = arith.constant 0 : index
    %456 = vector.load %arg15[%c1_189, %c1_190, %c0_191, %c0_192] : memref<2x4x8x8xf32, #tpu.memory_space<vmem>>, vector<1x1x8x8xf32>
    %457 = vector.shape_cast %456 : vector<1x1x8x8xf32> to vector<8x8xf32>
    %458 = vector.shape_cast %455 : vector<8x8xf32> to vector<1x1x8x8xf32>
    tpu.vector_store %arg15[%c1_189, %c1_190, %c0_191, %c0_192], %458 {strides = array<i32>} : memref<2x4x8x8xf32, #tpu.memory_space<vmem>>, vector<1x1x8x8xf32>,
    %459 = vector.extract_strided_slice %416 {offsets = [0, 8], sizes = [8, 8], strides = [1, 1]} : vector<8x32xf32> to vector<8x8xf32>
    %cst_193 = arith.constant dense<0.000000e+00> : vector<8x8xf32>
    %460 = tpu.matmul %455, %459, %cst_193 {dimension_numbers = #tpu.dot_dimension_numbers<[1], [0], [0], [1], [0, 0, 1, 1], [], []>} : vector<8x8xf32>, vector<8x8xf32>, vector<8x8xf32> -> vector<8x8xf32>
    %461 = vector.extract_strided_slice %274 {offsets = [8, 0], sizes = [8, 32], strides = [1, 1]} : vector<32x32xf32> to vector<8x32xf32>
    %cst_194 = arith.constant dense<0.000000e+00> : vector<8x32xf32>
    %462 = tpu.matmul %460, %461, %cst_194 {dimension_numbers = #tpu.dot_dimension_numbers<[1], [0], [0], [1], [0, 0, 1, 1], [], []>} : vector<8x8xf32>, vector<8x32xf32>, vector<8x32xf32> -> vector<8x32xf32>
    %463 = arith.addf %440, %462 : vector<8x32xf32>
    %464 = vector.extract_strided_slice %414 {offsets = [0, 16], sizes = [8, 8], strides = [1, 1]} : vector<8x32xf32> to vector<8x8xf32>
    %465 = vector.extract_strided_slice %415 {offsets = [0, 16], sizes = [8, 8], strides = [1, 1]} : vector<8x32xf32> to vector<8x8xf32>
    %cst_195 = arith.constant dense<0.000000e+00> : vector<8x8xf32>
    %466 = tpu.matmul %464, %465, %cst_195 {dimension_numbers = #tpu.dot_dimension_numbers<[1], [1], [0], [0], [0, 0, 1, 0], [], []>} : vector<8x8xf32>, vector<8x8xf32>, vector<8x8xf32> -> vector<8x8xf32>
    %cst_196 = arith.constant 0.353553385 : f32
    %467 = vector.broadcast %cst_196 : f32 to vector<8x8xf32>
    %468 = arith.mulf %466, %467 : vector<8x8xf32>
    %469 = arith.addf %468, %418 : vector<8x8xf32>
    %cst_197 = arith.constant dense<0xFF800000> : vector<8xf32>
    %470 = vector.multi_reduction <maximumf>, %469, %cst_197 [1] : vector<8x8xf32> to vector<8xf32>
    %471 = vector.shape_cast %470 : vector<8xf32> to vector<8x1xf32>
    %472 = vector.broadcast %471 : vector<8x1xf32> to vector<8x8xf32>
    %473 = arith.subf %469, %472 : vector<8x8xf32>
    %474 = math.exp %473 : vector<8x8xf32>
    %cst_198 = arith.constant dense<0.000000e+00> : vector<8xf32>
    %475 = vector.multi_reduction <add>, %474, %cst_198 [1] : vector<8x8xf32> to vector<8xf32>
    %476 = vector.shape_cast %475 : vector<8xf32> to vector<8x1xf32>
    %477 = vector.broadcast %476 : vector<8x1xf32> to vector<8x8xf32>
    %478 = arith.divf %474, %477 : vector<8x8xf32>
    %c1_199 = arith.constant 1 : index
    %c2_200 = arith.constant 2 : index
    %c0_201 = arith.constant 0 : index
    %c0_202 = arith.constant 0 : index
    %479 = vector.load %arg15[%c1_199, %c2_200, %c0_201, %c0_202] : memref<2x4x8x8xf32, #tpu.memory_space<vmem>>, vector<1x1x8x8xf32>
    %480 = vector.shape_cast %479 : vector<1x1x8x8xf32> to vector<8x8xf32>
    %481 = vector.shape_cast %478 : vector<8x8xf32> to vector<1x1x8x8xf32>
    tpu.vector_store %arg15[%c1_199, %c2_200, %c0_201, %c0_202], %481 {strides = array<i32>} : memref<2x4x8x8xf32, #tpu.memory_space<vmem>>, vector<1x1x8x8xf32>,
    %482 = vector.extract_strided_slice %416 {offsets = [0, 16], sizes = [8, 8], strides = [1, 1]} : vector<8x32xf32> to vector<8x8xf32>
    %cst_203 = arith.constant dense<0.000000e+00> : vector<8x8xf32>
    %483 = tpu.matmul %478, %482, %cst_203 {dimension_numbers = #tpu.dot_dimension_numbers<[1], [0], [0], [1], [0, 0, 1, 1], [], []>} : vector<8x8xf32>, vector<8x8xf32>, vector<8x8xf32> -> vector<8x8xf32>
    %484 = vector.extract_strided_slice %274 {offsets = [16, 0], sizes = [8, 32], strides = [1, 1]} : vector<32x32xf32> to vector<8x32xf32>
    %cst_204 = arith.constant dense<0.000000e+00> : vector<8x32xf32>
    %485 = tpu.matmul %483, %484, %cst_204 {dimension_numbers = #tpu.dot_dimension_numbers<[1], [0], [0], [1], [0, 0, 1, 1], [], []>} : vector<8x8xf32>, vector<8x32xf32>, vector<8x32xf32> -> vector<8x32xf32>
    %486 = arith.addf %463, %485 : vector<8x32xf32>
    %487 = vector.extract_strided_slice %414 {offsets = [0, 24], sizes = [8, 8], strides = [1, 1]} : vector<8x32xf32> to vector<8x8xf32>
    %488 = vector.extract_strided_slice %415 {offsets = [0, 24], sizes = [8, 8], strides = [1, 1]} : vector<8x32xf32> to vector<8x8xf32>
    %cst_205 = arith.constant dense<0.000000e+00> : vector<8x8xf32>
    %489 = tpu.matmul %487, %488, %cst_205 {dimension_numbers = #tpu.dot_dimension_numbers<[1], [1], [0], [0], [0, 0, 1, 0], [], []>} : vector<8x8xf32>, vector<8x8xf32>, vector<8x8xf32> -> vector<8x8xf32>
    %cst_206 = arith.constant 0.353553385 : f32
    %490 = vector.broadcast %cst_206 : f32 to vector<8x8xf32>
    %491 = arith.mulf %489, %490 : vector<8x8xf32>
    %492 = arith.addf %491, %418 : vector<8x8xf32>
    %cst_207 = arith.constant dense<0xFF800000> : vector<8xf32>
    %493 = vector.multi_reduction <maximumf>, %492, %cst_207 [1] : vector<8x8xf32> to vector<8xf32>
    %494 = vector.shape_cast %493 : vector<8xf32> to vector<8x1xf32>
    %495 = vector.broadcast %494 : vector<8x1xf32> to vector<8x8xf32>
    %496 = arith.subf %492, %495 : vector<8x8xf32>
    %497 = math.exp %496 : vector<8x8xf32>
    %cst_208 = arith.constant dense<0.000000e+00> : vector<8xf32>
    %498 = vector.multi_reduction <add>, %497, %cst_208 [1] : vector<8x8xf32> to vector<8xf32>
    %499 = vector.shape_cast %498 : vector<8xf32> to vector<8x1xf32>
    %500 = vector.broadcast %499 : vector<8x1xf32> to vector<8x8xf32>
    %501 = arith.divf %497, %500 : vector<8x8xf32>
    %c1_209 = arith.constant 1 : index
    %c3_210 = arith.constant 3 : index
    %c0_211 = arith.constant 0 : index
    %c0_212 = arith.constant 0 : index
    %502 = vector.load %arg15[%c1_209, %c3_210, %c0_211, %c0_212] : memref<2x4x8x8xf32, #tpu.memory_space<vmem>>, vector<1x1x8x8xf32>
    %503 = vector.shape_cast %502 : vector<1x1x8x8xf32> to vector<8x8xf32>
    %504 = vector.shape_cast %501 : vector<8x8xf32> to vector<1x1x8x8xf32>
    tpu.vector_store %arg15[%c1_209, %c3_210, %c0_211, %c0_212], %504 {strides = array<i32>} : memref<2x4x8x8xf32, #tpu.memory_space<vmem>>, vector<1x1x8x8xf32>,
    %505 = vector.extract_strided_slice %416 {offsets = [0, 24], sizes = [8, 8], strides = [1, 1]} : vector<8x32xf32> to vector<8x8xf32>
    %cst_213 = arith.constant dense<0.000000e+00> : vector<8x8xf32>
    %506 = tpu.matmul %501, %505, %cst_213 {dimension_numbers = #tpu.dot_dimension_numbers<[1], [0], [0], [1], [0, 0, 1, 1], [], []>} : vector<8x8xf32>, vector<8x8xf32>, vector<8x8xf32> -> vector<8x8xf32>
    %507 = vector.extract_strided_slice %274 {offsets = [24, 0], sizes = [8, 32], strides = [1, 1]} : vector<32x32xf32> to vector<8x32xf32>
    %cst_214 = arith.constant dense<0.000000e+00> : vector<8x32xf32>
    %508 = tpu.matmul %506, %507, %cst_214 {dimension_numbers = #tpu.dot_dimension_numbers<[1], [0], [0], [1], [0, 0, 1, 1], [], []>} : vector<8x8xf32>, vector<8x32xf32>, vector<8x32xf32> -> vector<8x32xf32>
    %509 = arith.addf %486, %508 : vector<8x32xf32>
    %510 = vector.extract_strided_slice %276 {offsets = [0, 0], sizes = [1, 32], strides = [1, 1]} : vector<3x32xf32> to vector<1x32xf32>
    %511 = vector.broadcast %510 : vector<1x32xf32> to vector<8x32xf32>
    %512 = arith.addf %509, %511 : vector<8x32xf32>
    %513 = vector.extract_strided_slice %268 {offsets = [8, 0], sizes = [8, 32], strides = [1, 1]} : vector<16x32xf32> to vector<8x32xf32>
    %514 = arith.addf %512, %513 : vector<8x32xf32>
    %515 = vector.extract_strided_slice %276 {offsets = [1, 0], sizes = [1, 32], strides = [1, 1]} : vector<3x32xf32> to vector<1x32xf32>
    %516 = vector.extract_strided_slice %276 {offsets = [2, 0], sizes = [1, 32], strides = [1, 1]} : vector<3x32xf32> to vector<1x32xf32>
    %cst_215 = arith.constant dense<0.000000e+00> : vector<8xf32>
    %517 = vector.multi_reduction <add>, %514, %cst_215 [1] : vector<8x32xf32> to vector<8xf32>
    %518 = vector.shape_cast %517 : vector<8xf32> to vector<8x1xf32>
    %cst_216 = arith.constant 3.200000e+01 : f32
    %519 = vector.broadcast %cst_216 : f32 to vector<8x1xf32>
    %520 = arith.divf %518, %519 : vector<8x1xf32>
    %521 = vector.broadcast %520 : vector<8x1xf32> to vector<8x32xf32>
    %522 = arith.subf %514, %521 : vector<8x32xf32>
    %523 = arith.mulf %522, %522 : vector<8x32xf32>
    %cst_217 = arith.constant dense<0.000000e+00> : vector<8xf32>
    %524 = vector.multi_reduction <add>, %523, %cst_217 [1] : vector<8x32xf32> to vector<8xf32>
    %525 = vector.shape_cast %524 : vector<8xf32> to vector<8x1xf32>
    %cst_218 = arith.constant 3.200000e+01 : f32
    %526 = vector.broadcast %cst_218 : f32 to vector<8x1xf32>
    %527 = arith.divf %525, %526 : vector<8x1xf32>
    %528 = vector.broadcast %520 : vector<8x1xf32> to vector<8x32xf32>
    %529 = arith.subf %514, %528 : vector<8x32xf32>
    %cst_219 = arith.constant 9.99999974E-6 : f32
    %530 = vector.broadcast %cst_219 : f32 to vector<8x1xf32>
    %531 = arith.addf %527, %530 : vector<8x1xf32>
    %532 = math.rsqrt %531 : vector<8x1xf32>
    %533 = vector.broadcast %532 : vector<8x1xf32> to vector<8x32xf32>
    %534 = arith.mulf %529, %533 : vector<8x32xf32>
    %535 = vector.broadcast %515 : vector<1x32xf32> to vector<8x32xf32>
    %536 = arith.mulf %534, %535 : vector<8x32xf32>
    %537 = vector.broadcast %516 : vector<1x32xf32> to vector<8x32xf32>
    %538 = arith.addf %536, %537 : vector<8x32xf32>
    %539 = tpu.concatenate %413, %538 in 0 : vector<8x32xf32>, vector<8x32xf32> -> vector<16x32xf32>
    %c0_220 = arith.constant 0 : index
    %c0_221 = arith.constant 0 : index
    %540 = vector.load %arg9[%c0_220, %c0_221] : memref<32x64xf32, #tpu.memory_space<vmem>>, vector<32x64xf32>
    %cst_222 = arith.constant dense<0.000000e+00> : vector<16x64xf32>
    %541 = tpu.matmul %539, %540, %cst_222 {dimension_numbers = #tpu.dot_dimension_numbers<[1], [0], [0], [1], [0, 0, 1, 1], [], []>} : vector<16x32xf32>, vector<32x64xf32>, vector<16x64xf32> -> vector<16x64xf32>
    %c0_223 = arith.constant 0 : index
    %c0_224 = arith.constant 0 : index
    %542 = vector.load %arg11[%c0_223, %c0_224] : memref<1x64xf32, #tpu.memory_space<vmem>>, vector<1x64xf32>
    %543 = vector.broadcast %542 : vector<1x64xf32> to vector<16x64xf32>
    %544 = arith.addf %541, %543 : vector<16x64xf32>
    %cst_225 = arith.constant 0.000000e+00 : f32
    %545 = vector.broadcast %cst_225 : f32 to vector<16x64xf32>
    %546 = arith.maximumf %544, %545 : vector<16x64xf32>
    %c0_226 = arith.constant 0 : index
    %c0_227 = arith.constant 0 : index
    %547 = vector.load %arg10[%c0_226, %c0_227] : memref<64x32xf32, #tpu.memory_space<vmem>>, vector<64x32xf32>
    %cst_228 = arith.constant dense<0.000000e+00> : vector<16x32xf32>
    %548 = tpu.matmul %546, %547, %cst_228 {dimension_numbers = #tpu.dot_dimension_numbers<[1], [0], [0], [1], [0, 0, 1, 1], [], []>} : vector<16x64xf32>, vector<64x32xf32>, vector<16x32xf32> -> vector<16x32xf32>
    %c0_229 = arith.constant 0 : index
    %c0_230 = arith.constant 0 : index
    %549 = vector.load %arg12[%c0_229, %c0_230] : memref<3x32xf32, #tpu.memory_space<vmem>>, vector<1x32xf32>
    %550 = vector.broadcast %549 : vector<1x32xf32> to vector<16x32xf32>
    %551 = arith.addf %548, %550 : vector<16x32xf32>
    %552 = arith.addf %551, %539 : vector<16x32xf32>
    %c1_231 = arith.constant 1 : index
    %c0_232 = arith.constant 0 : index
    %553 = vector.load %arg12[%c1_231, %c0_232] : memref<3x32xf32, #tpu.memory_space<vmem>>, vector<1x32xf32>
    %c2_233 = arith.constant 2 : index
    %c0_234 = arith.constant 0 : index
    %554 = vector.load %arg12[%c2_233, %c0_234] : memref<3x32xf32, #tpu.memory_space<vmem>>, vector<1x32xf32>
    %cst_235 = arith.constant dense<0.000000e+00> : vector<16xf32>
    %555 = vector.multi_reduction <add>, %552, %cst_235 [1] : vector<16x32xf32> to vector<16xf32>
    %556 = vector.shape_cast %555 : vector<16xf32> to vector<16x1xf32>
    %cst_236 = arith.constant 3.200000e+01 : f32
    %557 = vector.broadcast %cst_236 : f32 to vector<16x1xf32>
    %558 = arith.divf %556, %557 : vector<16x1xf32>
    %559 = vector.broadcast %558 : vector<16x1xf32> to vector<16x32xf32>
    %560 = arith.subf %552, %559 : vector<16x32xf32>
    %561 = arith.mulf %560, %560 : vector<16x32xf32>
    %cst_237 = arith.constant dense<0.000000e+00> : vector<16xf32>
    %562 = vector.multi_reduction <add>, %561, %cst_237 [1] : vector<16x32xf32> to vector<16xf32>
    %563 = vector.shape_cast %562 : vector<16xf32> to vector<16x1xf32>
    %cst_238 = arith.constant 3.200000e+01 : f32
    %564 = vector.broadcast %cst_238 : f32 to vector<16x1xf32>
    %565 = arith.divf %563, %564 : vector<16x1xf32>
    %566 = vector.broadcast %558 : vector<16x1xf32> to vector<16x32xf32>
    %567 = arith.subf %552, %566 : vector<16x32xf32>
    %cst_239 = arith.constant 9.99999974E-6 : f32
    %568 = vector.broadcast %cst_239 : f32 to vector<16x1xf32>
    %569 = arith.addf %565, %568 : vector<16x1xf32>
    %570 = math.rsqrt %569 : vector<16x1xf32>
    %571 = vector.broadcast %570 : vector<16x1xf32> to vector<16x32xf32>
    %572 = arith.mulf %567, %571 : vector<16x32xf32>
    %573 = vector.broadcast %553 : vector<1x32xf32> to vector<16x32xf32>
    %574 = arith.mulf %572, %573 : vector<16x32xf32>
    %575 = vector.broadcast %554 : vector<1x32xf32> to vector<16x32xf32>
    %576 = arith.addf %574, %575 : vector<16x32xf32>
    %577 = vector.shape_cast %576 : vector<16x32xf32> to vector<2x8x32xf32>
    %c0_240 = arith.constant 0 : index
    %c0_241 = arith.constant 0 : index
    %c0_242 = arith.constant 0 : index
    %578 = vector.load %arg13[%c0_240, %c0_241, %c0_242] : memref<2x8x32xf32, #tpu.memory_space<vmem>>, vector<2x8x32xf32>
    tpu.vector_store %arg13[%c0_240, %c0_241, %c0_242], %577 {strides = array<i32>} : memref<2x8x32xf32, #tpu.memory_space<vmem>>, vector<2x8x32xf32>,
    return
  }
  func.func @transform_0(%arg0: i32) -> (i32, i32, i32) {
    %c0_i32 = arith.constant 0 : i32
    %c0_i32_0 = arith.constant 0 : i32
    %c0_i32_1 = arith.constant 0 : i32
    return %arg0, %c0_i32, %c0_i32_0 : i32, i32, i32
  }
  func.func @transform_1(%arg0: i32) -> (i32, i32, i32) {
    %c0_i32 = arith.constant 0 : i32
    %c0_i32_0 = arith.constant 0 : i32
    %c0_i32_1 = arith.constant 0 : i32
    return %arg0, %c0_i32, %c0_i32_0 : i32, i32, i32
  }
  func.func @transform_2(%arg0: i32) -> (i32, i32, i32) {
    %c0_i32 = arith.constant 0 : i32
    %c0_i32_0 = arith.constant 0 : i32
    %c0_i32_1 = arith.constant 0 : i32
    return %arg0, %c0_i32, %c0_i32_0 : i32, i32, i32
  }
  func.func @transform_3(%arg0: i32) -> (i32, i32, i32) {
    %c0_i32 = arith.constant 0 : i32
    %c0_i32_0 = arith.constant 0 : i32
    %c0_i32_1 = arith.constant 0 : i32
    return %arg0, %c0_i32, %c0_i32_0 : i32, i32, i32
  }
  func.func @transform_4(%arg0: i32) -> (i32, i32, i32) {
    %c0_i32 = arith.constant 0 : i32
    %c0_i32_0 = arith.constant 0 : i32
    %c0_i32_1 = arith.constant 0 : i32
    %c0_i32_2 = arith.constant 0 : i32
    return %c0_i32, %c0_i32_0, %c0_i32_1 : i32, i32, i32
  }
  func.func @transform_5(%arg0: i32) -> (i32, i32, i32) {
    %c0_i32 = arith.constant 0 : i32
    %c0_i32_0 = arith.constant 0 : i32
    %c0_i32_1 = arith.constant 0 : i32
    %c0_i32_2 = arith.constant 0 : i32
    return %c0_i32, %c0_i32_0, %c0_i32_1 : i32, i32, i32
  }
  func.func @transform_6(%arg0: i32) -> (i32, i32, i32) {
    %c0_i32 = arith.constant 0 : i32
    %c0_i32_0 = arith.constant 0 : i32
    %c0_i32_1 = arith.constant 0 : i32
    %c0_i32_2 = arith.constant 0 : i32
    return %c0_i32, %c0_i32_0, %c0_i32_1 : i32, i32, i32
  }
  func.func @transform_7(%arg0: i32) -> (i32, i32, i32) {
    %c0_i32 = arith.constant 0 : i32
    %c0_i32_0 = arith.constant 0 : i32
    %c0_i32_1 = arith.constant 0 : i32
    %c0_i32_2 = arith.constant 0 : i32
    return %c0_i32, %c0_i32_0, %c0_i32_1 : i32, i32, i32
  }
  func.func @transform_8(%arg0: i32) -> (i32, i32) {
    %c0_i32 = arith.constant 0 : i32
    %c0_i32_0 = arith.constant 0 : i32
    %c0_i32_1 = arith.constant 0 : i32
    return %c0_i32, %c0_i32_0 : i32, i32
  }
  func.func @transform_9(%arg0: i32) -> (i32, i32) {
    %c0_i32 = arith.constant 0 : i32
    %c0_i32_0 = arith.constant 0 : i32
    %c0_i32_1 = arith.constant 0 : i32
    return %c0_i32, %c0_i32_0 : i32, i32
  }
  func.func @transform_10(%arg0: i32) -> (i32, i32) {
    %c0_i32 = arith.constant 0 : i32
    %c0_i32_0 = arith.constant 0 : i32
    %c0_i32_1 = arith.constant 0 : i32
    return %c0_i32, %c0_i32_0 : i32, i32
  }
  func.func @transform_11(%arg0: i32) -> (i32, i32) {
    %c0_i32 = arith.constant 0 : i32
    %c0_i32_0 = arith.constant 0 : i32
    %c0_i32_1 = arith.constant 0 : i32
    return %c0_i32, %c0_i32_0 : i32, i32
  }
  func.func @transform_12(%arg0: i32) -> (i32, i32, i32) {
    %c0_i32 = arith.constant 0 : i32
    %c0_i32_0 = arith.constant 0 : i32
    %c0_i32_1 = arith.constant 0 : i32
    return %arg0, %c0_i32, %c0_i32_0 : i32, i32, i32
  }
  func.func @transform_13(%arg0: i32) -> (i32, i32, i32, i32) {
    %c0_i32 = arith.constant 0 : i32
    %c0_i32_0 = arith.constant 0 : i32
    %c0_i32_1 = arith.constant 0 : i32
    %c0_i32_2 = arith.constant 0 : i32
    return %arg0, %c0_i32, %c0_i32_0, %c0_i32_1 : i32, i32, i32, i32
  }
  func.func @transform_14(%arg0: i32) -> (i32, i32, i32, i32) {
    %c0_i32 = arith.constant 0 : i32
    %c0_i32_0 = arith.constant 0 : i32
    %c0_i32_1 = arith.constant 0 : i32
    %c0_i32_2 = arith.constant 0 : i32
    return %arg0, %c0_i32, %c0_i32_0, %c0_i32_1 : i32, i32, i32, i32
  }
}

</mosaic_0001>

<bundles_post_ra>
// kernel: tpu_custom_call.1
= control target key start
LH: loop header
LB: loop body
LE: loop exit
PB: predicated region body
PF: predicated region fallthrough
CT: control target
= control target key end

     0   :  { %20 = vsyncpa [#allocation3], 0  ;;  %s6376_s0 = inlined_call_operand.hbm [shape: f32[2,8,32], index: 0, kind: input, shape index: {}]   ;;  %s6377_s1 = inlined_call_operand.hbm [shape: f32[2,8,32], index: 1, kind: input, shape index: {}]   ;;  %s6378_s2 = inlined_call_operand.hbm [shape: f32[2,8,8], index: 2, kind: input, shape index: {}]   ;;  %s6379_s3 = inlined_call_operand.hbm [shape: f32[2,8,8], index: 3, kind: input, shape index: {}]   ;;  %s6380_s4 = inlined_call_operand.vmem [shape: f32[2,32,96], index: 4, kind: input, shape index: {}]   ;;  %s6381_s5 = inlined_call_operand.vmem [shape: f32[2,32,32], index: 5, kind: input, shape index: {}]   ;;  %s6382_s6 = inlined_call_operand.vmem [shape: f32[2,1,96], index: 6, kind: input, shape index: {}]   ;;  %s6383_s7 = inlined_call_operand.vmem [shape: f32[2,3,32], index: 7, kind: input, shape index: {}]   ;;  %s6384_s8 = inlined_call_operand.hbm [shape: f32[32,64], index: 8, kind: input, shape index: {}]   ;;  %s6385_s9 = inlined_call_operand.vmem [shape: f32[64,32], index: 9, kind: input, shape index: {}]   ;;  %s6386_s10 = inlined_call_operand.vmem [shape: f32[1,64], index: 10, kind: input, shape index: {}]   ;;  %s6387_s11 = inlined_call_operand.vmem [shape: f32[3,32], index: 11, kind: input, shape index: {}]   ;;  %s6388_s12 = inlined_call_operand.hbm [shape: f32[2,8,32], index: 12, kind: output, shape index: {0}]   ;;  %s6389_s13 = inlined_call_operand.hbm [shape: f32[2,4,8,8], index: 13, kind: output, shape index: {1}]   ;;  %s6390_s14 = inlined_call_operand.hbm [shape: f32[2,4,8,8], index: 14, kind: output, shape index: {2}]  }
   0x1   :  { %21 = vsyncpa [#allocation6], 0 }
   0x2   :  { %22 = vsyncpa [#allocation9], 0 }
   0x3   :  { %23 = vsyncpa [#allocation4], 0 }
   0x4   :  { %24 = vsyncpa [#allocation13], 0  ;;  %s5538_s29 = smov [#allocation5]   ;;  %s5539_s15 = smov [#allocation8]  }
   0x5   :  { %s42_s30 = sshll.u32 %s5538_s29, 4  ;;  %s66_s16 = sshll.u32 %s5539_s15, 4  ;;  %s43_s30 = int_to_ptr.vmem [resolvable:$true] %s42_s30  ;;  %s5636_s16 = int_to_ptr.vmem [resolvable:$true] %s66_s16 }
   0x6   :  { %s5352_s19 = scalar_lea.hbm %s6377_s1, 256 }
   0x7   :  { %p5353_p0 = scmp.ne.s32.totalorder %s6377_s1, %s5352_s19  ;;  %p5356_p1 = scmp.lt.u32.totalorder %s5352_s19, %s6377_s1 }
   0x9   :  { %p5358_p2 = pnand %p5356_p1, %p5353_p0 }
   0xb   :  { %5361 = shalt.err (!%p5358_p2)
}
   0xc   :  { %s5362_s24 = scalar_lea.vmem %s43_s30, 256  ;;  %p5367_p4 = scmp.lt.s32.totalorder %s43_s30, %s43_s30 }
   0xd   :  { %p5363_p3 = scmp.ne.s32.totalorder %s43_s30, %s5362_s24  ;;  %p5368_p5 = scmp.lt.s32.totalorder %s5362_s24, %s5362_s24 }
   0xf   :  { %p5369_p6 = por %p5368_p5, %p5367_p4 }
  0x11   :  { %p5370_p7 = pnand %p5369_p6, %p5363_p3 }
  0x13   :  { %5373 = shalt.err (!%p5370_p7)
}
  0x14   :  { %s5540_s25 = smov 128   ;;  %s5541_s26 = smov 8  }
  0x15   :  { %48 = dma.hbm_to_vmem [thread:$0]  %s6377_s1, 256, %s43_s30, [#allocation6], %s5540_s25, %s5540_s25, %s5541_s26  }
  0x16   :  { %s5374_s17 = scalar_lea.hbm %s6379_s3, 256 }
  0x17   :  { %p5375_p8 = scmp.ne.s32.totalorder %s6379_s3, %s5374_s17  ;;  %p5378_p9 = scmp.lt.u32.totalorder %s5374_s17, %s6379_s3 }
  0x19   :  { %p5380_p10 = pnand %p5378_p9, %p5375_p8 }
  0x1b   :  { %5383 = shalt.err (!%p5380_p10)
}
  0x1c   :  { %s5384_s22 = scalar_lea.vmem %s5636_s16, 256  ;;  %p5389_p12 = scmp.lt.s32.totalorder %s5636_s16, %s5636_s16 }
  0x1d   :  { %p5385_p11 = scmp.ne.s32.totalorder %s5636_s16, %s5384_s22  ;;  %p5390_p13 = scmp.lt.s32.totalorder %s5384_s22, %s5384_s22 }
  0x1f   :  { %p5391_p0 = por %p5390_p13, %p5389_p12 }
  0x21   :  { %p5392_p1 = pnand %p5391_p0, %p5385_p11 }
  0x23   :  { %5395 = shalt.err (!%p5392_p1)
}
  0x24   :  { %72 = dma.hbm_to_vmem [thread:$0]  %s6379_s3, 256, %s5636_s16, [#allocation9], %s5540_s25, %s5540_s25, %s5541_s26  }
  0x25   :  { %s5542_s23 = smov [#allocation2]   ;;  %s5543_s27 = smov [#allocation7]  }
  0x26   :  { %s30_s24 = sshll.u32 %s5542_s23, 4  ;;  %s54_s28 = sshll.u32 %s5543_s27, 4  ;;  %s31_s24 = int_to_ptr.vmem [resolvable:$true] %s30_s24  ;;  %s5673_s28 = int_to_ptr.vmem [resolvable:$true] %s54_s28 }
  0x27   :  { %s5396_s17 = scalar_lea.hbm %s6376_s0, 256 }
  0x28   :  { %p5397_p2 = scmp.ne.s32.totalorder %s6376_s0, %s5396_s17  ;;  %p5400_p3 = scmp.lt.u32.totalorder %s5396_s17, %s6376_s0 }
  0x2a   :  { %p5402_p4 = pnand %p5400_p3, %p5397_p2 }
  0x2c   :  { %5405 = shalt.err (!%p5402_p4)
}
  0x2d   :  { %s5406_s3 = scalar_lea.vmem %s31_s24, 256  ;;  %p5411_p6 = scmp.lt.s32.totalorder %s31_s24, %s31_s24 }
  0x2e   :  { %p5407_p5 = scmp.ne.s32.totalorder %s31_s24, %s5406_s3  ;;  %p5412_p7 = scmp.lt.s32.totalorder %s5406_s3, %s5406_s3 }
  0x30   :  { %p5413_p8 = por %p5412_p7, %p5411_p6 }
  0x32   :  { %p5414_p9 = pnand %p5413_p8, %p5407_p5 }
  0x34   :  { %5417 = shalt.err (!%p5414_p9)
}
  0x35   :  { %36 = dma.hbm_to_vmem [thread:$0]  %s6376_s0, 256, %s31_s24, [#allocation3], %s5540_s25, %s5540_s25, %s5541_s26  }
  0x36   :  { %s5418_s23 = scalar_lea.hbm %s6378_s2, 256 }
  0x37   :  { %p5419_p10 = scmp.ne.s32.totalorder %s6378_s2, %s5418_s23  ;;  %p5422_p11 = scmp.lt.u32.totalorder %s5418_s23, %s6378_s2 }
  0x39   :  { %p5424_p12 = pnand %p5422_p11, %p5419_p10 }
  0x3b   :  { %5427 = shalt.err (!%p5424_p12)
}
  0x3c   :  { %s5428_s18 = scalar_lea.vmem %s5673_s28, 256  ;;  %p5433_p0 = scmp.lt.s32.totalorder %s5673_s28, %s5673_s28 }
  0x3d   :  { %p5429_p13 = scmp.ne.s32.totalorder %s5673_s28, %s5428_s18  ;;  %p5434_p1 = scmp.lt.s32.totalorder %s5428_s18, %s5428_s18 }
  0x3f   :  { %p5435_p2 = por %p5434_p1, %p5433_p0 }
  0x41   :  { %p5436_p3 = pnand %p5435_p2, %p5429_p13 }
  0x43   :  { %5439 = shalt.err (!%p5436_p3)
}
  0x44   :  { %60 = dma.hbm_to_vmem [thread:$0]  %s6378_s2, 256, %s5673_s28, [#allocation6], %s5540_s25, %s5540_s25, %s5541_s26  }
  0x45   :  { %s5544_s19 = smov [#allocation10]   ;;  %s5440_s16 = scalar_lea.hbm %s6384_s8, 512 }
  0x46   :  { %s86_s20 = sshll.u32 %s5544_s19, 4  ;;  %p5441_p4 = scmp.ne.s32.totalorder %s6384_s8, %s5440_s16  ;;  %s87_s20 = int_to_ptr.vmem [resolvable:$true] %s86_s20 }
  0x47   :  { %p5444_p5 = scmp.lt.u32.totalorder %s5440_s16, %s6384_s8 }
  0x49   :  { %p5446_p6 = pnand %p5444_p5, %p5441_p4 }
  0x4b   :  { %5449 = shalt.err (!%p5446_p6)
}
  0x4c   :  { %s5450_s27 = scalar_lea.vmem %s87_s20, 512  ;;  %p5455_p8 = scmp.lt.s32.totalorder %s87_s20, %s87_s20 }
  0x4d   :  { %p5451_p7 = scmp.ne.s32.totalorder %s87_s20, %s5450_s27  ;;  %p5456_p9 = scmp.lt.s32.totalorder %s5450_s27, %s5450_s27 }
  0x4f   :  { %p5457_p10 = por %p5456_p9, %p5455_p8 }
  0x51   :  { %p5458_p11 = pnand %p5457_p10, %p5451_p7 }
  0x53   :  { %5461 = shalt.err (!%p5458_p11)
}
  0x54   :  { %92 = dma.hbm_to_vmem [thread:$0]  %s6384_s8, 512, %s87_s20, [#allocation9], %s5540_s25, %s5540_s25, %s5541_s26  }
  0x55   :  { %5528 = dma.done.wait [#allocation3], 256  }
  0x56   :  { %5529 = vsyncadd [#allocation3], 4294967040 }
  0x57   :  { %5530 = dma.done.wait [#allocation6], 512  }
  0x58   :  { %5531 = vsyncadd [#allocation6], 4294966784 }
  0x59   :  { %5532 = dma.done.wait [#allocation9], 768  }
  0x5a   :  { %5533 = vsyncadd [#allocation9], 4294966528  ;;  %vm134_vm0 = vcmask 261120   ;;  %v118_v0 = vld [vmem:[%s6380_s4] sm:$0xff]  ;;  %v119_v1 = vld [vmem:[%s6380_s4 + $0x8] sm:$0xff]  ;;  %v5545_v8 = vmov 0.0  }
  0x5b   :  { %v120_v2 = vld [vmem:[%s6380_s4 + $0x10] sm:$0xff]  ;;  %v5195_v3 = vpack.c.bf16 %v119_v1, %v118_v0  ;;  %v121_v4 = vld [vmem:[%s6380_s4 + $0x18] sm:$0xff]  ;;  %v5737_v5 = vld [vmem:[#allocation2] sm:$0xff]  ;;  %4908 = vmatprep.subr.mxu1 %v5545_v8  ;;  %vm5546_vm1 = vmmov 0   ;;  %s5547_s3 = smov 120   ;;  %s5548_s16 = smov 96  }
  0x5c   :  { %v5199_v6 = vpack.c.bf16 %v121_v4, %v120_v2  ;;  %4900 = vmatprep.mubr.msk.f32.mxu0 %vm134_vm0, %v5737_v5  ;;  %v5741_v7 = vld [vmem:[#allocation2 + $0x8] sm:$0xff]  ;;  %4910 = vmatprep.mubr.msk.f32.mxu1 %vm5546_vm1, %v5545_v8  ;;  %v4672_v9 = vld [vmem:[%s6382_s6] ss:$0 sm:$0xff]  ;;  %s5549_s22 = smov 88   ;;  %vm220_vm2 = vcmask 64512   ;;  %s5550_s1 = smov 56  }
  0x5d   :  { %5196 = vmatprep.subr.bf16.mxu0 %v5195_v3  ;;  %v5775_v18 = vld [vmem:[#allocation7] sm:$0xff]  ;;  %s5551_s30 = smov 64   ;;  %s5552_s23 = smov 80   ;;  %v5794_v38 = vld [vmem:[%s6381_s5 + $0x8] sm:$0xff]  ;;  %vm4496_vm3 = vcmask 523264  }
  0x5e   :  { %5198 = vmatpush3.bf16.msra.mxu0 %v5195_v3  ;;  %s5553_s27 = smov 112   ;;  %v5811_v47 = vld [vmem:[%s6381_s5] sm:$0xff]  ;;  %s5554_s17 = smov 72  }
  0x5f   :  { %5200 = vmatprep.subr.bf16.mxu0 %v5199_v6  ;;  %s5555_s18 = smov 104   ;;  %s5556_s0 = smov 48  }
  0x60   :  { %s5557_s19 = smov 40  }
  0x62   :  { %5202 = vmatpush3.bf16.msra.mxu0 %v5199_v6 }
  0x63   :  { %4903 = vmatprep.subr.mxu0 %v5545_v8 }
  0x65   :  { %4901 = vmatmul.mubr.msk.f32.vlgmr.msra.gmra.mrb[0].mxu0 %vm134_vm0, %v5741_v7 }
  0x66   :  { %4905 = vmatprep.mubr.msk.f32.mxu0 %vm5546_vm1, %v5545_v8 }
 0x138   :  { %v4902_v10 = vpop.f32.mrb[0].mxu0 }
 0x139   :  { %v5754_v11 = vadd.f32 %v4902_v10, %v4672_v9  ;;  %v207_v12 = vpop.f32.mrb[1].mxu0 }
 0x13a   :  { %v5756_v13 = vadd.f32 %v4672_v9, %v207_v12 }
 0x13c   :  { %385 = vrot.lane.b32.xlu1 %v5756_v13, %s5547_s3  ;;  %218 = vrot.lane.b32.xlu0 %v5756_v13, %s5548_s16 }
 0x140   :  { %387 = vrot.lane.b32.xlu0 %v5756_v13, %s5549_s22 }
 0x1ae   :  { %v219_v14 = vpop.permute.xlu0 %218  ;;  %v386_v16 = vpop.permute.xlu1 %385 }
 0x1af   :  { %4904 = vmatpush3.xpose.msk.msra.mxu0 %vm220_vm2, %v219_v14 }
 0x1b0   :  { %4913 = vmatprep.subr.mxu0 %v5545_v8 }
 0x1b2   :  { %4906 = vmatmul.mubr.msk.f32.vlgmr.msra.gmra.mrb[2].mxu0 %vm220_vm2, %v5756_v13  ;;  %v388_v15 = vpop.permute.xlu0 %387 }
 0x1b3   :  { %4914 = vmatpush3.xpose.msk.msra.mxu0 %vm220_vm2, %v388_v15  ;;  %4915 = vmatprep.mubr.msk.f32.mxu0 %vm5546_vm1, %v5545_v8 }
 0x1b4   :  { %4923 = vmatprep.subr.mxu0 %v5545_v8 }
 0x1b6   :  { %4916 = vmatmul.mubr.msk.f32.vlgmr.msra.gmra.mrb[4].mxu0 %vm220_vm2, %v386_v16  ;;  %v5852_v16 = vld [vmem:[%s6381_s5 + $0x10] sm:$0xff] }
 0x1b7   :  { %4925 = vmatprep.mubr.msk.f32.mxu0 %vm5546_vm1, %v5545_v8  ;;  %4924 = vmatpush3.msra.mxu0 %v5794_v38 }
 0x1b8   :  { %4933 = vmatprep.subr.mxu0 %v5545_v8 }
 0x285   :  { %v291_v17 = vpop.f32.mrb[2].mxu0 }
 0x286   :  { %v295_v19 = vmul.f32 0.35355338, %v291_v17  ;;  %v4907_v20 = vpop.f32.mrb[3].mxu0 }
 0x288   :  { %v296_v21 = vadd.f32 %v295_v19, %v5775_v18 }
 0x289   :  { %v459_v22 = vpop.f32.mrb[4].mxu0 }
 0x28a   :  { %v463_v23 = vmul.f32 0.35355338, %v459_v22  ;;  %v4917_v24 = vpop.f32.mrb[5].mxu0  ;;  %v297_v25 = vsel %vm220_vm2, %v296_v21, -inf }
 0x28b   :  { %298 = vmax.xlane.f32.xlu1 %v297_v25 }
 0x28c   :  { %v464_v26 = vadd.f32 %v463_v23, %v5775_v18 }
 0x28e   :  { %v465_v27 = vsel %vm220_vm2, %v464_v26, -inf }
 0x28f   :  { %466 = vmax.xlane.f32.xlu0 %v465_v27 }
 0x318   :  { %v299_v28 = vpop.xlane.xlu1 %298 }
 0x319   :  { %v300_v29 = vsub.f32 %v296_v21, %v299_v28 }
 0x31b   :  { %v301_v30 = vmul.f32 1.442695, %v300_v29 }
 0x31c   :  { %v467_v31 = vpop.xlane.xlu0 %466 }
 0x31d   :  { %5276 = vpow2.f32 %v301_v30  ;;  %v468_v32 = vsub.f32 %v464_v26, %v467_v31 }
 0x31f   :  { %v469_v33 = vmul.f32 1.442695, %v468_v32 }
 0x321   :  { %5278 = vpow2.f32 %v469_v33 }
 0x327   :  { %v5277_v34 = vpop.eup %5276 }
 0x328   :  { %v303_v35 = vsel %vm220_vm2, %v5277_v34, 0.0 }
 0x329   :  { %304 = vadd.xlane.f32.xlu0 %v303_v35 }
 0x32b   :  { %v5279_v36 = vpop.eup %5278 }
 0x32c   :  { %v471_v37 = vsel %vm220_vm2, %v5279_v36, 0.0 }
 0x32d   :  { %472 = vadd.xlane.f32.xlu1 %v471_v37 }
 0x33e   :  { %478 = vrot.lane.b32.xlu1 %v5756_v13, %s5550_s1 }
 0x33f   :  { %309 = vrot.lane.b32.xlu0 %v5756_v13, %s5551_s30 }
 0x342   :  { %702 = vrot.lane.b32.xlu1 %v5756_v13, %s5552_s23 }
 0x343   :  { %700 = vrot.lane.b32.xlu0 %v5756_v13, %s5553_s27 }
 0x3b6   :  { %v305_v39 = vpop.xlane.xlu0 %304 }
 0x3b7   :  { %5280 = vrcp.f32 %v305_v39  ;;  %v5892_v39 = vld [vmem:[%s6381_s5 + $0x18] sm:$0xff] }
 0x3ba   :  { %v473_v40 = vpop.xlane.xlu1 %472  ;;  %v310_v41 = vpop.permute.xlu0 %309 }
 0x3bb   :  { %5282 = vrcp.f32 %v473_v40  ;;  %4909 = vmatpush3.msra.mxu1 %v310_v41 }
 0x3bc   :  { %4918 = vmatprep.subr.mxu1 %v5545_v8 }
 0x3be   :  { %v479_v44 = vpop.permute.xlu1 %478  ;;  %v701_v53 = vpop.permute.xlu0 %700 }
 0x3c1   :  { %v5281_v42 = vpop.eup %5280 }
 0x3c2   :  { %v307_v43 = vmul.f32 %v5281_v42, %v5277_v34  ;;  %v703_v51 = vpop.permute.xlu1 %702  ;;  %v5899_v42 = vld [vmem:[#allocation7 + $0x8] sm:$0xff] }
 0x3c4   :  { %308 = vst.msk [vmem:[#allocation12] sm:$0xff] %vm220_vm2, %v307_v43  ;;  %4911 = vmatmul.mubr.msk.f32.vlgmr.msra.gmra.mrb[0].mxu1 %vm220_vm2, %v307_v43 }
 0x3c5   :  { %v5283_v45 = vpop.eup %5282  ;;  %4919 = vmatpush3.msra.mxu1 %v479_v44  ;;  %4920 = vmatprep.mubr.msk.f32.mxu1 %vm5546_vm1, %v5545_v8 }
 0x3c6   :  { %v475_v46 = vmul.f32 %v5283_v45, %v5279_v36  ;;  %4928 = vmatprep.subr.mxu1 %v5545_v8 }
 0x3c8   :  { %477 = vst.msk [vmem:[#allocation12 + $0x8] sm:$0xff] %vm220_vm2, %v475_v46  ;;  %4921 = vmatmul.mubr.msk.f32.vlgmr.msra.gmra.mrb[2].mxu1 %vm220_vm2, %v475_v46 }
 0x3c9   :  { %4930 = vmatprep.mubr.msk.f32.mxu1 %vm5546_vm1, %v5545_v8  ;;  %4929 = vmatpush3.msra.mxu1 %v5811_v47 }
 0x3ca   :  { %4938 = vmatprep.subr.mxu1 %v5545_v8 }
 0x497   :  { %v381_v48 = vpop.f32.mrb[0].mxu1 }
 0x498   :  { %v4912_v49 = vpop.f32.mrb[1].mxu1  ;;  %4931 = vmatmul.mubr.msk.f32.vlgmr.msra.gmra.mrb[4].mxu1 %vm220_vm2, %v381_v48 }
 0x499   :  { %4940 = vmatprep.mubr.msk.f32.mxu1 %vm5546_vm1, %v5545_v8 }
 0x49b   :  { %v550_v50 = vpop.f32.mrb[2].mxu1 }
 0x49c   :  { %v4922_v52 = vpop.f32.mrb[3].mxu1  ;;  %4926 = vmatmul.mubr.msk.f32.vlgmr.msra.gmra.mrb[6].mxu0 %vm220_vm2, %v550_v50 }
 0x49d   :  { %4934 = vmatpush3.xpose.msk.msra.mxu0 %vm220_vm2, %v703_v51  ;;  %4935 = vmatprep.mubr.msk.f32.mxu0 %vm5546_vm1, %v5545_v8 }
 0x49e   :  { %4943 = vmatprep.subr.mxu0 %v5545_v8 }
 0x4a0   :  { %4936 = vmatmul.mubr.msk.f32.vlgmr.msra.gmra.mrb[8].mxu0 %vm220_vm2, %v701_v53 }
 0x4a1   :  { %4945 = vmatprep.mubr.msk.f32.mxu0 %vm5546_vm1, %v5545_v8  ;;  %4944 = vmatpush3.msra.mxu0 %v5852_v16 }
 0x4a2   :  { %4953 = vmatprep.subr.mxu0 %v5545_v8 }
 0x56b   :  { %v696_v54 = vpop.f32.mrb[4].mxu1 }
 0x56c   :  { %v4932_v55 = vpop.f32.mrb[5].mxu1 }
 0x56f   :  { %v623_v56 = vpop.f32.mrb[6].mxu0 }
 0x570   :  { %v5826_v57 = vadd.f32 %v696_v54, %v623_v56  ;;  %v4927_v58 = vpop.f32.mrb[7].mxu0 }
 0x573   :  { %v774_v59 = vpop.f32.mrb[8].mxu0 }
 0x574   :  { %v778_v60 = vmul.f32 0.35355338, %v774_v59  ;;  %v4937_v61 = vpop.f32.mrb[9].mxu0 }
 0x576   :  { %v779_v62 = vadd.f32 %v778_v60, %v5775_v18 }
 0x578   :  { %v780_v63 = vsel %vm220_vm2, %v779_v62, -inf }
 0x579   :  { %781 = vmax.xlane.f32.xlu1 %v780_v63 }
 0x58a   :  { %945 = vrot.lane.b32.xlu1 %v5756_v13, %s5554_s17 }
 0x58e   :  { %943 = vrot.lane.b32.xlu1 %v5756_v13, %s5555_s18 }
 0x592   :  { %1219 = vrot.lane.b32.xlu1 %v5754_v11, %s5548_s16 }
 0x606   :  { %v782_v0 = vpop.xlane.xlu1 %781 }
 0x607   :  { %v783_v1 = vsub.f32 %v779_v62, %v782_v0 }
 0x609   :  { %v784_v2 = vmul.f32 1.442695, %v783_v1 }
 0x60a   :  { %v946_v12 = vpop.permute.xlu1 %945 }
 0x60b   :  { %5284 = vpow2.f32 %v784_v2 }
 0x60e   :  { %v944_v15 = vpop.permute.xlu1 %943 }
 0x612   :  { %v1220_v32 = vpop.permute.xlu1 %1219 }
 0x615   :  { %v5285_v3 = vpop.eup %5284 }
 0x616   :  { %v786_v4 = vsel %vm220_vm2, %v5285_v3, 0.0 }
 0x617   :  { %787 = vadd.xlane.f32.xlu0 %v786_v4 }
 0x62d   :  { %793 = vrot.lane.b32.xlu0 %v5756_v13, %s5556_s0 }
 0x6a4   :  { %v788_v6 = vpop.xlane.xlu0 %787 }
 0x6a5   :  { %5286 = vrcp.f32 %v788_v6 }
 0x6a8   :  { %v794_v9 = vpop.permute.xlu0 %793 }
 0x6a9   :  { %4939 = vmatpush3.msra.mxu1 %v794_v9 }
 0x6aa   :  { %4948 = vmatprep.subr.mxu1 %v5545_v8 }
 0x6af   :  { %v5287_v10 = vpop.eup %5286 }
 0x6b0   :  { %v790_v14 = vmul.f32 %v5287_v10, %v5285_v3 }
 0x6b2   :  { %792 = vst.msk [vmem:[#allocation12 + $0x10] sm:$0xff] %vm220_vm2, %v790_v14  ;;  %4941 = vmatmul.mubr.msk.f32.vlgmr.msra.gmra.mrb[6].mxu1 %vm220_vm2, %v790_v14 }
 0x6b3   :  { %4949 = vmatpush3.xpose.msk.msra.mxu1 %vm220_vm2, %v946_v12  ;;  %4950 = vmatprep.mubr.msk.f32.mxu1 %vm5546_vm1, %v5545_v8 }
 0x6b4   :  { %4958 = vmatprep.subr.mxu1 %v5545_v8 }
 0x6b6   :  { %4951 = vmatmul.mubr.msk.f32.vlgmr.msra.gmra.mrb[8].mxu1 %vm220_vm2, %v944_v15 }
 0x6b7   :  { %4960 = vmatprep.mubr.msk.f32.mxu1 %vm5546_vm1, %v5545_v8  ;;  %4959 = vmatpush3.msra.mxu1 %v5892_v39 }
 0x6b8   :  { %4968 = vmatprep.subr.mxu1 %v5545_v8 }
 0x785   :  { %v865_v17 = vpop.f32.mrb[6].mxu1 }
 0x786   :  { %v4942_v19 = vpop.f32.mrb[7].mxu1  ;;  %4946 = vmatmul.mubr.msk.f32.vlgmr.msra.gmra.mrb[10].mxu0 %vm220_vm2, %v865_v17 }
 0x787   :  { %4955 = vmatprep.mubr.msk.f32.mxu0 %vm5546_vm1, %v5545_v8 }
 0x789   :  { %v1017_v20 = vpop.f32.mrb[8].mxu1 }
 0x78a   :  { %v1021_v21 = vmul.f32 0.35355338, %v1017_v20  ;;  %v4952_v22 = vpop.f32.mrb[9].mxu1 }
 0x78c   :  { %v1022_v23 = vadd.f32 %v1021_v21, %v5775_v18 }
 0x78e   :  { %v1023_v24 = vsel %vm220_vm2, %v1022_v23, -inf }
 0x78f   :  { %1024 = vmax.xlane.f32.xlu0 %v1023_v24 }
 0x7a5   :  { %1036 = vrot.lane.b32.xlu0 %v5756_v13, %s5557_s19 }
 0x7a9   :  { %1388 = vrot.lane.b32.xlu0 %v5754_v11, %s5549_s22 }
 0x81c   :  { %v1025_v25 = vpop.xlane.xlu0 %1024 }
 0x81d   :  { %v1026_v26 = vsub.f32 %v1022_v23, %v1025_v25 }
 0x81f   :  { %v1027_v27 = vmul.f32 1.442695, %v1026_v26 }
 0x820   :  { %v1037_v28 = vpop.permute.xlu0 %1036 }
 0x821   :  { %5288 = vpow2.f32 %v1027_v27  ;;  %4954 = vmatpush3.msra.mxu0 %v1037_v28 }
 0x822   :  { %4963 = vmatprep.subr.mxu0 %v5545_v8 }
 0x824   :  { %v1389_v36 = vpop.permute.xlu0 %1388 }
 0x82b   :  { %v5289_v29 = vpop.eup %5288 }
 0x82c   :  { %v1029_v18 = vsel %vm220_vm2, %v5289_v29, 0.0 }
 0x82d   :  { %1030 = vadd.xlane.f32.xlu1 %v1029_v18 }
 0x83e   :  { %1386 = vrot.lane.b32.xlu1 %v5754_v11, %s5547_s3 }
 0x859   :  { %v938_v30 = vpop.f32.mrb[10].mxu0 }
 0x85a   :  { %v5870_v13 = vadd.f32 %v938_v30, %v5826_v57  ;;  %v4947_v31 = vpop.f32.mrb[11].mxu0 }
 0x8ba   :  { %v1031_v33 = vpop.xlane.xlu1 %1030 }
 0x8bb   :  { %5290 = vrcp.f32 %v1031_v33 }
 0x8be   :  { %v1387_v37 = vpop.permute.xlu1 %1386 }
 0x8c5   :  { %v5291_v34 = vpop.eup %5290 }
 0x8c6   :  { %v1033_v35 = vmul.f32 %v5291_v34, %v5289_v29 }
 0x8c8   :  { %1035 = vst.msk [vmem:[#allocation12 + $0x18] sm:$0xff] %vm220_vm2, %v1033_v35  ;;  %4956 = vmatmul.mubr.msk.f32.vlgmr.msra.gmra.mrb[12].mxu0 %vm220_vm2, %v1033_v35 }
 0x8c9   :  { %4964 = vmatpush3.xpose.msk.msra.mxu0 %vm220_vm2, %v1220_v32  ;;  %4965 = vmatprep.mubr.msk.f32.mxu0 %vm5546_vm1, %v5545_v8 }
 0x8ca   :  { %4973 = vmatprep.subr.mxu0 %v5545_v8 }
 0x8cc   :  { %4966 = vmatmul.mubr.msk.f32.vlgmr.msra.gmra.mrb[14].mxu0 %vm220_vm2, %v5754_v11 }
 0x8cd   :  { %4974 = vmatpush3.xpose.msk.msra.mxu0 %vm220_vm2, %v1389_v36  ;;  %4975 = vmatprep.mubr.msk.f32.mxu0 %vm5546_vm1, %v5545_v8 }
 0x8ce   :  { %4983 = vmatprep.subr.mxu0 %v5545_v8 }
 0x8d0   :  { %4976 = vmatmul.mubr.msk.f32.vlgmr.msra.gmra.mrb[16].mxu0 %vm220_vm2, %v1387_v37 }
 0x8d1   :  { %4984 = vmatpush3.msra.mxu0 %v5794_v38  ;;  %4985 = vmatprep.mubr.msk.f32.mxu0 %vm5546_vm1, %v5545_v8 }
 0x8d2   :  { %4993 = vmatprep.subr.mxu0 %v5545_v8 }
 0x99b   :  { %v1108_v40 = vpop.f32.mrb[12].mxu0 }
 0x99c   :  { %v4957_v41 = vpop.f32.mrb[13].mxu0  ;;  %4961 = vmatmul.mubr.msk.f32.vlgmr.msra.gmra.mrb[10].mxu1 %vm220_vm2, %v1108_v40 }
 0x99d   :  { %4970 = vmatprep.mubr.msk.f32.mxu1 %vm5546_vm1, %v5545_v8 }
 0x99f   :  { %v1291_v38 = vpop.f32.mrb[14].mxu0 }
 0x9a0   :  { %v1295_v43 = vmul.f32 0.35355338, %v1291_v38  ;;  %v4967_v44 = vpop.f32.mrb[15].mxu0  ;;  %v1186_v38 = vlaneseq }
 0x9a2   :  { %v1296_v45 = vadd.f32 %v1295_v43, %v5899_v42  ;;  %v5965_v43 = vshrl.u32 %v1186_v38, 7  ;;  %v116_v38 = vld [vmem:[#allocation5] sm:$0xff] }
 0x9a3   :  { %v1460_v46 = vpop.f32.mrb[16].mxu0 }
 0x9a4   :  { %v1464_v48 = vmul.f32 0.35355338, %v1460_v46  ;;  %v4977_v49 = vpop.f32.mrb[17].mxu0  ;;  %v1297_v50 = vsel %vm220_vm2, %v1296_v45, -inf  ;;  %v1188_v44 = vsub.s32 0, %v5965_v43 }
 0x9a5   :  { %1298 = vmax.xlane.f32.xlu0 %v1297_v50 }
 0x9a6   :  { %v1465_v51 = vadd.f32 %v1464_v48, %v5899_v42 }
 0x9a8   :  { %v1466_v52 = vsel %vm220_vm2, %v1465_v51, -inf }
 0x9a9   :  { %1467 = vmax.xlane.f32.xlu1 %v1466_v52 }
 0x9ba   :  { %1310 = vrot.lane.b32.xlu1 %v5754_v11, %s5551_s30 }
 0x9be   :  { %1703 = vrot.lane.b32.xlu1 %v5754_v11, %s5552_s23 }
 0x9c2   :  { %1701 = vrot.lane.b32.xlu1 %v5754_v11, %s5553_s27 }
 0xa32   :  { %v1299_v53 = vpop.xlane.xlu0 %1298 }
 0xa33   :  { %v1300_v54 = vsub.f32 %v1296_v45, %v1299_v53  ;;  %v5971_v45 = vld [vmem:[%s6383_s7] sm:$0x7] }
 0xa34   :  { %v1189_v48 = vrot.slane %v5971_v45, %v1188_v44 }
 0xa35   :  { %v1301_v55 = vmul.f32 1.442695, %v1300_v54 }
 0xa36   :  { %v1468_v56 = vpop.xlane.xlu1 %1467 }
 0xa37   :  { %5292 = vpow2.f32 %v1301_v55  ;;  %v1469_v57 = vsub.f32 %v1465_v51, %v1468_v56 }
 0xa39   :  { %v1470_v58 = vmul.f32 1.442695, %v1469_v57 }
 0xa3a   :  { %v1311_v59 = vpop.permute.xlu1 %1310 }
 0xa3b   :  { %5294 = vpow2.f32 %v1470_v58  ;;  %4969 = vmatpush3.msra.mxu1 %v1311_v59 }
 0xa3c   :  { %4978 = vmatprep.subr.mxu1 %v5545_v8 }
 0xa3e   :  { %v1704_v19 = vpop.permute.xlu1 %1703 }
 0xa41   :  { %v5293_v60 = vpop.eup %5292 }
 0xa42   :  { %v1303_v61 = vsel %vm220_vm2, %v5293_v60, 0.0 }
 0xa43   :  { %1304 = vadd.xlane.f32.xlu0 %v1303_v61 }
 0xa45   :  { %v5295_v62 = vpop.eup %5294 }
 0xa46   :  { %v1472_v63 = vsel %vm220_vm2, %v5295_v62, 0.0 }
 0xa47   :  { %1473 = vadd.xlane.f32.xlu0 %v1472_v63 }
 0xa5d   :  { %1479 = vrot.lane.b32.xlu0 %v5754_v11, %s5550_s1 }
 0xa6f   :  { %v1181_v0 = vpop.f32.mrb[10].mxu1 }
 0xa70   :  { %v5917_v1 = vadd.f32 %v1181_v0, %v5870_v13  ;;  %v4962_v2 = vpop.f32.mrb[11].mxu1 }
 0xa72   :  { %v1190_v50 = vadd.f32 %v1189_v48, %v5917_v1 }
 0xa74   :  { %v1191_v55 = vadd.f32 %v1190_v50, %v5737_v5 }
 0xa76   :  { %v1192_v56 = vsel %vm134_vm0, %v1191_v55, 0.0 }
 0xad0   :  { %v1305_v3 = vpop.xlane.xlu0 %1304 }
 0xad1   :  { %5296 = vrcp.f32 %v1305_v3 }
 0xad4   :  { %v1474_v4 = vpop.xlane.xlu0 %1473 }
 0xad5   :  { %5298 = vrcp.f32 %v1474_v4 }
 0xad8   :  { %v1480_v10 = vpop.permute.xlu0 %1479 }
 0xadb   :  { %v5297_v6 = vpop.eup %5296 }
 0xadc   :  { %v1307_v9 = vmul.f32 %v5297_v6, %v5293_v60 }
 0xade   :  { %1309 = vst.msk [vmem:[#allocation12 + $0x20] sm:$0xff] %vm220_vm2, %v1307_v9  ;;  %4971 = vmatmul.mubr.msk.f32.vlgmr.msra.gmra.mrb[12].mxu1 %vm220_vm2, %v1307_v9 }
 0xadf   :  { %v5299_v12 = vpop.eup %5298  ;;  %4979 = vmatpush3.msra.mxu1 %v1480_v10  ;;  %4980 = vmatprep.mubr.msk.f32.mxu1 %vm5546_vm1, %v5545_v8 }
 0xae0   :  { %v1476_v14 = vmul.f32 %v5299_v12, %v5295_v62  ;;  %4988 = vmatprep.subr.mxu1 %v5545_v8 }
 0xae2   :  { %1478 = vst.msk [vmem:[#allocation12 + $0x28] sm:$0xff] %vm220_vm2, %v1476_v14  ;;  %4981 = vmatmul.mubr.msk.f32.vlgmr.msra.gmra.mrb[14].mxu1 %vm220_vm2, %v1476_v14 }
 0xae3   :  { %4989 = vmatpush3.msra.mxu1 %v5811_v47  ;;  %4990 = vmatprep.mubr.msk.f32.mxu1 %vm5546_vm1, %v5545_v8  ;;  %v1702_v47 = vpop.permute.xlu1 %1701 }
 0xae4   :  { %4998 = vmatprep.subr.mxu1 %v5545_v8 }
 0xbb1   :  { %v1382_v15 = vpop.f32.mrb[12].mxu1 }
 0xbb2   :  { %v4972_v17 = vpop.f32.mrb[13].mxu1  ;;  %4991 = vmatmul.mubr.msk.f32.vlgmr.msra.gmra.mrb[16].mxu1 %vm220_vm2, %v1382_v15 }
 0xbb3   :  { %5000 = vmatprep.mubr.msk.f32.mxu1 %vm5546_vm1, %v5545_v8 }
 0xbb5   :  { %v1551_v20 = vpop.f32.mrb[14].mxu1 }
 0xbb6   :  { %v4982_v21 = vpop.f32.mrb[15].mxu1  ;;  %4986 = vmatmul.mubr.msk.f32.vlgmr.msra.gmra.mrb[18].mxu0 %vm220_vm2, %v1551_v20 }
 0xbb7   :  { %4994 = vmatpush3.xpose.msk.msra.mxu0 %vm220_vm2, %v1704_v19  ;;  %4995 = vmatprep.mubr.msk.f32.mxu0 %vm5546_vm1, %v5545_v8 }
 0xbb8   :  { %5003 = vmatprep.subr.mxu0 %v5545_v8 }
 0xbba   :  { %4996 = vmatmul.mubr.msk.f32.vlgmr.msra.gmra.mrb[20].mxu0 %vm220_vm2, %v1702_v47  ;;  %v4709_v47 = vld [vmem:[%s6380_s4 + $0x30] sm:$0xff] }
 0xbbb   :  { %5004 = vmatpush3.msra.mxu0 %v5852_v16  ;;  %5005 = vmatprep.mubr.msk.f32.mxu0 %vm5546_vm1, %v5545_v8 }
 0xbbc   :  { %5013 = vmatprep.subr.mxu0 %v5545_v8 }
 0xc85   :  { %v1697_v22 = vpop.f32.mrb[16].mxu1 }
 0xc86   :  { %v4992_v23 = vpop.f32.mrb[17].mxu1 }
 0xc89   :  { %v1624_v24 = vpop.f32.mrb[18].mxu0 }
 0xc8a   :  { %v5943_v25 = vadd.f32 %v1697_v22, %v1624_v24  ;;  %v4987_v26 = vpop.f32.mrb[19].mxu0  ;;  %v4710_v22 = vld [vmem:[%s6380_s4 + $0x38] sm:$0xff] }
 0xc8b   :  { %v5271_v23 = vpack.i.bf16 %v4710_v22, %v4709_v47 }
 0xc8d   :  { %v1775_v27 = vpop.f32.mrb[20].mxu0 }
 0xc8e   :  { %v1779_v28 = vmul.f32 0.35355338, %v1775_v27  ;;  %v4997_v29 = vpop.f32.mrb[21].mxu0 }
 0xc90   :  { %v1780_v18 = vadd.f32 %v1779_v28, %v5899_v42 }
 0xc92   :  { %v1781_v30 = vsel %vm220_vm2, %v1780_v18, -inf }
 0xc93   :  { %1782 = vmax.xlane.f32.xlu0 %v1781_v30  ;;  %v1208_v30 = vsub.s32 1, %v5965_v43 }
 0xca9   :  { %1794 = vrot.lane.b32.xlu0 %v5754_v11, %s5556_s0 }
 0xcad   :  { %1944 = vrot.lane.b32.xlu0 %v5754_v11, %s5555_s18 }
 0xd20   :  { %v1783_v16 = vpop.xlane.xlu0 %1782 }
 0xd21   :  { %v1784_v13 = vsub.f32 %v1780_v18, %v1783_v16  ;;  %v1213_v16 = vsub.s32 2, %v5965_v43  ;;  %v4483_v43 = vld [vmem:[%s6385_s9] sm:$0xff] }
 0xd23   :  { %v1785_v31 = vmul.f32 1.442695, %v1784_v13  ;;  %v1209_v13 = vrot.slane %v5971_v45, %v1208_v30 }
 0xd24   :  { %v1795_v32 = vpop.permute.xlu0 %1794 }
 0xd25   :  { %5300 = vpow2.f32 %v1785_v31  ;;  %4999 = vmatpush3.msra.mxu1 %v1795_v32  ;;  %v4707_v31 = vld [vmem:[%s6380_s4 + $0x20] sm:$0xff]  ;;  %v4708_v32 = vld [vmem:[%s6380_s4 + $0x28] sm:$0xff] }
 0xd26   :  { %5008 = vmatprep.subr.mxu1 %v5545_v8 }
 0xd28   :  { %v1945_v41 = vpop.permute.xlu0 %1944 }
 0xd2f   :  { %v5301_v33 = vpop.eup %5300 }
 0xd30   :  { %v1787_v34 = vsel %vm220_vm2, %v5301_v33, 0.0 }
 0xd31   :  { %1788 = vadd.xlane.f32.xlu1 %v1787_v34  ;;  %v1214_v34 = vrot.slane %v5971_v45, %v1213_v16  ;;  %v6026_v45 = vld [vmem:[%s6382_s6 + $0x1] ss:$0 sm:$0xff] }
 0xd42   :  { %1946 = vrot.lane.b32.xlu1 %v5754_v11, %s5554_s17 }
 0xdbe   :  { %v1789_v35 = vpop.xlane.xlu1 %1788 }
 0xdbf   :  { %5302 = vrcp.f32 %v1789_v35 }
 0xdc2   :  { %v1947_v40 = vpop.permute.xlu1 %1946 }
 0xdc9   :  { %v5303_v36 = vpop.eup %5302 }
 0xdca   :  { %v1791_v37 = vmul.f32 %v5303_v36, %v5301_v33  ;;  %v5266_v36 = vpack.i.bf16 %v4708_v32, %v4707_v31 }
 0xdcc   :  { %1793 = vst.msk [vmem:[#allocation12 + $0x30] sm:$0xff] %vm220_vm2, %v1791_v37  ;;  %5001 = vmatmul.mubr.msk.f32.vlgmr.msra.gmra.mrb[18].mxu1 %vm220_vm2, %v1791_v37 }
 0xdcd   :  { %5009 = vmatpush3.xpose.msk.msra.mxu1 %vm220_vm2, %v1947_v40  ;;  %5010 = vmatprep.mubr.msk.f32.mxu1 %vm5546_vm1, %v5545_v8 }
 0xdce   :  { %5018 = vmatprep.subr.mxu1 %v5545_v8 }
 0xdd0   :  { %5011 = vmatmul.mubr.msk.f32.vlgmr.msra.gmra.mrb[20].mxu1 %vm220_vm2, %v1945_v41  ;;  %v5203_v41 = vpack.c.bf16 %v4708_v32, %v4707_v31 }
 0xdd1   :  { %5019 = vmatpush3.msra.mxu1 %v5892_v39  ;;  %5020 = vmatprep.mubr.msk.f32.mxu1 %vm5546_vm1, %v5545_v8 }
 0xe9f   :  { %v1866_v46 = vpop.f32.mrb[18].mxu1 }
 0xea0   :  { %v5002_v49 = vpop.f32.mrb[19].mxu1  ;;  %5006 = vmatmul.mubr.msk.f32.vlgmr.msra.gmra.mrb[22].mxu0 %vm220_vm2, %v1866_v46  ;;  %v5207_v46 = vpack.c.bf16 %v4710_v22, %v4709_v47 }
 0xea1   :  { %5015 = vmatprep.mubr.msk.f32.mxu0 %vm5546_vm1, %v5545_v8 }
 0xea3   :  { %v2018_v39 = vpop.f32.mrb[20].mxu1 }
 0xea4   :  { %v2022_v51 = vmul.f32 0.35355338, %v2018_v39  ;;  %v5012_v52 = vpop.f32.mrb[21].mxu1 }
 0xea6   :  { %v2023_v53 = vadd.f32 %v2022_v51, %v5899_v42 }
 0xea8   :  { %v2024_v54 = vsel %vm220_vm2, %v2023_v53, -inf }
 0xea9   :  { %2025 = vmax.xlane.f32.xlu1 %v2024_v54 }
 0xead   :  { %1193 = vadd.xlane.f32.xlu1 %v1192_v56 }
 0xf36   :  { %v2026_v57 = vpop.xlane.xlu1 %2025 }
 0xf37   :  { %v2027_v58 = vsub.f32 %v2023_v53, %v2026_v57 }
 0xf39   :  { %v2028_v59 = vmul.f32 1.442695, %v2027_v58  ;;  %v117_v58 = vld [vmem:[#allocation5 + $0x8] sm:$0xff] }
 0xf3a   :  { %v1194_v6 = vpop.xlane.xlu1 %1193 }
 0xf3b   :  { %5304 = vpow2.f32 %v2028_v59 }
 0xf45   :  { %v5305_v60 = vpop.eup %5304 }
 0xf46   :  { %v2030_v61 = vsel %vm220_vm2, %v5305_v60, 0.0 }
 0xf47   :  { %2031 = vadd.xlane.f32.xlu0 %v2030_v61 }
 0xf5d   :  { %2037 = vrot.lane.b32.xlu0 %v5754_v11, %s5557_s19  ;;  %v1196_v11 = vmul.f32 0.03125, %v1194_v6 }
 0xf5f   :  { %v1197_v14 = vsub.f32 %v1191_v55, %v1196_v11 }
 0xf61   :  { %v1198_v20 = vmul.f32 %v1197_v14, %v1197_v14  ;;  %5272 = vrot.lane.b32.xlu0 %v5271_v23, %s5548_s16 }
 0xf63   :  { %v1199_v21 = vsel %vm134_vm0, %v1198_v20, 0.0 }
 0xf65   :  { %2321 = vrot.lane.b32.xlu0 %v6026_v45, %s5548_s16 }
 0xf73   :  { %v1939_v42 = vpop.f32.mrb[22].mxu0 }
 0xf74   :  { %v1943_v62 = vadd.f32 %v1939_v42, %v5943_v25  ;;  %v5007_v63 = vpop.f32.mrb[23].mxu0 }
 0xfd4   :  { %v2032_v5 = vpop.xlane.xlu0 %2031 }
 0xfd5   :  { %5306 = vrcp.f32 %v2032_v5 }
 0xfd8   :  { %v2038_v0 = vpop.permute.xlu0 %2037 }
 0xfd9   :  { %5014 = vmatpush3.msra.mxu0 %v2038_v0 }
 0xfda   :  { %5204 = vmatprep.subr.bf16.mxu0 %v5203_v41 }
 0xfdc   :  { %v5273_v49 = vpop.permute.xlu0 %5272 }
 0xfdd   :  { %v5275_v51 = vunpack.i.h.bf16 %v5273_v49  ;;  %v5274_v52 = vunpack.i.l.bf16 %v5273_v49 }
 0xfdf   :  { %v5307_v1 = vpop.eup %5306  ;;  %v5215_v57 = vpack.c.bf16 %v5275_v51, %v5274_v52 }
 0xfe0   :  { %v2034_v2 = vmul.f32 %v5307_v1, %v5305_v60 }
 0xfe2   :  { %2036 = vst.msk [vmem:[#allocation12 + $0x38] sm:$0xff] %vm220_vm2, %v2034_v2  ;;  %5016 = vmatmul.mubr.msk.f32.vlgmr.msra.gmra.mrb[24].mxu0 %vm220_vm2, %v2034_v2 }
 0xfe3   :  { %5206 = vmatpush3.bf16.msra.mxu0 %v5203_v41 }
 0xfe4   :  { %5208 = vmatprep.subr.bf16.mxu0 %v5207_v46 }
 0xfe7   :  { %5210 = vmatpush3.bf16.msra.mxu0 %v5207_v46 }
 0xfe8   :  { %5045 = vmatprep.subr.mxu0 %v5545_v8 }
0x10b5   :  { %v2109_v3 = vpop.f32.mrb[24].mxu0 }
0x10b6   :  { %v5017_v4 = vpop.f32.mrb[25].mxu0  ;;  %5021 = vmatmul.mubr.msk.f32.vlgmr.msra.gmra.mrb[22].mxu1 %vm220_vm2, %v2109_v3 }
0x10b7   :  { %5042 = vmatprep.mubr.msk.f32.mxu1 %vm134_vm0, %v116_v38  ;;  %v6100_v38 = vld [vmem:[%s6381_s5 + $0x20] sm:$0xff] }
0x1189   :  { %v2182_v9 = vpop.f32.mrb[22].mxu1 }
0x118a   :  { %v2186_v10 = vadd.f32 %v2182_v9, %v1943_v62  ;;  %v5022_v12 = vpop.f32.mrb[23].mxu1  ;;  %v6040_v62 = vpop.permute.xlu0 %2321  ;;  %v6068_v9 = vld [vmem:[#allocation8] sm:$0xff] }
0x118c   :  { %v2187_v15 = vadd.f32 %v2186_v10, %v1189_v48 }
0x118e   :  { %v2188_v17 = vadd.f32 %v2187_v15, %v5741_v7 }
0x1190   :  { %v2189_v19 = vsel %vm134_vm0, %v2188_v17, 0.0 }
0x1191   :  { %2190 = vadd.xlane.f32.xlu1 %v2189_v19 }
0x1195   :  { %1200 = vadd.xlane.f32.xlu1 %v1199_v21 }
0x121e   :  { %v2191_v24 = vpop.xlane.xlu1 %2190 }
0x121f   :  { %v2192_v7 = vmul.f32 0.03125, %v2191_v24 }
0x1221   :  { %v2193_v25 = vsub.f32 %v2188_v17, %v2192_v7 }
0x1222   :  { %v1201_v26 = vpop.xlane.xlu1 %1200 }
0x1223   :  { %v1202_v27 = vmul.f32 0.03125, %v1201_v26  ;;  %v2194_v28 = vmul.f32 %v2193_v25, %v2193_v25 }
0x1225   :  { %v1203_v29 = vadd.f32 1e-05, %v1202_v27  ;;  %v2195_v18 = vsel %vm134_vm0, %v2194_v28, 0.0 }
0x1226   :  { %2196 = vadd.xlane.f32.xlu1 %v2195_v18 }
0x1227   :  { %5308 = vrsqrt.f32 %v1203_v29 }
0x1231   :  { %v5309_v33 = vpop.eup %5308 }
0x1232   :  { %v1205_v35 = vmul.f32 %v5309_v33, %v1197_v14 }
0x1234   :  { %v1210_v37 = vmul.f32 %v1209_v13, %v1205_v35 }
0x1236   :  { %v6016_v40 = vadd.f32 %v1214_v34, %v1210_v37 }
0x1237   :  { %5267 = vrot.lane.b32.xlu1 %v5266_v36, %s5548_s16 }
0x1238   :  { %5031 = vmatprep.mubr.msk.f32.mxu0 %vm134_vm0, %v6016_v40 }
0x12b3   :  { %v2197_v48 = vpop.xlane.xlu1 %2196 }
0x12b4   :  { %v2198_v39 = vmul.f32 0.03125, %v2197_v48 }
0x12b6   :  { %v2199_v50 = vadd.f32 1e-05, %v2198_v39 }
0x12b7   :  { %v5268_v53 = vpop.permute.xlu1 %5267 }
0x12b8   :  { %5310 = vrsqrt.f32 %v2199_v50  ;;  %v5270_v54 = vunpack.i.h.bf16 %v5268_v53  ;;  %v5269_v55 = vunpack.i.l.bf16 %v5268_v53 }
0x12ba   :  { %v5211_v56 = vpack.c.bf16 %v5270_v54, %v5269_v55 }
0x12bc   :  { %5212 = vmatprep.subr.bf16.mxu1 %v5211_v56 }
0x12bd   :  { %5214 = vmatpush3.bf16.msra.mxu1 %v5211_v56 }
0x12be   :  { %5216 = vmatprep.subr.bf16.mxu1 %v5215_v57 }
0x12c1   :  { %5218 = vmatpush3.bf16.msra.mxu1 %v5215_v57 }
0x12c2   :  { %v5311_v59 = vpop.eup %5310  ;;  %5050 = vmatprep.subr.mxu1 %v5545_v8 }
0x12c3   :  { %v2201_v60 = vmul.f32 %v5311_v59, %v2193_v25 }
0x12c4   :  { %5043 = vmatmul.mubr.msk.f32.vlgmr.msra.gmra.mrb[24].mxu1 %vm134_vm0, %v117_v58 }
0x12c5   :  { %v2202_v61 = vmul.f32 %v2201_v60, %v1209_v13  ;;  %5052 = vmatprep.mubr.msk.f32.mxu1 %vm5546_vm1, %v5545_v8 }
0x12c7   :  { %v6034_v42 = vadd.f32 %v2202_v61, %v1214_v34  ;;  %v6092_v34 = vld [vmem:[%s6381_s5 + $0x28] sm:$0xff] }
0x12c9   :  { %5032 = vmatmul.mubr.msk.f32.vlgmr.msra.gmra.mrb[26].mxu0 %vm134_vm0, %v6034_v42 }
0x12ca   :  { %5047 = vmatprep.mubr.msk.f32.mxu0 %vm5546_vm1, %v5545_v8 }
0x1397   :  { %v6042_v63 = vpop.f32.mrb[24].mxu1 }
0x1398   :  { %v2396_v5 = vpop.f32.mrb[25].mxu1 }
0x1399   :  { %v6045_v0 = vadd.f32 %v2396_v5, %v6040_v62 }
0x139b   :  { %2574 = vrot.lane.b32.xlu0 %v6045_v0, %s5547_s3  ;;  %5046 = vmatpush3.xpose.msk.msra.mxu0 %vm220_vm2, %v6045_v0 }
0x139c   :  { %v6051_v1 = vpop.f32.mrb[26].mxu0  ;;  %5055 = vmatprep.subr.mxu0 %v5545_v8 }
0x139d   :  { %v2296_v2 = vpop.f32.mrb[27].mxu0 }
0x139e   :  { %v6055_v3 = vadd.f32 %v6026_v45, %v2296_v2 }
0x13a0   :  { %2572 = vrot.lane.b32.xlu0 %v6055_v3, %s5547_s3  ;;  %5048 = vmatmul.mubr.msk.f32.vlgmr.msra.gmra.mrb[28].mxu0 %vm220_vm2, %v6055_v3 }
0x13a1   :  { %5057 = vmatprep.mubr.msk.f32.mxu0 %vm5546_vm1, %v5545_v8 }
0x140d   :  { %v2575_v4 = vpop.permute.xlu0 %2574 }
0x140e   :  { %5056 = vmatpush3.xpose.msk.msra.mxu0 %vm220_vm2, %v2575_v4 }
0x140f   :  { %5065 = vmatprep.subr.mxu0 %v5545_v8 }
0x1412   :  { %v2573_v6 = vpop.permute.xlu0 %2572 }
0x1413   :  { %5058 = vmatmul.mubr.msk.f32.vlgmr.msra.gmra.mrb[30].mxu0 %vm220_vm2, %v2573_v6 }
0x1414   :  { %5067 = vmatprep.mubr.msk.f32.mxu0 %vm5546_vm1, %v5545_v8  ;;  %5066 = vmatpush3.msra.mxu0 %v6092_v34 }
0x1415   :  { %5075 = vmatprep.subr.mxu0 %v5545_v8 }
0x1473   :  { %v2478_v11 = vpop.f32.mrb[28].mxu0 }
0x1474   :  { %v2482_v10 = vmul.f32 0.35355338, %v2478_v11  ;;  %v5049_v12 = vpop.f32.mrb[29].mxu0 }
0x1476   :  { %v2483_v14 = vadd.f32 %v2482_v10, %v6068_v9 }
0x1478   :  { %v2484_v15 = vsel %vm220_vm2, %v2483_v14, -inf }
0x1479   :  { %2485 = vmax.xlane.f32.xlu1 %v2484_v15 }
0x14e6   :  { %v2646_v17 = vpop.f32.mrb[30].mxu0 }
0x14e7   :  { %v2650_v19 = vmul.f32 0.35355338, %v2646_v17  ;;  %v5059_v20 = vpop.f32.mrb[31].mxu0 }
0x14e9   :  { %v2651_v21 = vadd.f32 %v2650_v19, %v6068_v9  ;;  %v6143_v19 = vld [vmem:[%s6381_s5 + $0x30] sm:$0xff] }
0x14eb   :  { %v2652_v47 = vsel %vm220_vm2, %v2651_v21, -inf }
0x14ec   :  { %2653 = vmax.xlane.f32.xlu0 %v2652_v47 }
0x1506   :  { %v2486_v22 = vpop.xlane.xlu1 %2485 }
0x1507   :  { %v2487_v23 = vsub.f32 %v2483_v14, %v2486_v22 }
0x1509   :  { %v2488_v24 = vmul.f32 1.442695, %v2487_v23 }
0x150b   :  { %5312 = vpow2.f32 %v2488_v24 }
0x1515   :  { %v5313_v7 = vpop.eup %5312 }
0x1516   :  { %v2490_v25 = vsel %vm220_vm2, %v5313_v7, 0.0 }
0x1517   :  { %2491 = vadd.xlane.f32.xlu0 %v2490_v25  ;;  %v6156_v25 = vadd.f32 %v6051_v1, %v6026_v45 }
0x152d   :  { %2496 = vrot.lane.b32.xlu0 %v6045_v0, %s5548_s16 }
0x1531   :  { %2887 = vrot.lane.b32.xlu0 %v6055_v3, %s5553_s27 }
0x1579   :  { %v2654_v26 = vpop.xlane.xlu0 %2653 }
0x157a   :  { %v2655_v27 = vsub.f32 %v2651_v21, %v2654_v26 }
0x157c   :  { %v2656_v28 = vmul.f32 1.442695, %v2655_v27 }
0x157e   :  { %5314 = vpow2.f32 %v2656_v28 }
0x1588   :  { %v5315_v29 = vpop.eup %5314 }
0x1589   :  { %v2658_v18 = vsel %vm220_vm2, %v5315_v29, 0.0 }
0x158a   :  { %2659 = vadd.xlane.f32.xlu1 %v2658_v18 }
0x159b   :  { %2665 = vrot.lane.b32.xlu1 %v6045_v0, %s5549_s22 }
0x159f   :  { %2889 = vrot.lane.b32.xlu1 %v6045_v0, %s5553_s27 }
0x15a4   :  { %v2492_v13 = vpop.xlane.xlu0 %2491 }
0x15a5   :  { %5316 = vrcp.f32 %v2492_v13 }
0x15a8   :  { %v2497_v31 = vpop.permute.xlu0 %2496 }
0x15a9   :  { %5051 = vmatpush3.msra.mxu1 %v2497_v31 }
0x15aa   :  { %5060 = vmatprep.subr.mxu1 %v5545_v8 }
0x15ac   :  { %v2888_v51 = vpop.permute.xlu0 %2887 }
0x15af   :  { %v5317_v32 = vpop.eup %5316 }
0x15b0   :  { %v2494_v33 = vmul.f32 %v5317_v32, %v5313_v7 }
0x15b2   :  { %2495 = vst.msk [vmem:[#allocation14] sm:$0xff] %vm220_vm2, %v2494_v33  ;;  %5053 = vmatmul.mubr.msk.f32.vlgmr.msra.gmra.mrb[26].mxu1 %vm220_vm2, %v2494_v33 }
0x15b3   :  { %5062 = vmatprep.mubr.msk.f32.mxu1 %vm5546_vm1, %v5545_v8 }
0x1617   :  { %v2660_v35 = vpop.xlane.xlu1 %2659 }
0x1618   :  { %5318 = vrcp.f32 %v2660_v35  ;;  %v6190_v35 = vld [vmem:[%s6381_s5 + $0x38] sm:$0xff] }
0x161b   :  { %v2666_v36 = vpop.permute.xlu1 %2665 }
0x161c   :  { %5061 = vmatpush3.msra.mxu1 %v2666_v36 }
0x161d   :  { %5070 = vmatprep.subr.mxu1 %v5545_v8 }
0x161f   :  { %v2890_v39 = vpop.permute.xlu1 %2889 }
0x1622   :  { %v5319_v37 = vpop.eup %5318 }
0x1623   :  { %v2662_v41 = vmul.f32 %v5319_v37, %v5315_v29 }
0x1625   :  { %2664 = vst.msk [vmem:[#allocation14 + $0x8] sm:$0xff] %vm220_vm2, %v2662_v41  ;;  %5063 = vmatmul.mubr.msk.f32.vlgmr.msra.gmra.mrb[28].mxu1 %vm220_vm2, %v2662_v41  ;;  %v6197_v41 = vld [vmem:[#allocation8 + $0x8] sm:$0xff] }
0x1626   :  { %5071 = vmatpush3.msra.mxu1 %v6100_v38  ;;  %5072 = vmatprep.mubr.msk.f32.mxu1 %vm5546_vm1, %v5545_v8 }
0x1627   :  { %5080 = vmatprep.subr.mxu1 %v5545_v8 }
0x1685   :  { %v2568_v46 = vpop.f32.mrb[26].mxu1 }
0x1686   :  { %v5054_v48 = vpop.f32.mrb[27].mxu1  ;;  %5073 = vmatmul.mubr.msk.f32.vlgmr.msra.gmra.mrb[30].mxu1 %vm220_vm2, %v2568_v46 }
0x1687   :  { %5082 = vmatprep.mubr.msk.f32.mxu1 %vm5546_vm1, %v5545_v8 }
0x16f8   :  { %v2737_v49 = vpop.f32.mrb[28].mxu1 }
0x16f9   :  { %v5064_v50 = vpop.f32.mrb[29].mxu1  ;;  %5068 = vmatmul.mubr.msk.f32.vlgmr.msra.gmra.mrb[32].mxu0 %vm220_vm2, %v2737_v49 }
0x16fa   :  { %5076 = vmatpush3.xpose.msk.msra.mxu0 %vm220_vm2, %v2890_v39  ;;  %5077 = vmatprep.mubr.msk.f32.mxu0 %vm5546_vm1, %v5545_v8 }
0x16fb   :  { %5085 = vmatprep.subr.mxu0 %v5545_v8 }
0x16fd   :  { %5078 = vmatmul.mubr.msk.f32.vlgmr.msra.gmra.mrb[34].mxu0 %vm220_vm2, %v2888_v51 }
0x16fe   :  { %5087 = vmatprep.mubr.msk.f32.mxu0 %vm5546_vm1, %v5545_v8  ;;  %5086 = vmatpush3.msra.mxu0 %v6143_v19 }
0x16ff   :  { %5095 = vmatprep.subr.mxu0 %v5545_v8 }
0x1759   :  { %v2883_v52 = vpop.f32.mrb[30].mxu1 }
0x175a   :  { %v5074_v53 = vpop.f32.mrb[31].mxu1 }
0x17cc   :  { %v2810_v54 = vpop.f32.mrb[32].mxu0 }
0x17cd   :  { %v6119_v55 = vadd.f32 %v2883_v52, %v2810_v54  ;;  %v5069_v56 = vpop.f32.mrb[33].mxu0 }
0x17d0   :  { %v2961_v57 = vpop.f32.mrb[34].mxu0 }
0x17d1   :  { %v2965_v58 = vmul.f32 0.35355338, %v2961_v57  ;;  %v5079_v59 = vpop.f32.mrb[35].mxu0 }
0x17d3   :  { %v2966_v60 = vadd.f32 %v2965_v58, %v6068_v9 }
0x17d5   :  { %v2967_v61 = vsel %vm220_vm2, %v2966_v60, -inf }
0x17d6   :  { %2968 = vmax.xlane.f32.xlu1 %v2967_v61 }
0x17e7   :  { %3132 = vrot.lane.b32.xlu1 %v6045_v0, %s5555_s18 }
0x17eb   :  { %3130 = vrot.lane.b32.xlu1 %v6055_v3, %s5555_s18 }
0x1863   :  { %v2969_v5 = vpop.xlane.xlu1 %2968 }
0x1864   :  { %v2970_v2 = vsub.f32 %v2966_v60, %v2969_v5 }
0x1866   :  { %v2971_v4 = vmul.f32 1.442695, %v2970_v2 }
0x1867   :  { %v3133_v15 = vpop.permute.xlu1 %3132 }
0x1868   :  { %5320 = vpow2.f32 %v2971_v4 }
0x186b   :  { %v3131_v17 = vpop.permute.xlu1 %3130 }
0x1872   :  { %v5321_v6 = vpop.eup %5320 }
0x1873   :  { %v2973_v11 = vsel %vm220_vm2, %v5321_v6, 0.0 }
0x1874   :  { %2974 = vadd.xlane.f32.xlu0 %v2973_v11 }
0x188a   :  { %2980 = vrot.lane.b32.xlu0 %v6045_v0, %s5552_s23 }
0x1901   :  { %v2975_v10 = vpop.xlane.xlu0 %2974 }
0x1902   :  { %5322 = vrcp.f32 %v2975_v10 }
0x1905   :  { %v2981_v12 = vpop.permute.xlu0 %2980 }
0x1906   :  { %5081 = vmatpush3.msra.mxu1 %v2981_v12 }
0x1907   :  { %5090 = vmatprep.subr.mxu1 %v5545_v8 }
0x190c   :  { %v5323_v14 = vpop.eup %5322 }
0x190d   :  { %v2977_v3 = vmul.f32 %v5323_v14, %v5321_v6 }
0x190f   :  { %2979 = vst.msk [vmem:[#allocation14 + $0x10] sm:$0xff] %vm220_vm2, %v2977_v3  ;;  %5083 = vmatmul.mubr.msk.f32.vlgmr.msra.gmra.mrb[32].mxu1 %vm220_vm2, %v2977_v3 }
0x1910   :  { %5091 = vmatpush3.xpose.msk.msra.mxu1 %vm220_vm2, %v3133_v15  ;;  %5092 = vmatprep.mubr.msk.f32.mxu1 %vm5546_vm1, %v5545_v8 }
0x1911   :  { %5100 = vmatprep.subr.mxu1 %v5545_v8 }
0x1913   :  { %5093 = vmatmul.mubr.msk.f32.vlgmr.msra.gmra.mrb[34].mxu1 %vm220_vm2, %v3131_v17 }
0x1914   :  { %5102 = vmatprep.mubr.msk.f32.mxu1 %vm5546_vm1, %v5545_v8  ;;  %5101 = vmatpush3.msra.mxu1 %v6190_v35 }
0x1915   :  { %5110 = vmatprep.subr.mxu1 %v5545_v8 }
0x19e2   :  { %v3052_v20 = vpop.f32.mrb[32].mxu1 }
0x19e3   :  { %v5084_v21 = vpop.f32.mrb[33].mxu1  ;;  %5088 = vmatmul.mubr.msk.f32.vlgmr.msra.gmra.mrb[36].mxu0 %vm220_vm2, %v3052_v20 }
0x19e4   :  { %5097 = vmatprep.mubr.msk.f32.mxu0 %vm5546_vm1, %v5545_v8 }
0x19e6   :  { %v3204_v47 = vpop.f32.mrb[34].mxu1 }
0x19e7   :  { %v3208_v22 = vmul.f32 0.35355338, %v3204_v47  ;;  %v5094_v23 = vpop.f32.mrb[35].mxu1 }
0x19e9   :  { %v3209_v24 = vadd.f32 %v3208_v22, %v6068_v9 }
0x19eb   :  { %v3210_v7 = vsel %vm220_vm2, %v3209_v24, -inf }
0x19ec   :  { %3211 = vmax.xlane.f32.xlu0 %v3210_v7 }
0x1a02   :  { %3223 = vrot.lane.b32.xlu0 %v6045_v0, %s5554_s17  ;;  %v6164_v0 = vadd.f32 %v6042_v63, %v6040_v62 }
0x1a06   :  { %3571 = vrot.lane.b32.xlu0 %v6156_v25, %s5547_s3 }
0x1a79   :  { %v3212_v26 = vpop.xlane.xlu0 %3211 }
0x1a7a   :  { %v3213_v27 = vsub.f32 %v3209_v24, %v3212_v26 }
0x1a7c   :  { %v3214_v28 = vmul.f32 1.442695, %v3213_v27 }
0x1a7d   :  { %v3224_v29 = vpop.permute.xlu0 %3223 }
0x1a7e   :  { %5324 = vpow2.f32 %v3214_v28  ;;  %5096 = vmatpush3.msra.mxu0 %v3224_v29 }
0x1a7f   :  { %5105 = vmatprep.subr.mxu0 %v5545_v8 }
0x1a81   :  { %v3572_v63 = vpop.permute.xlu0 %3571 }
0x1a88   :  { %v5325_v9 = vpop.eup %5324 }
0x1a89   :  { %v3216_v18 = vsel %vm220_vm2, %v5325_v9, 0.0 }
0x1a8a   :  { %3217 = vadd.xlane.f32.xlu1 %v3216_v18 }
0x1a9b   :  { %3573 = vrot.lane.b32.xlu1 %v6164_v0, %s5547_s3 }
0x1ab6   :  { %v3125_v45 = vpop.f32.mrb[36].mxu0 }
0x1ab7   :  { %v3129_v1 = vadd.f32 %v3125_v45, %v6119_v55  ;;  %v5089_v13 = vpop.f32.mrb[37].mxu0 }
0x1b17   :  { %v3218_v31 = vpop.xlane.xlu1 %3217 }
0x1b18   :  { %5326 = vrcp.f32 %v3218_v31 }
0x1b1b   :  { %v3574_v62 = vpop.permute.xlu1 %3573 }
0x1b22   :  { %v5327_v32 = vpop.eup %5326 }
0x1b23   :  { %v3220_v33 = vmul.f32 %v5327_v32, %v5325_v9 }
0x1b25   :  { %3222 = vst.msk [vmem:[#allocation14 + $0x18] sm:$0xff] %vm220_vm2, %v3220_v33  ;;  %5098 = vmatmul.mubr.msk.f32.vlgmr.msra.gmra.mrb[38].mxu0 %vm220_vm2, %v3220_v33 }
0x1b26   :  { %5106 = vmatpush3.xpose.msk.msra.mxu0 %vm220_vm2, %v6164_v0  ;;  %5107 = vmatprep.mubr.msk.f32.mxu0 %vm5546_vm1, %v5545_v8 }
0x1b27   :  { %5115 = vmatprep.subr.mxu0 %v5545_v8 }
0x1b29   :  { %5108 = vmatmul.mubr.msk.f32.vlgmr.msra.gmra.mrb[40].mxu0 %vm220_vm2, %v6156_v25 }
0x1b2a   :  { %5116 = vmatpush3.xpose.msk.msra.mxu0 %vm220_vm2, %v3574_v62  ;;  %5117 = vmatprep.mubr.msk.f32.mxu0 %vm5546_vm1, %v5545_v8 }
0x1b2b   :  { %5125 = vmatprep.subr.mxu0 %v5545_v8 }
0x1b2d   :  { %5118 = vmatmul.mubr.msk.f32.vlgmr.msra.gmra.mrb[42].mxu0 %vm220_vm2, %v3572_v63 }
0x1b2e   :  { %5126 = vmatpush3.msra.mxu0 %v6092_v34  ;;  %5127 = vmatprep.mubr.msk.f32.mxu0 %vm5546_vm1, %v5545_v8 }
0x1b2f   :  { %5135 = vmatprep.subr.mxu0 %v5545_v8 }
0x1bf8   :  { %v3295_v36 = vpop.f32.mrb[38].mxu0 }
0x1bf9   :  { %v5099_v37 = vpop.f32.mrb[39].mxu0  ;;  %5103 = vmatmul.mubr.msk.f32.vlgmr.msra.gmra.mrb[36].mxu1 %vm220_vm2, %v3295_v36 }
0x1bfa   :  { %5112 = vmatprep.mubr.msk.f32.mxu1 %vm5546_vm1, %v5545_v8 }
0x1bfc   :  { %v3476_v34 = vpop.f32.mrb[40].mxu0 }
0x1bfd   :  { %v3480_v46 = vmul.f32 0.35355338, %v3476_v34  ;;  %v5109_v48 = vpop.f32.mrb[41].mxu0 }
0x1bff   :  { %v3481_v49 = vadd.f32 %v3480_v46, %v6197_v41 }
0x1c00   :  { %v3645_v39 = vpop.f32.mrb[42].mxu0 }
0x1c01   :  { %v3649_v50 = vmul.f32 0.35355338, %v3645_v39  ;;  %v5119_v51 = vpop.f32.mrb[43].mxu0  ;;  %v3482_v52 = vsel %vm220_vm2, %v3481_v49, -inf }
0x1c02   :  { %3483 = vmax.xlane.f32.xlu1 %v3482_v52 }
0x1c03   :  { %v3650_v53 = vadd.f32 %v3649_v50, %v6197_v41 }
0x1c05   :  { %v3651_v54 = vsel %vm220_vm2, %v3650_v53, -inf }
0x1c06   :  { %3652 = vmax.xlane.f32.xlu0 %v3651_v54 }
0x1c8f   :  { %v3484_v55 = vpop.xlane.xlu1 %3483 }
0x1c90   :  { %v3485_v56 = vsub.f32 %v3481_v49, %v3484_v55 }
0x1c92   :  { %v3486_v57 = vmul.f32 1.442695, %v3485_v56 }
0x1c93   :  { %v3653_v58 = vpop.xlane.xlu0 %3652 }
0x1c94   :  { %5328 = vpow2.f32 %v3486_v57  ;;  %v3654_v59 = vsub.f32 %v3650_v53, %v3653_v58 }
0x1c96   :  { %v3655_v60 = vmul.f32 1.442695, %v3654_v59  ;;  %v4716_v59 = vld [vmem:[%s6383_s7 + $0x4] sm:$0x7] }
0x1c98   :  { %5330 = vpow2.f32 %v3655_v60 }
0x1c9e   :  { %v5329_v61 = vpop.eup %5328 }
0x1c9f   :  { %v3488_v5 = vsel %vm220_vm2, %v5329_v61, 0.0 }
0x1ca0   :  { %3489 = vadd.xlane.f32.xlu0 %v3488_v5 }
0x1ca2   :  { %v5331_v2 = vpop.eup %5330 }
0x1ca3   :  { %v3657_v4 = vsel %vm220_vm2, %v5331_v2, 0.0 }
0x1ca4   :  { %3658 = vadd.xlane.f32.xlu1 %v3657_v4 }
0x1cb5   :  { %3664 = vrot.lane.b32.xlu1 %v6164_v0, %s5549_s22 }
0x1cb6   :  { %3495 = vrot.lane.b32.xlu0 %v6164_v0, %s5548_s16 }
0x1cb9   :  { %3888 = vrot.lane.b32.xlu1 %v6164_v0, %s5553_s27 }
0x1cba   :  { %3886 = vrot.lane.b32.xlu0 %v6156_v25, %s5553_s27 }
0x1ccc   :  { %v3368_v6 = vpop.f32.mrb[36].mxu1 }
0x1ccd   :  { %v6213_v11 = vadd.f32 %v3368_v6, %v3129_v1  ;;  %v5104_v10 = vpop.f32.mrb[37].mxu1 }
0x1d2d   :  { %v3490_v12 = vpop.xlane.xlu0 %3489 }
0x1d2e   :  { %5332 = vrcp.f32 %v3490_v12 }
0x1d31   :  { %v3659_v14 = vpop.xlane.xlu1 %3658  ;;  %v3496_v15 = vpop.permute.xlu0 %3495 }
0x1d32   :  { %5334 = vrcp.f32 %v3659_v14  ;;  %5111 = vmatpush3.msra.mxu1 %v3496_v15 }
0x1d33   :  { %5120 = vmatprep.subr.mxu1 %v5545_v8 }
0x1d35   :  { %v3665_v20 = vpop.permute.xlu1 %3664 }
0x1d38   :  { %v5333_v3 = vpop.eup %5332 }
0x1d39   :  { %v3492_v17 = vmul.f32 %v5333_v3, %v5329_v61  ;;  %v3889_v7 = vpop.permute.xlu1 %3888 }
0x1d3b   :  { %3494 = vst.msk [vmem:[#allocation14 + $0x20] sm:$0xff] %vm220_vm2, %v3492_v17  ;;  %5113 = vmatmul.mubr.msk.f32.vlgmr.msra.gmra.mrb[38].mxu1 %vm220_vm2, %v3492_v17 }
0x1d3c   :  { %v5335_v21 = vpop.eup %5334  ;;  %5121 = vmatpush3.msra.mxu1 %v3665_v20  ;;  %5122 = vmatprep.mubr.msk.f32.mxu1 %vm5546_vm1, %v5545_v8 }
0x1d3d   :  { %v3661_v47 = vmul.f32 %v5335_v21, %v5331_v2  ;;  %5130 = vmatprep.subr.mxu1 %v5545_v8 }
0x1d3f   :  { %3663 = vst.msk [vmem:[#allocation14 + $0x28] sm:$0xff] %vm220_vm2, %v3661_v47  ;;  %5123 = vmatmul.mubr.msk.f32.vlgmr.msra.gmra.mrb[40].mxu1 %vm220_vm2, %v3661_v47 }
0x1d40   :  { %5131 = vmatpush3.msra.mxu1 %v6100_v38  ;;  %5132 = vmatprep.mubr.msk.f32.mxu1 %vm5546_vm1, %v5545_v8  ;;  %v3887_v38 = vpop.permute.xlu0 %3886 }
0x1d41   :  { %5140 = vmatprep.subr.mxu1 %v5545_v8 }
0x1e0e   :  { %v3567_v22 = vpop.f32.mrb[38].mxu1 }
0x1e0f   :  { %v5114_v23 = vpop.f32.mrb[39].mxu1  ;;  %5133 = vmatmul.mubr.msk.f32.vlgmr.msra.gmra.mrb[42].mxu1 %vm220_vm2, %v3567_v22 }
0x1e10   :  { %5142 = vmatprep.mubr.msk.f32.mxu1 %vm5546_vm1, %v5545_v8 }
0x1e12   :  { %v3736_v24 = vpop.f32.mrb[40].mxu1 }
0x1e13   :  { %v5124_v26 = vpop.f32.mrb[41].mxu1  ;;  %5128 = vmatmul.mubr.msk.f32.vlgmr.msra.gmra.mrb[44].mxu0 %vm220_vm2, %v3736_v24 }
0x1e14   :  { %5136 = vmatpush3.xpose.msk.msra.mxu0 %vm220_vm2, %v3889_v7  ;;  %5137 = vmatprep.mubr.msk.f32.mxu0 %vm5546_vm1, %v5545_v8 }
0x1e15   :  { %5145 = vmatprep.subr.mxu0 %v5545_v8 }
0x1e17   :  { %5138 = vmatmul.mubr.msk.f32.vlgmr.msra.gmra.mrb[46].mxu0 %vm220_vm2, %v3887_v38 }
0x1e18   :  { %5146 = vmatpush3.msra.mxu0 %v6143_v19  ;;  %5147 = vmatprep.mubr.msk.f32.mxu0 %vm5546_vm1, %v5545_v8 }
0x1e19   :  { %5155 = vmatprep.subr.mxu0 %v5545_v8 }
0x1ee2   :  { %v3882_v27 = vpop.f32.mrb[42].mxu1 }
0x1ee3   :  { %v5134_v28 = vpop.f32.mrb[43].mxu1 }
0x1ee6   :  { %v3809_v29 = vpop.f32.mrb[44].mxu0 }
0x1ee7   :  { %v3883_v9 = vadd.f32 %v3882_v27, %v3809_v29  ;;  %v5129_v18 = vpop.f32.mrb[45].mxu0 }
0x1eea   :  { %v3960_v45 = vpop.f32.mrb[46].mxu0 }
0x1eeb   :  { %v3964_v1 = vmul.f32 0.35355338, %v3960_v45  ;;  %v5139_v13 = vpop.f32.mrb[47].mxu0 }
0x1eec   :  { %v3400_v13 = vrot.slane %v4716_v59, %v1213_v16  ;;  %v4485_v16 = vld [vmem:[%s6385_s9 + $0x10] sm:$0xff] }
0x1eed   :  { %v3965_v31 = vadd.f32 %v3964_v1, %v6197_v41 }
0x1eef   :  { %v3966_v32 = vsel %vm220_vm2, %v3965_v31, -inf }
0x1ef0   :  { %3967 = vmax.xlane.f32.xlu1 %v3966_v32 }
0x1f01   :  { %4131 = vrot.lane.b32.xlu1 %v6164_v0, %s5555_s18 }
0x1f05   :  { %4129 = vrot.lane.b32.xlu1 %v6156_v25, %s5555_s18 }
0x1f7d   :  { %v3968_v19 = vpop.xlane.xlu1 %3967 }
0x1f7e   :  { %v3969_v33 = vsub.f32 %v3965_v31, %v3968_v19 }
0x1f80   :  { %v3970_v62 = vmul.f32 1.442695, %v3969_v33  ;;  %v4389_v33 = vld [vmem:[#allocation10] sm:$0xff] }
0x1f81   :  { %v4132_v48 = vpop.permute.xlu1 %4131 }
0x1f82   :  { %5336 = vpow2.f32 %v3970_v62  ;;  %v4390_v62 = vld [vmem:[#allocation10 + $0x8] sm:$0xff] }
0x1f85   :  { %v4130_v49 = vpop.permute.xlu1 %4129 }
0x1f8c   :  { %v5337_v63 = vpop.eup %5336 }
0x1f8d   :  { %v3972_v36 = vsel %vm220_vm2, %v5337_v63, 0.0 }
0x1f8e   :  { %3973 = vadd.xlane.f32.xlu0 %v3972_v36  ;;  %v4391_v36 = vld [vmem:[#allocation10 + $0x10] sm:$0xff] }
0x1fa4   :  { %3979 = vrot.lane.b32.xlu0 %v6164_v0, %s5552_s23 }
0x201b   :  { %v3974_v37 = vpop.xlane.xlu0 %3973 }
0x201c   :  { %5338 = vrcp.f32 %v3974_v37  ;;  %v4392_v37 = vld [vmem:[#allocation10 + $0x18] sm:$0xff] }
0x201f   :  { %v3980_v34 = vpop.permute.xlu0 %3979 }
0x2020   :  { %5141 = vmatpush3.msra.mxu1 %v3980_v34  ;;  %v5223_v34 = vpack.c.bf16 %v4392_v37, %v4391_v36 }
0x2021   :  { %5150 = vmatprep.subr.mxu1 %v5545_v8 }
0x2026   :  { %v5339_v46 = vpop.eup %5338 }
0x2027   :  { %v3976_v25 = vmul.f32 %v5339_v46, %v5337_v63  ;;  %v5219_v63 = vpack.c.bf16 %v4390_v62, %v4389_v33 }
0x2029   :  { %3978 = vst.msk [vmem:[#allocation14 + $0x30] sm:$0xff] %vm220_vm2, %v3976_v25  ;;  %5143 = vmatmul.mubr.msk.f32.vlgmr.msra.gmra.mrb[44].mxu1 %vm220_vm2, %v3976_v25 }
0x202a   :  { %5151 = vmatpush3.xpose.msk.msra.mxu1 %vm220_vm2, %v4132_v48  ;;  %5152 = vmatprep.mubr.msk.f32.mxu1 %vm5546_vm1, %v5545_v8  ;;  %v4486_v48 = vld [vmem:[%s6385_s9 + $0x18] sm:$0xff] }
0x202b   :  { %5160 = vmatprep.subr.mxu1 %v5545_v8  ;;  %v5231_v25 = vpack.c.bf16 %v4486_v48, %v4485_v16 }
0x202d   :  { %5153 = vmatmul.mubr.msk.f32.vlgmr.msra.gmra.mrb[46].mxu1 %vm220_vm2, %v4130_v49  ;;  %v4487_v49 = vld [vmem:[%s6385_s9 + $0x20] sm:$0xff] }
0x202e   :  { %5161 = vmatpush3.msra.mxu1 %v6190_v35  ;;  %5162 = vmatprep.mubr.msk.f32.mxu1 %vm5546_vm1, %v5545_v8 }
0x20fc   :  { %v4051_v39 = vpop.f32.mrb[44].mxu1 }
0x20fd   :  { %v5144_v50 = vpop.f32.mrb[45].mxu1  ;;  %5148 = vmatmul.mubr.msk.f32.vlgmr.msra.gmra.mrb[48].mxu0 %vm220_vm2, %v4051_v39  ;;  %v4488_v39 = vld [vmem:[%s6385_s9 + $0x28] sm:$0xff] }
0x20fe   :  { %5157 = vmatprep.mubr.msk.f32.mxu0 %vm5546_vm1, %v5545_v8  ;;  %v3376_v8 = vrot.slane %v4716_v59, %v1188_v44  ;;  %v5235_v50 = vpack.c.bf16 %v4488_v39, %v4487_v49 }
0x2100   :  { %v4203_v51 = vpop.f32.mrb[46].mxu1 }
0x2101   :  { %v4207_v52 = vmul.f32 0.35355338, %v4203_v51  ;;  %v5154_v53 = vpop.f32.mrb[47].mxu1 }
0x2103   :  { %v4208_v54 = vadd.f32 %v4207_v52, %v6197_v41  ;;  %v3377_v41 = vadd.f32 %v3376_v8, %v6213_v11 }
0x2105   :  { %v4209_v55 = vsel %vm220_vm2, %v4208_v54, -inf }
0x2106   :  { %4210 = vmax.xlane.f32.xlu0 %v4209_v55 }
0x211c   :  { %4222 = vrot.lane.b32.xlu0 %v6164_v0, %s5554_s17  ;;  %v3378_v0 = vadd.f32 %v3377_v41, %v6016_v40 }
0x211e   :  { %v3379_v5 = vsel %vm134_vm0, %v3378_v0, 0.0 }
0x2193   :  { %v4211_v35 = vpop.xlane.xlu0 %4210 }
0x2194   :  { %v4212_v56 = vsub.f32 %v4208_v54, %v4211_v35 }
0x2196   :  { %v4213_v57 = vmul.f32 1.442695, %v4212_v56 }
0x2197   :  { %v4223_v58 = vpop.permute.xlu0 %4222 }
0x2198   :  { %5340 = vpow2.f32 %v4213_v57  ;;  %5156 = vmatpush3.msra.mxu0 %v4223_v58  ;;  %v4489_v57 = vld [vmem:[%s6385_s9 + $0x30] sm:$0xff]  ;;  %v4490_v58 = vld [vmem:[%s6385_s9 + $0x38] sm:$0xff] }
0x2199   :  { %5220 = vmatprep.subr.bf16.mxu0 %v5219_v63 }
0x21a2   :  { %v5341_v60 = vpop.eup %5340 }
0x21a3   :  { %v4215_v61 = vsel %vm220_vm2, %v5341_v60, 0.0 }
0x21a4   :  { %4216 = vadd.xlane.f32.xlu1 %v4215_v61 }
0x21a8   :  { %3380 = vadd.xlane.f32.xlu1 %v3379_v5 }
0x21d0   :  { %v4124_v2 = vpop.f32.mrb[48].mxu0 }
0x21d1   :  { %v4128_v4 = vadd.f32 %v4124_v2, %v3883_v9  ;;  %v5149_v6 = vpop.f32.mrb[49].mxu0 }
0x2231   :  { %v4217_v10 = vpop.xlane.xlu1 %4216 }
0x2232   :  { %5342 = vrcp.f32 %v4217_v10 }
0x2235   :  { %v3381_v40 = vpop.xlane.xlu1 %3380 }
0x2236   :  { %v3382_v15 = vmul.f32 0.03125, %v3381_v40 }
0x2238   :  { %v3383_v21 = vsub.f32 %v3378_v0, %v3382_v15 }
0x223a   :  { %v3384_v24 = vmul.f32 %v3383_v21, %v3383_v21 }
0x223c   :  { %v5343_v12 = vpop.eup %5342  ;;  %v3385_v7 = vsel %vm134_vm0, %v3384_v24, 0.0 }
0x223d   :  { %v4219_v14 = vmul.f32 %v5343_v12, %v5341_v60 }
0x223f   :  { %4221 = vst.msk [vmem:[#allocation14 + $0x38] sm:$0xff] %vm220_vm2, %v4219_v14  ;;  %5158 = vmatmul.mubr.msk.f32.vlgmr.msra.gmra.mrb[50].mxu0 %vm220_vm2, %v4219_v14 }
0x2240   :  { %5222 = vmatpush3.bf16.msra.mxu0 %v5219_v63 }
0x2241   :  { %5224 = vmatprep.subr.bf16.mxu0 %v5223_v34 }
0x2244   :  { %5226 = vmatpush3.bf16.msra.mxu0 %v5223_v34 }
0x2312   :  { %v4294_v44 = vpop.f32.mrb[50].mxu0 }
0x2313   :  { %v5159_v11 = vpop.f32.mrb[51].mxu0  ;;  %5163 = vmatmul.mubr.msk.f32.vlgmr.msra.gmra.mrb[48].mxu1 %vm220_vm2, %v4294_v44 }
0x23e6   :  { %v4367_v3 = vpop.f32.mrb[48].mxu1 }
0x23e7   :  { %v4371_v17 = vadd.f32 %v4367_v3, %v4128_v4  ;;  %v5164_v20 = vpop.f32.mrb[49].mxu1  ;;  %v4757_v4 = vld [vmem:[%s6387_s11] ss:$0 sm:$0xff] }
0x23e9   :  { %v4372_v47 = vadd.f32 %v4371_v17, %v3376_v8  ;;  %v4754_v8 = vld [vmem:[%s6386_s10] ss:$0 sm:$0xff] }
0x23eb   :  { %v4373_v22 = vadd.f32 %v4372_v47, %v6034_v42  ;;  %v3395_v42 = vrot.slane %v4716_v59, %v1208_v30  ;;  %v4484_v30 = vld [vmem:[%s6385_s9 + $0x8] sm:$0xff]  ;;  %v5239_v59 = vpack.c.bf16 %v4490_v58, %v4489_v57  ;;  %s5558_s9 = smov [#allocation12]  }
0x23ec   :  { %v5227_v46 = vpack.c.bf16 %v4484_v30, %v4483_v43  ;;  %s4639_s10 = sshll.u32 %s5558_s9, 4  ;;  %s4640_s10 = int_to_ptr.vmem [resolvable:$true] %s4639_s10 }
0x23ed   :  { %v4374_v23 = vsel %vm134_vm0, %v4373_v22, 0.0  ;;  %s5462_s29 = scalar_lea.vmem %s4640_s10, 1024  ;;  %p5467_p13 = scmp.lt.s32.totalorder %s4640_s10, %s4640_s10 }
0x23ee   :  { %4375 = vadd.xlane.f32.xlu1 %v4374_v23  ;;  %5228 = vmatprep.subr.bf16.mxu1 %v5227_v46  ;;  %p5463_p12 = scmp.ne.s32.totalorder %s4640_s10, %s5462_s29  ;;  %p5468_p0 = scmp.lt.s32.totalorder %s5462_s29, %s5462_s29 }
0x23ef   :  { %5230 = vmatpush3.bf16.msra.mxu1 %v5227_v46 }
0x23f0   :  { %5232 = vmatprep.subr.bf16.mxu1 %v5231_v25  ;;  %p5469_p1 = por %p5468_p0, %p5467_p13 }
0x23f2   :  { %3386 = vadd.xlane.f32.xlu1 %v3385_v7  ;;  %p5470_p2 = pnand %p5469_p1, %p5463_p12 }
0x23f3   :  { %5234 = vmatpush3.bf16.msra.mxu1 %v5231_v25 }
0x23f4   :  { %5236 = vmatprep.subr.bf16.mxu1 %v5235_v50 }
0x23f7   :  { %5238 = vmatpush3.bf16.msra.mxu1 %v5235_v50 }
0x23f8   :  { %5240 = vmatprep.subr.bf16.mxu1 %v5239_v59 }
0x23fb   :  { %5242 = vmatpush3.bf16.msra.mxu1 %v5239_v59 }
0x247b   :  { %v4376_v26 = vpop.xlane.xlu1 %4375 }
0x247c   :  { %v4377_v38 = vmul.f32 0.03125, %v4376_v26 }
0x247e   :  { %v4378_v27 = vsub.f32 %v4373_v22, %v4377_v38 }
0x247f   :  { %v3387_v28 = vpop.xlane.xlu1 %3386 }
0x2480   :  { %v3388_v29 = vmul.f32 0.03125, %v3387_v28  ;;  %v4379_v9 = vmul.f32 %v4378_v27, %v4378_v27 }
0x2482   :  { %v3389_v18 = vadd.f32 1e-05, %v3388_v29  ;;  %v4380_v45 = vsel %vm134_vm0, %v4379_v9, 0.0 }
0x2483   :  { %4381 = vadd.xlane.f32.xlu1 %v4380_v45 }
0x2484   :  { %5344 = vrsqrt.f32 %v3389_v18 }
0x248e   :  { %v5345_v1 = vpop.eup %5344 }
0x248f   :  { %v3391_v31 = vmul.f32 %v5345_v1, %v3383_v21 }
0x2491   :  { %v3396_v32 = vmul.f32 %v3395_v42, %v3391_v31 }
0x2493   :  { %v3401_v19 = vadd.f32 %v3400_v13, %v3396_v32 }
0x2495   :  { %5173 = vmatprep.mubr.msk.f32.mxu0 %vm134_vm0, %v3401_v19 }
0x2510   :  { %v4382_v51 = vpop.xlane.xlu1 %4381 }
0x2511   :  { %v4383_v52 = vmul.f32 0.03125, %v4382_v51 }
0x2513   :  { %v4384_v53 = vadd.f32 1e-05, %v4383_v52 }
0x2515   :  { %5346 = vrsqrt.f32 %v4384_v53 }
0x251f   :  { %v5347_v54 = vpop.eup %5346 }
0x2520   :  { %v4386_v55 = vmul.f32 %v5347_v54, %v4378_v27 }
0x2522   :  { %v4387_v35 = vmul.f32 %v4386_v55, %v3395_v42 }
0x2524   :  { %v4388_v56 = vadd.f32 %v4387_v35, %v3400_v13 }
0x2526   :  { %5174 = vmatmul.mubr.msk.f32.vlgmr.msra.gmra.mrb[52].mxu0 %vm134_vm0, %v4388_v56 }
0x25f9   :  { %v5175_v41 = vpop.f32.mrb[52].mxu0 }
0x25fa   :  { %v4478_v60 = vadd.f32 %v5175_v41, %v4754_v8  ;;  %v4472_v61 = vpop.f32.mrb[53].mxu0 }
0x25fb   :  { %v4473_v0 = vadd.f32 %v4754_v8, %v4472_v61 }
0x25fc   :  { %v4482_v2 = vmax.f32 %v4478_v60, 0.0 }
0x25fd   :  { %v4481_v5 = vmax.f32 %v4473_v0, 0.0 }
0x25ff   :  { %5192 = vmatprep.mubr.msk.f32.mxu1 %vm4496_vm3, %v4481_v5 }
0x2600   :  { %5193 = vmatmul.mubr.msk.f32.vlgmr.msra.gmra.mrb[50].mxu1 %vm4496_vm3, %v4482_v2 }
0x26d3   :  { %v5194_v6 = vpop.f32.mrb[50].mxu1 }
0x26d4   :  { %v4575_v10 = vadd.f32 %v5194_v6, %v4757_v4  ;;  %v4569_v12 = vpop.f32.mrb[51].mxu1 }
0x26d5   :  { %v4570_v14 = vadd.f32 %v4757_v4, %v4569_v12 }
0x26d6   :  { %v4579_v44 = vadd.f32 %v4575_v10, %v4388_v56 }
0x26d7   :  { %v4578_v11 = vadd.f32 %v4570_v14, %v3401_v19 }
0x26d8   :  { %v4585_v40 = vsel %vm134_vm0, %v4579_v44, 0.0 }
0x26d9   :  { %4586 = vadd.xlane.f32.xlu0 %v4585_v40  ;;  %v4582_v15 = vsel %vm134_vm0, %v4578_v11, 0.0 }
0x26da   :  { %4583 = vadd.xlane.f32.xlu1 %v4582_v15 }
0x2766   :  { %v4587_v3 = vpop.xlane.xlu0 %4586 }
0x2767   :  { %v4589_v17 = vmul.f32 0.03125, %v4587_v3  ;;  %v4584_v20 = vpop.xlane.xlu1 %4583 }
0x2768   :  { %v4588_v21 = vmul.f32 0.03125, %v4584_v20 }
0x2769   :  { %v4591_v47 = vsub.f32 %v4579_v44, %v4589_v17 }
0x276a   :  { %v4590_v22 = vsub.f32 %v4578_v11, %v4588_v21 }
0x276b   :  { %v4593_v7 = vmul.f32 %v4591_v47, %v4591_v47 }
0x276c   :  { %v4592_v23 = vmul.f32 %v4590_v22, %v4590_v22 }
0x276d   :  { %v4597_v26 = vsel %vm134_vm0, %v4593_v7, 0.0 }
0x276e   :  { %v4594_v24 = vsel %vm134_vm0, %v4592_v23, 0.0 }
0x276f   :  { %4595 = vadd.xlane.f32.xlu1 %v4594_v24 }
0x2773   :  { %4598 = vadd.xlane.f32.xlu1 %v4597_v26 }
0x2774   :  { %5473 = shalt.err (!%p5470_p2)
}
0x2775   :  { %s5474_s7 = scalar_lea.hbm %s6389_s13, 1024 }
0x2776   :  { %p5475_p3 = scmp.ne.s32.totalorder %s6389_s13, %s5474_s7  ;;  %p5478_p4 = scmp.lt.u32.totalorder %s5474_s7, %s6389_s13 }
0x2778   :  { %p5480_p5 = pnand %p5478_p4, %p5475_p3 }
0x277a   :  { %5483 = shalt.err (!%p5480_p5)
}
0x277b   :  { %4645 = dma.vmem_to_hbm [thread:$0]  %s4640_s10, 1024, %s6389_s13, [#allocation13], %s5540_s25, %s5540_s25, %s5541_s26  }
0x277c   :  { %s5559_s0 = smov [#allocation14]  }
0x277d   :  { %s4651_s24 = sshll.u32 %s5559_s0, 4  ;;  %s4652_s24 = int_to_ptr.vmem [resolvable:$true] %s4651_s24 }
0x277e   :  { %s5484_s8 = scalar_lea.vmem %s4652_s24, 1024  ;;  %p5489_p7 = scmp.lt.s32.totalorder %s4652_s24, %s4652_s24 }
0x277f   :  { %p5485_p6 = scmp.ne.s32.totalorder %s4652_s24, %s5484_s8  ;;  %p5490_p8 = scmp.lt.s32.totalorder %s5484_s8, %s5484_s8 }
0x2781   :  { %p5491_p9 = por %p5490_p8, %p5489_p7 }
0x2783   :  { %p5492_p10 = pnand %p5491_p9, %p5485_p6 }
0x2785   :  { %5495 = shalt.err (!%p5492_p10)
}
0x2786   :  { %s5496_s20 = scalar_lea.hbm %s6390_s14, 1024 }
0x2787   :  { %p5497_p11 = scmp.ne.s32.totalorder %s6390_s14, %s5496_s20  ;;  %p5500_p12 = scmp.lt.u32.totalorder %s5496_s20, %s6390_s14 }
0x2789   :  { %p5502_p13 = pnand %p5500_p12, %p5497_p11 }
0x278b   :  { %5505 = shalt.err (!%p5502_p13)
}
0x278c   :  { %4657 = dma.vmem_to_hbm [thread:$0]  %s4652_s24, 1024, %s6390_s14, [#allocation13], %s5540_s25, %s5540_s25, %s5541_s26  }
0x278d   :  { %v4760_v42 = vld [vmem:[%s6387_s11 + $0x1] ss:$0 sm:$0xff]  ;;  %v4761_v13 = vld [vmem:[%s6387_s11 + $0x2] ss:$0 sm:$0xff]  ;;  %s5560_s14 = smov [#allocation11]  }
0x278e   :  { %s4627_s29 = sshll.u32 %s5560_s14, 4  ;;  %s4628_s29 = int_to_ptr.vmem [resolvable:$true] %s4627_s29 }
0x278f   :  { %s5506_s5 = scalar_lea.vmem %s4628_s29, 256  ;;  %p5511_p1 = scmp.lt.s32.totalorder %s4628_s29, %s4628_s29 }
0x2790   :  { %p5507_p0 = scmp.ne.s32.totalorder %s4628_s29, %s5506_s5  ;;  %p5512_p2 = scmp.lt.s32.totalorder %s5506_s5, %s5506_s5 }
0x2792   :  { %p5513_p3 = por %p5512_p2, %p5511_p1 }
0x2794   :  { %p5514_p4 = pnand %p5513_p3, %p5507_p0 }
0x27fc   :  { %v4596_v38 = vpop.xlane.xlu1 %4595 }
0x27fd   :  { %v4600_v27 = vmul.f32 0.03125, %v4596_v38 }
0x27ff   :  { %v4602_v28 = vadd.f32 1e-05, %v4600_v27 }
0x2800   :  { %v4599_v29 = vpop.xlane.xlu1 %4598 }
0x2801   :  { %5348 = vrsqrt.f32 %v4602_v28  ;;  %v4601_v9 = vmul.f32 0.03125, %v4599_v29 }
0x2803   :  { %v4603_v18 = vadd.f32 1e-05, %v4601_v9 }
0x2805   :  { %5350 = vrsqrt.f32 %v4603_v18 }
0x280b   :  { %v5349_v45 = vpop.eup %5348 }
0x280c   :  { %v4606_v1 = vmul.f32 %v5349_v45, %v4590_v22 }
0x280e   :  { %v4612_v31 = vmul.f32 %v4760_v42, %v4606_v1 }
0x280f   :  { %v5351_v32 = vpop.eup %5350 }
0x2810   :  { %v4607_v19 = vmul.f32 %v5351_v32, %v4591_v47  ;;  %v4618_v33 = vadd.f32 %v4761_v13, %v4612_v31 }
0x2812   :  { %v4613_v62 = vmul.f32 %v4760_v42, %v4607_v19  ;;  %4620 = vst.msk [vmem:[#allocation11] sm:$0xff] %vm134_vm0, %v4618_v33 }
0x2814   :  { %v4619_v63 = vadd.f32 %v4761_v13, %v4613_v62 }
0x2816   :  { %4621 = vst.msk [vmem:[#allocation11 + $0x8] sm:$0xff] %vm134_vm0, %v4619_v63 }
0x2817   :  { %5517 = shalt.err (!%p5514_p4)
}
0x2818   :  { %s5518_s7 = scalar_lea.hbm %s6388_s12, 256 }
0x2819   :  { %p5519_p5 = scmp.ne.s32.totalorder %s6388_s12, %s5518_s7  ;;  %p5522_p6 = scmp.lt.u32.totalorder %s5518_s7, %s6388_s12 }
0x281b   :  { %p5524_p7 = pnand %p5522_p6, %p5519_p5 }
0x281d   :  { %5527 = shalt.err (!%p5524_p7)
}
0x281e   :  { %4633 = dma.vmem_to_hbm [thread:$0]  %s4628_s29, 256, %s6388_s12, [#allocation4], %s5540_s25, %s5540_s25, %s5541_s26  }
0x281f   :  { %5534 = dma.done.wait [#allocation4], 256  }
0x2820   :  { %5535 = vsyncadd [#allocation4], 4294967040 }
0x2821   :  { %5536 = dma.done.wait [#allocation13], 2048  }
0x2822   :  { %5537 = vsyncadd [#allocation13], 4294965248 }
0x2823   :  { %4667 = vsyncpa [#allocation3], 1 }
0x2824   :  { %4668 = vsyncpa [#allocation6], 1 }
0x2825   :  { %4669 = vsyncpa [#allocation9], 1 }
0x2826   :  { %4670 = vsyncpa [#allocation4], 1 }
0x2827   :  { %4671 = vsyncpa [#allocation13], 1 }

</bundles_post_ra>
